<compile_context>
chip_gen: v5e
topology: v5e:2x2
jax: 0.10.0
libtpu: 0.0.40
codegen_flags: <defaults>
</compile_context>

<pallas_src>
import jax
import jax.numpy as jnp
from jax.experimental import pallas as pl
from jax.experimental.pallas import tpu as pltpu


def _single_conv_kernel(x_ref, w_ref, b_ref, o_ref):
    """Fused 3x3 conv (in-kernel im2col, 9 tap matmuls) + folded BN + ReLU.

    x_ref: (1, H+2, W+2, C_in) bf16  halo-padded NHWC image (resident per image)
    w_ref: (9, C_in, C_out)    bf16  BN-scale-folded conv weights (grid-resident)
    b_ref: (1, C_out)          f32   folded BN bias: scale*(conv_b - mean) + beta
    o_ref: (1, TH, W, C_out)   f32   unpadded NHWC output row tile
    """
    TH = o_ref.shape[1]
    W = o_ref.shape[2]
    C_in = x_ref.shape[3]
    C_out = o_ref.shape[3]
    row0 = pl.program_id(1) * TH          # first output row of this tile

    acc = jnp.zeros((TH * W, C_out), jnp.float32)
    for dy in range(3):                   # static unroll: 9 taps, K = C_in each
        rows = x_ref[:, pl.ds(row0 + dy, TH), :, :]         # (1, TH, W+2, C_in)
        for dx in range(3):
            lhs = rows[:, :, dx:dx + W, :].reshape(TH * W, C_in)
            acc = acc + jnp.dot(lhs, w_ref[dy * 3 + dx],
                                preferred_element_type=jnp.float32)
    y = jnp.maximum(acc + b_ref[...], 0.0)                  # f32 epilogue
    o_ref[...] = y.reshape(1, TH, W, C_out).astype(o_ref.dtype)


def _pick_row_tile(H, W):
    """Largest divisor of H (multiple of 8, or H itself) targeting ~2K px/step."""
    target_rows = max(1, 2048 // max(W, 1))
    cands = [d for d in range(1, H + 1)
             if H % d == 0 and (d % 8 == 0 or d == H)]
    fitting = [d for d in cands if d <= target_rows]
    return max(fitting) if fitting else min(cands)


@jax.jit
def single_conv_forward(x_nchw, w_oihw, conv_b, gamma, beta, run_mean, run_var):
    """single_conv forward: (N, C_in, H, W) f32 -> (N, C_out, H, W) f32."""
    eps = 1e-5
    N, C_in, H, W = x_nchw.shape
    C_out = w_oihw.shape[0]
    TH = _pick_row_tile(H, W)

    # --- glue (plain JAX): layout + 1-pixel halo pad only (no im2col in HBM) ---
    x_nhwc = jnp.transpose(x_nchw, (0, 2, 3, 1))                      # N,H,W,Cin
    x_pad = jnp.pad(x_nhwc, ((0, 0), (1, 1), (1, 1), (0, 0)))
    x_pad = x_pad.astype(jnp.bfloat16)                                # MXU operand

    # Fold BN (inference) scale into the conv weights in f32, then cast bf16.
    scale = gamma / jnp.sqrt(run_var + eps)                           # (C_out,)
    # (C_out, C_in, 3, 3) -> (ky, kx, C_in, C_out) -> (9, C_in, C_out); tap
    # index ky*3+kx matches the kernel's dy*3+dx ordering.
    w_tap = jnp.transpose(w_oihw, (2, 3, 1, 0)).reshape(9, C_in, C_out)
    w_folded = (w_tap * scale[None, None, :]).astype(jnp.bfloat16)
    bias = (scale * (conv_b - run_mean) + beta).reshape(1, C_out)     # f32

    out_nhwc = pl.pallas_call(
        _single_conv_kernel,
        out_shape=jax.ShapeDtypeStruct((N, H, W, C_out), jnp.float32),
        grid_spec=pltpu.PrefetchScalarGridSpec(
            num_scalar_prefetch=0,
            grid=(N, H // TH),
            in_specs=[
                # Padded image: resident across the row tiles of one image
                # (index_map ignores t -> no re-DMA within an image).
                pl.BlockSpec((1, H + 2, W + 2, C_in), lambda n, t: (n, 0, 0, 0)),
                # Weights / bias: resident across the whole grid.
                pl.BlockSpec((9, C_in, C_out), lambda n, t: (0, 0, 0)),
                pl.BlockSpec((1, C_out), lambda n, t: (0, 0)),
            ],
            out_specs=pl.BlockSpec((1, TH, W, C_out), lambda n, t: (n, t, 0, 0)),
        ),
        compiler_params=pltpu.CompilerParams(
            dimension_semantics=("parallel", "parallel"),
            vmem_limit_bytes=48 * 1024 * 1024,   # <= v7x 64 MiB physical VMEM
        ),
    )(x_pad, w_folded, bias)

    return jnp.transpose(out_nhwc, (0, 3, 1, 2))                      # back to NCHW


def _reference(x_nchw, w_oihw, conv_b, gamma, beta, run_mean, run_var):
    eps = 1e-5
    y = jax.lax.conv_general_dilated(
        x_nchw, w_oihw, window_strides=(1, 1), padding=((1, 1), (1, 1)),
        dimension_numbers=("NCHW", "OIHW", "NCHW"))
    y = y + conv_b.reshape(1, -1, 1, 1)
    scale = gamma / jnp.sqrt(run_var + eps)
    y = scale.reshape(1, -1, 1, 1) * (y - run_mean.reshape(1, -1, 1, 1)) \
        + beta.reshape(1, -1, 1, 1)
    return jnp.maximum(y, 0.0)


if __name__ == "__main__":
    key = jax.random.PRNGKey(0)
    kx, kw, kb, kg, kbe, km, kv = jax.random.split(key, 7)

    N, C_in, C_out, H, W = 2, 4, 8, 16, 16

    x = jax.random.normal(kx, (N, C_in, H, W), dtype=jnp.float32)
    w = jax.random.normal(kw, (C_out, C_in, 3, 3), dtype=jnp.float32) * 0.1
    conv_b = jax.random.normal(kb, (C_out,), dtype=jnp.float32) * 0.1
    gamma = 1.0 + 0.1 * jax.random.normal(kg, (C_out,), dtype=jnp.float32)
    beta = 0.1 * jax.random.normal(kbe, (C_out,), dtype=jnp.float32)
    run_mean = 0.1 * jax.random.normal(km, (C_out,), dtype=jnp.float32)
    run_var = 1.0 + 0.1 * jax.random.uniform(kv, (C_out,), dtype=jnp.float32)

    out = single_conv_forward(x, w, conv_b, gamma, beta, run_mean, run_var)
    out = jax.block_until_ready(out)

    ref = _reference(x, w, conv_b, gamma, beta, run_mean, run_var)
    assert out.shape == (N, C_out, H, W)
    # Tolerance accounts for bf16 MXU operands (f32 accumulation); genuine
    # bugs produce O(1) errors.
    assert jnp.allclose(out, ref, atol=5e-2, rtol=5e-2), "mismatch vs reference"

    print("KERNEL_OK")
</pallas_src>

<mosaic_0001>
module attributes {stable_mosaic.version = 11 : i64} {
  func.func @_single_conv_kernel(%arg0: i32, %arg1: i32, %arg2: memref<1x18x18x4xbf16, #tpu.memory_space<vmem>>, %arg3: memref<9x4x8xbf16, #tpu.memory_space<vmem>>, %arg4: memref<1x8xf32, #tpu.memory_space<vmem>>, %arg5: memref<1x16x16x8xf32, #tpu.memory_space<vmem>>) attributes {dimension_semantics = [#tpu.dimension_semantics<parallel>, #tpu.dimension_semantics<parallel>], iteration_bounds = array<i64: 2, 1>, scalar_prefetch = 0 : i64, scratch_operands = 0 : i64, tpu.core_type = #tpu.core_type<tc>, window_params = [{transform_indices = @transform_0, window_bounds = array<i64: 1, 18, 18, 4>}, {pipeline_mode = #tpu.pipeline_mode<synchronous>, transform_indices = @transform_1, window_bounds = array<i64: 9, 4, 8>}, {pipeline_mode = #tpu.pipeline_mode<synchronous>, transform_indices = @transform_2, window_bounds = array<i64: 1, 8>}, {transform_indices = @transform_3, window_bounds = array<i64: 1, 16, 16, 8>}]} {
    %c16_i32 = arith.constant 16 : i32
    %0 = arith.muli %arg1, %c16_i32 : i32
    %cst = arith.constant 0.000000e+00 : f32
    %1 = vector.broadcast %cst : f32 to vector<256x8xf32>
    %c0_i32 = arith.constant 0 : i32
    %2 = arith.addi %0, %c0_i32 : i32
    %c0 = arith.constant 0 : index
    %3 = arith.index_cast %2 : i32 to index
    %c0_0 = arith.constant 0 : index
    %c0_1 = arith.constant 0 : index
    %4 = vector.load %arg2[%c0, %3, %c0_0, %c0_1] : memref<1x18x18x4xbf16, #tpu.memory_space<vmem>>, vector<1x16x18x4xbf16>
    %5 = vector.extract_strided_slice %4 {offsets = [0, 0, 0, 0], sizes = [1, 16, 16, 4], strides = [1, 1, 1, 1]} : vector<1x16x18x4xbf16> to vector<1x16x16x4xbf16>
    %6 = vector.shape_cast %5 : vector<1x16x16x4xbf16> to vector<256x4xbf16>
    %c0_2 = arith.constant 0 : index
    %c0_3 = arith.constant 0 : index
    %c0_4 = arith.constant 0 : index
    %7 = vector.load %arg3[%c0_2, %c0_3, %c0_4] : memref<9x4x8xbf16, #tpu.memory_space<vmem>>, vector<1x4x8xbf16>
    %8 = vector.shape_cast %7 : vector<1x4x8xbf16> to vector<4x8xbf16>
    %cst_5 = arith.constant dense<0.000000e+00> : vector<256x8xf32>
    %9 = tpu.matmul %6, %8, %cst_5 {dimension_numbers = #tpu.dot_dimension_numbers<[1], [0], [0], [1], [0, 0, 1, 1], [], []>} : vector<256x4xbf16>, vector<4x8xbf16>, vector<256x8xf32> -> vector<256x8xf32>
    %10 = arith.addf %1, %9 : vector<256x8xf32>
    %11 = vector.extract_strided_slice %4 {offsets = [0, 0, 1, 0], sizes = [1, 16, 16, 4], strides = [1, 1, 1, 1]} : vector<1x16x18x4xbf16> to vector<1x16x16x4xbf16>
    %12 = vector.shape_cast %11 : vector<1x16x16x4xbf16> to vector<256x4xbf16>
    %c1 = arith.constant 1 : index
    %c0_6 = arith.constant 0 : index
    %c0_7 = arith.constant 0 : index
    %13 = vector.load %arg3[%c1, %c0_6, %c0_7] : memref<9x4x8xbf16, #tpu.memory_space<vmem>>, vector<1x4x8xbf16>
    %14 = vector.shape_cast %13 : vector<1x4x8xbf16> to vector<4x8xbf16>
    %cst_8 = arith.constant dense<0.000000e+00> : vector<256x8xf32>
    %15 = tpu.matmul %12, %14, %cst_8 {dimension_numbers = #tpu.dot_dimension_numbers<[1], [0], [0], [1], [0, 0, 1, 1], [], []>} : vector<256x4xbf16>, vector<4x8xbf16>, vector<256x8xf32> -> vector<256x8xf32>
    %16 = arith.addf %10, %15 : vector<256x8xf32>
    %17 = vector.extract_strided_slice %4 {offsets = [0, 0, 2, 0], sizes = [1, 16, 16, 4], strides = [1, 1, 1, 1]} : vector<1x16x18x4xbf16> to vector<1x16x16x4xbf16>
    %18 = vector.shape_cast %17 : vector<1x16x16x4xbf16> to vector<256x4xbf16>
    %c2 = arith.constant 2 : index
    %c0_9 = arith.constant 0 : index
    %c0_10 = arith.constant 0 : index
    %19 = vector.load %arg3[%c2, %c0_9, %c0_10] : memref<9x4x8xbf16, #tpu.memory_space<vmem>>, vector<1x4x8xbf16>
    %20 = vector.shape_cast %19 : vector<1x4x8xbf16> to vector<4x8xbf16>
    %cst_11 = arith.constant dense<0.000000e+00> : vector<256x8xf32>
    %21 = tpu.matmul %18, %20, %cst_11 {dimension_numbers = #tpu.dot_dimension_numbers<[1], [0], [0], [1], [0, 0, 1, 1], [], []>} : vector<256x4xbf16>, vector<4x8xbf16>, vector<256x8xf32> -> vector<256x8xf32>
    %22 = arith.addf %16, %21 : vector<256x8xf32>
    %c1_i32 = arith.constant 1 : i32
    %23 = arith.addi %0, %c1_i32 : i32
    %c0_12 = arith.constant 0 : index
    %24 = arith.index_cast %23 : i32 to index
    %c0_13 = arith.constant 0 : index
    %c0_14 = arith.constant 0 : index
    %25 = vector.load %arg2[%c0_12, %24, %c0_13, %c0_14] : memref<1x18x18x4xbf16, #tpu.memory_space<vmem>>, vector<1x16x18x4xbf16>
    %26 = vector.extract_strided_slice %25 {offsets = [0, 0, 0, 0], sizes = [1, 16, 16, 4], strides = [1, 1, 1, 1]} : vector<1x16x18x4xbf16> to vector<1x16x16x4xbf16>
    %27 = vector.shape_cast %26 : vector<1x16x16x4xbf16> to vector<256x4xbf16>
    %c3 = arith.constant 3 : index
    %c0_15 = arith.constant 0 : index
    %c0_16 = arith.constant 0 : index
    %28 = vector.load %arg3[%c3, %c0_15, %c0_16] : memref<9x4x8xbf16, #tpu.memory_space<vmem>>, vector<1x4x8xbf16>
    %29 = vector.shape_cast %28 : vector<1x4x8xbf16> to vector<4x8xbf16>
    %cst_17 = arith.constant dense<0.000000e+00> : vector<256x8xf32>
    %30 = tpu.matmul %27, %29, %cst_17 {dimension_numbers = #tpu.dot_dimension_numbers<[1], [0], [0], [1], [0, 0, 1, 1], [], []>} : vector<256x4xbf16>, vector<4x8xbf16>, vector<256x8xf32> -> vector<256x8xf32>
    %31 = arith.addf %22, %30 : vector<256x8xf32>
    %32 = vector.extract_strided_slice %25 {offsets = [0, 0, 1, 0], sizes = [1, 16, 16, 4], strides = [1, 1, 1, 1]} : vector<1x16x18x4xbf16> to vector<1x16x16x4xbf16>
    %33 = vector.shape_cast %32 : vector<1x16x16x4xbf16> to vector<256x4xbf16>
    %c4 = arith.constant 4 : index
    %c0_18 = arith.constant 0 : index
    %c0_19 = arith.constant 0 : index
    %34 = vector.load %arg3[%c4, %c0_18, %c0_19] : memref<9x4x8xbf16, #tpu.memory_space<vmem>>, vector<1x4x8xbf16>
    %35 = vector.shape_cast %34 : vector<1x4x8xbf16> to vector<4x8xbf16>
    %cst_20 = arith.constant dense<0.000000e+00> : vector<256x8xf32>
    %36 = tpu.matmul %33, %35, %cst_20 {dimension_numbers = #tpu.dot_dimension_numbers<[1], [0], [0], [1], [0, 0, 1, 1], [], []>} : vector<256x4xbf16>, vector<4x8xbf16>, vector<256x8xf32> -> vector<256x8xf32>
    %37 = arith.addf %31, %36 : vector<256x8xf32>
    %38 = vector.extract_strided_slice %25 {offsets = [0, 0, 2, 0], sizes = [1, 16, 16, 4], strides = [1, 1, 1, 1]} : vector<1x16x18x4xbf16> to vector<1x16x16x4xbf16>
    %39 = vector.shape_cast %38 : vector<1x16x16x4xbf16> to vector<256x4xbf16>
    %c5 = arith.constant 5 : index
    %c0_21 = arith.constant 0 : index
    %c0_22 = arith.constant 0 : index
    %40 = vector.load %arg3[%c5, %c0_21, %c0_22] : memref<9x4x8xbf16, #tpu.memory_space<vmem>>, vector<1x4x8xbf16>
    %41 = vector.shape_cast %40 : vector<1x4x8xbf16> to vector<4x8xbf16>
    %cst_23 = arith.constant dense<0.000000e+00> : vector<256x8xf32>
    %42 = tpu.matmul %39, %41, %cst_23 {dimension_numbers = #tpu.dot_dimension_numbers<[1], [0], [0], [1], [0, 0, 1, 1], [], []>} : vector<256x4xbf16>, vector<4x8xbf16>, vector<256x8xf32> -> vector<256x8xf32>
    %43 = arith.addf %37, %42 : vector<256x8xf32>
    %c2_i32 = arith.constant 2 : i32
    %44 = arith.addi %0, %c2_i32 : i32
    %c0_24 = arith.constant 0 : index
    %45 = arith.index_cast %44 : i32 to index
    %c0_25 = arith.constant 0 : index
    %c0_26 = arith.constant 0 : index
    %46 = vector.load %arg2[%c0_24, %45, %c0_25, %c0_26] : memref<1x18x18x4xbf16, #tpu.memory_space<vmem>>, vector<1x16x18x4xbf16>
    %47 = vector.extract_strided_slice %46 {offsets = [0, 0, 0, 0], sizes = [1, 16, 16, 4], strides = [1, 1, 1, 1]} : vector<1x16x18x4xbf16> to vector<1x16x16x4xbf16>
    %48 = vector.shape_cast %47 : vector<1x16x16x4xbf16> to vector<256x4xbf16>
    %c6 = arith.constant 6 : index
    %c0_27 = arith.constant 0 : index
    %c0_28 = arith.constant 0 : index
    %49 = vector.load %arg3[%c6, %c0_27, %c0_28] : memref<9x4x8xbf16, #tpu.memory_space<vmem>>, vector<1x4x8xbf16>
    %50 = vector.shape_cast %49 : vector<1x4x8xbf16> to vector<4x8xbf16>
    %cst_29 = arith.constant dense<0.000000e+00> : vector<256x8xf32>
    %51 = tpu.matmul %48, %50, %cst_29 {dimension_numbers = #tpu.dot_dimension_numbers<[1], [0], [0], [1], [0, 0, 1, 1], [], []>} : vector<256x4xbf16>, vector<4x8xbf16>, vector<256x8xf32> -> vector<256x8xf32>
    %52 = arith.addf %43, %51 : vector<256x8xf32>
    %53 = vector.extract_strided_slice %46 {offsets = [0, 0, 1, 0], sizes = [1, 16, 16, 4], strides = [1, 1, 1, 1]} : vector<1x16x18x4xbf16> to vector<1x16x16x4xbf16>
    %54 = vector.shape_cast %53 : vector<1x16x16x4xbf16> to vector<256x4xbf16>
    %c7 = arith.constant 7 : index
    %c0_30 = arith.constant 0 : index
    %c0_31 = arith.constant 0 : index
    %55 = vector.load %arg3[%c7, %c0_30, %c0_31] : memref<9x4x8xbf16, #tpu.memory_space<vmem>>, vector<1x4x8xbf16>
    %56 = vector.shape_cast %55 : vector<1x4x8xbf16> to vector<4x8xbf16>
    %cst_32 = arith.constant dense<0.000000e+00> : vector<256x8xf32>
    %57 = tpu.matmul %54, %56, %cst_32 {dimension_numbers = #tpu.dot_dimension_numbers<[1], [0], [0], [1], [0, 0, 1, 1], [], []>} : vector<256x4xbf16>, vector<4x8xbf16>, vector<256x8xf32> -> vector<256x8xf32>
    %58 = arith.addf %52, %57 : vector<256x8xf32>
    %59 = vector.extract_strided_slice %46 {offsets = [0, 0, 2, 0], sizes = [1, 16, 16, 4], strides = [1, 1, 1, 1]} : vector<1x16x18x4xbf16> to vector<1x16x16x4xbf16>
    %60 = vector.shape_cast %59 : vector<1x16x16x4xbf16> to vector<256x4xbf16>
    %c8 = arith.constant 8 : index
    %c0_33 = arith.constant 0 : index
    %c0_34 = arith.constant 0 : index
    %61 = vector.load %arg3[%c8, %c0_33, %c0_34] : memref<9x4x8xbf16, #tpu.memory_space<vmem>>, vector<1x4x8xbf16>
    %62 = vector.shape_cast %61 : vector<1x4x8xbf16> to vector<4x8xbf16>
    %cst_35 = arith.constant dense<0.000000e+00> : vector<256x8xf32>
    %63 = tpu.matmul %60, %62, %cst_35 {dimension_numbers = #tpu.dot_dimension_numbers<[1], [0], [0], [1], [0, 0, 1, 1], [], []>} : vector<256x4xbf16>, vector<4x8xbf16>, vector<256x8xf32> -> vector<256x8xf32>
    %64 = arith.addf %58, %63 : vector<256x8xf32>
    %c0_36 = arith.constant 0 : index
    %c0_37 = arith.constant 0 : index
    %65 = vector.load %arg4[%c0_36, %c0_37] : memref<1x8xf32, #tpu.memory_space<vmem>>, vector<1x8xf32>
    %66 = vector.broadcast %65 : vector<1x8xf32> to vector<256x8xf32>
    %67 = arith.addf %64, %66 : vector<256x8xf32>
    %cst_38 = arith.constant 0.000000e+00 : f32
    %68 = vector.broadcast %cst_38 : f32 to vector<256x8xf32>
    %69 = arith.maximumf %67, %68 : vector<256x8xf32>
    %70 = vector.shape_cast %69 : vector<256x8xf32> to vector<1x16x16x8xf32>
    %c0_39 = arith.constant 0 : index
    %c0_40 = arith.constant 0 : index
    %c0_41 = arith.constant 0 : index
    %c0_42 = arith.constant 0 : index
    %71 = vector.load %arg5[%c0_39, %c0_40, %c0_41, %c0_42] : memref<1x16x16x8xf32, #tpu.memory_space<vmem>>, vector<1x16x16x8xf32>
    tpu.vector_store %arg5[%c0_39, %c0_40, %c0_41, %c0_42], %70 {strides = array<i32>} : memref<1x16x16x8xf32, #tpu.memory_space<vmem>>, vector<1x16x16x8xf32>,
    return
  }
  func.func @transform_0(%arg0: i32, %arg1: i32) -> (i32, i32, i32, i32) {
    %c0_i32 = arith.constant 0 : i32
    %c0_i32_0 = arith.constant 0 : i32
    %c0_i32_1 = arith.constant 0 : i32
    %c0_i32_2 = arith.constant 0 : i32
    return %arg0, %c0_i32, %c0_i32_0, %c0_i32_1 : i32, i32, i32, i32
  }
  func.func @transform_1(%arg0: i32, %arg1: i32) -> (i32, i32, i32) {
    %c0_i32 = arith.constant 0 : i32
    %c0_i32_0 = arith.constant 0 : i32
    %c0_i32_1 = arith.constant 0 : i32
    %c0_i32_2 = arith.constant 0 : i32
    return %c0_i32, %c0_i32_0, %c0_i32_1 : i32, i32, i32
  }
  func.func @transform_2(%arg0: i32, %arg1: i32) -> (i32, i32) {
    %c0_i32 = arith.constant 0 : i32
    %c0_i32_0 = arith.constant 0 : i32
    %c0_i32_1 = arith.constant 0 : i32
    return %c0_i32, %c0_i32_0 : i32, i32
  }
  func.func @transform_3(%arg0: i32, %arg1: i32) -> (i32, i32, i32, i32) {
    %c0_i32 = arith.constant 0 : i32
    %c0_i32_0 = arith.constant 0 : i32
    %c0_i32_1 = arith.constant 0 : i32
    return %arg0, %arg1, %c0_i32, %c0_i32_0 : i32, i32, i32, i32
  }
}

</mosaic_0001>

<bundles_post_ra>
// kernel: single_conv_forward.1
= control target key start
LH: loop header
LB: loop body
LE: loop exit
PB: predicated region body
PF: predicated region fallthrough
CT: control target
= control target key end

     0   :  { %s4820_s12 = smov 0   ;;  %s4822_s13 = smov 0   ;;  %s6341_s0 = inlined_call_operand.vmem [shape: bf16[2,18,18,4], index: 0, kind: input, shape index: {}]   ;;  %s6342_s1 = inlined_call_operand.vmem [shape: bf16[9,4,8], index: 1, kind: input, shape index: {}]   ;;  %s6343_s2 = inlined_call_operand.vmem [shape: f32[1,8], index: 2, kind: input, shape index: {}]   ;;  %s6344_s3 = inlined_call_operand.vmem [shape: f32[2,16,16,8], index: 3, kind: output, shape index: {}]  }
   0x1   :  { %s4824_s14 = smov 0  }
   0x2 LB: > { %s25_s15 = sadd.s32 1, %s4794_s13  ;;  %p4128_p0 = scmp.ge.s32.totalorder %s4798_s14, 1  ;;  %s4798_s14 = sphi %s4824_s14, %s13_s14   ;;  %s4794_s13 = sphi %s4822_s13, %s6356_s13   ;;  %s4790_s12 = sphi %s4820_s12, %s6355_s12  }
   0x3   : > { %p27_p1 = scmp.ge.s32.totalorder %s25_s15, 2  ;;  %p151_p2 = scmp.lt.s32.totalorder %s4798_s14, 3 }
   0x5   : > { %s6358_s15 = smov (%p27_p1, %s25_s15), 0  ;;  %p152_p3 = pnand %p4128_p0, %p151_p2 }
   0x7   : > { %155 = sbr.rel (%p152_p3) target bundleno = 759 (0x2f7), region = 32 }
   0xc   : > { %v4132_v0 = vld [vmem:[%s6342_s1 + $0x2] sm:$0x3]  ;;  %vm736_vm0 = vcmask 1041408   ;;  %p180_p4 = scmp.lt.s32.totalorder %s4790_s12, 1  ;;  %v4245_v2 = vld [vmem:[%s6342_s1 + $0x4] sm:$0x3] }
   0xd   : > { %v738_v1 = vsel %vm736_vm0, %v4132_v0, 0  ;;  %v1279_v3 = vsel %vm736_vm0, %v4245_v2, 0  ;;  %v4310_v4 = vld [vmem:[%s6342_s1 + $0x6] sm:$0x3]  ;;  %v249_v5 = vld [vmem:[%s6342_s1] sm:$0x3] }
   0xe   : > { %4671 = vmatpush.bf16.msra.mxu1 %v738_v1  ;;  %4672 = vmatpush.bf16.msra.mxu2 %v738_v1  ;;  %s6360_s12 = smov (!%p180_p4, %s4790_s12), 1  ;;  %v4391_v6 = vld [vmem:[%s6342_s1 + $0x8] sm:$0x3]  ;;  %v1585_v7 = vsel %vm736_vm0, %v4310_v4, 0  ;;  %v958_v8 = vsel %vm736_vm0, %v249_v5, 0  ;;  %vm687_vm4 = vcmask 31744  }
   0xf   : > { %4673 = vmatpush.bf16.msra.mxu3 %v738_v1  ;;  %747 = vmatpush.bf16.msra.mxu0 %v738_v1  ;;  %s4674_s26 = smul.u32 216, %s6360_s12  ;;  %v2191_v9 = vsel %vm736_vm0, %v4391_v6, 0  ;;  %vm250_vm1 = vsmask.f32 3328  ;;  %vm251_vm2 = vsmask.f32 7440 }
  0x10   : > { %vm4876_vm3 = vmor %vm250_vm1, %vm251_vm2  ;;  %vm1065_vm5 = vcmask 1042432   ;;  %vm1066_vm6 = vcmask 1046532   ;;  %s4622_s17 = sshll.u32 %s6360_s12, 8  ;;  %vm3994_vm8 = vcmask 64512  }
  0x11   : > { %s4864_s29 = scalar_lea.vmem %s6341_s0, %s4674_s26  ;;  %vm5078_vm7 = vmor %vm1065_vm5, %vm1066_vm6  ;;  %s5978_s19 = scalar_lea.vmem %s6344_s3, %s4622_s17 }
  0x12   : > { %1288 = vmatpush.bf16.msrb.mxu2 %v1279_v3  ;;  %967 = vmatpush.bf16.msrb.mxu1 %v958_v8  ;;  %v213_v10 = vld [vmem:[%s4864_s29 + $0x30] sm:$0xf]  ;;  %v214_v11 = vld [vmem:[%s4864_s29 + $0x34] sm:$0xf]  ;;  %v215_v12 = vld [vmem:[%s4864_s29 + $0x38] sm:$0x1] }
  0x13   : > { %1594 = vmatpush.bf16.msrb.mxu3 %v1585_v7  ;;  %2200 = vmatpush.bf16.msrb.mxu0 %v2191_v9  ;;  %v350_v13 = vshrl.u32 %v213_v10, 16  ;;  %v353_v14 = vshll.u32 %v213_v10, 16  ;;  %v359_v15 = vshll.u32 %v214_v11, 16  ;;  %v363_v16 = vshrl.u32 %v214_v11, 16  ;;  %v225_v17 = vld [vmem:[%s4864_s29 + $0x60] sm:$0xf] }
  0x14   : > { %v369_v18 = vshll.u32 %v215_v12, 16  ;;  %v226_v19 = vld [vmem:[%s4864_s29 + $0x64] sm:$0xf]  ;;  %v227_v20 = vld [vmem:[%s4864_s29 + $0x68] sm:$0x1]  ;;  %v446_v21 = vshrl.u32 %v225_v17, 16 }
  0x15   : > { %v352_v22 = vrot.slane %v350_v13, 4  ;;  %v355_v23 = vrot.slane %v353_v14, 5  ;;  %v361_v24 = vrot.slane %v359_v15, 5  ;;  %v365_v25 = vrot.slane %v363_v16, 4  ;;  %v237_v26 = vld [vmem:[%s4864_s29 + $0x90] sm:$0xf] }
  0x16   : > { %v371_v27 = vrot.slane %v369_v18, 5  ;;  %v448_v28 = vrot.slane %v446_v21, 4  ;;  %v449_v29 = vshll.u32 %v225_v17, 16  ;;  %v455_v30 = vshll.u32 %v226_v19, 16  ;;  %v238_v35 = vld [vmem:[%s4864_s29 + $0x94] sm:$0xf] }
  0x17   : > { %v356_v31 = vor.u32 %v355_v23, %v352_v22  ;;  %v366_v32 = vor.u32 %v365_v25, %v361_v24  ;;  %v459_v33 = vshrl.u32 %v226_v19, 16  ;;  %v465_v34 = vshll.u32 %v227_v20, 16  ;;  %v239_v45 = vld [vmem:[%s4864_s29 + $0x98] sm:$0x1]  ;;  %v4886_v61 = vld [vmem:[%s4864_s29] sm:$0xf] }
  0x18   : > { %v451_v37 = vrot.slane %v449_v29, 5  ;;  %v457_v38 = vrot.slane %v455_v30, 5  ;;  %v542_v39 = vshrl.u32 %v237_v26, 16  ;;  %v545_v47 = vshll.u32 %v237_v26, 16  ;;  %v4891_v1 = vld [vmem:[%s4864_s29 + $0x4] sm:$0xf] }
  0x19   : > { %v357_v40 = vrot.slane %v356_v31, 4  ;;  %v367_v41 = vrot.slane %v366_v32, 4  ;;  %v461_v42 = vrot.slane %v459_v33, 4  ;;  %v467_v43 = vrot.slane %v465_v34, 5  ;;  %v4894_v2 = vld [vmem:[%s4864_s29 + $0x8] sm:$0x1] }
  0x1a   : > { %v452_v44 = vor.u32 %v451_v37, %v448_v28  ;;  %v544_v46 = vrot.slane %v542_v39, 4  ;;  %v551_v48 = vshll.u32 %v238_v35, 16  ;;  %v555_v52 = vshrl.u32 %v238_v35, 16  ;;  %v4907_v19 = vld [vmem:[%s4864_s29 + $0x3c] sm:$0xf] }
  0x1b   : > { %v362_v49 = vsel %vm4876_vm3, %v357_v40, %v361_v24  ;;  %v372_v50 = vsel %vm4876_vm3, %v367_v41, %v371_v27  ;;  %v462_v51 = vor.u32 %v461_v42, %v457_v38  ;;  %v547_v56 = vrot.slane %v545_v47, 5  ;;  %v4910_v20 = vld [vmem:[%s4864_s29 + $0x40] sm:$0xf]  ;;  %v4915_v25 = vld [vmem:[%s4864_s29 + $0x44] sm:$0x1] }
  0x1c   : > { %v647_v53 = vunpack.c.l.b16 %v362_v49  ;;  %v648_v54 = vunpack.c.l.b16 %v372_v50  ;;  %v453_v55 = vrot.slane %v452_v44, 4  ;;  %v553_v58 = vrot.slane %v551_v48, 5  ;;  %v228_v33 = vld [vmem:[%s4864_s29 + $0x6c] sm:$0xf]  ;;  %v230_v47 = vld [vmem:[%s4864_s29 + $0x74] sm:$0x1] }
  0x1d   : > { %v463_v57 = vrot.slane %v462_v51, 4  ;;  %v557_v59 = vrot.slane %v555_v52, 4  ;;  %v561_v60 = vshll.u32 %v239_v45, 16  ;;  %v548_v0 = vor.u32 %v547_v56, %v544_v46 }
  0x1e   : > { %v675_v62 = vpack.c.b16 %v648_v54, %v647_v53  ;;  %v458_v63 = vsel %vm4876_vm3, %v453_v55, %v457_v38  ;;  %v254_v9 = vshrl.u32 %v4886_v61, 16  ;;  %v257_v10 = vshll.u32 %v4886_v61, 16 }
  0x1f   : > { %v468_v3 = vsel %vm4876_vm3, %v463_v57, %v467_v43  ;;  %v655_v4 = vunpack.c.l.b16 %v458_v63  ;;  %v558_v5 = vor.u32 %v557_v59, %v553_v58  ;;  %v563_v6 = vrot.slane %v561_v60, 5  ;;  %v229_v43 = vld [vmem:[%s4864_s29 + $0x70] sm:$0xf] }
  0x20   : > { %4137 = vmatmul.msk.bf16.vlgmr.msra.gmra.mxu1 %vm687_vm4, %v675_v62  ;;  %v656_v7 = vunpack.c.l.b16 %v468_v3  ;;  %v549_v8 = vrot.slane %v548_v0, 4  ;;  %v263_v12 = vshll.u32 %v4891_v1, 16  ;;  %v267_v13 = vshrl.u32 %v4891_v1, 16  ;;  %v240_v62 = vld [vmem:[%s4864_s29 + $0x9c] sm:$0xf] }
  0x21   : > { %v559_v11 = vrot.slane %v558_v5, 4  ;;  %v273_v14 = vshll.u32 %v4894_v2, 16  ;;  %v256_v17 = vrot.slane %v254_v9, 4  ;;  %v259_v18 = vrot.slane %v257_v10, 5  ;;  %v242_v9 = vld [vmem:[%s4864_s29 + $0xa4] sm:$0x1] }
  0x22   : > { %v679_v15 = vpack.c.b16 %v656_v7, %v655_v4  ;;  %v554_v16 = vsel %vm4876_vm3, %v549_v8, %v553_v58  ;;  %v265_v23 = vrot.slane %v263_v12, 5  ;;  %v269_v24 = vrot.slane %v267_v13, 4  ;;  %v241_v4 = vld [vmem:[%s4864_s29 + $0xa0] sm:$0xf] }
  0x23   : > { %v564_v21 = vsel %vm4876_vm3, %v559_v11, %v563_v6  ;;  %v663_v22 = vunpack.c.l.b16 %v554_v16  ;;  %v260_v27 = vor.u32 %v259_v18, %v256_v17  ;;  %v275_v28 = vrot.slane %v273_v14, 5 }
  0x24   : > { %4141 = vmatmul.msk.bf16.vlgmr.msra.gmra.mxu2 %vm687_vm4, %v679_v15  ;;  %v664_v26 = vunpack.c.l.b16 %v564_v21  ;;  %v270_v29 = vor.u32 %v269_v24, %v265_v23  ;;  %v374_v30 = vshrl.u32 %v4907_v19, 16  ;;  %v377_v31 = vshll.u32 %v4907_v19, 16  ;;  %v4940_v24 = vld [vmem:[%s4864_s29 + $0xc] sm:$0xf] }
  0x25   : > { %v383_v32 = vshll.u32 %v4910_v20, 16  ;;  %v261_v35 = vrot.slane %v260_v27, 4  ;;  %v387_v37 = vshrl.u32 %v4910_v20, 16  ;;  %v393_v38 = vshll.u32 %v4915_v25, 16 }
  0x26   : > { %v683_v34 = vpack.c.b16 %v664_v26, %v663_v22  ;;  %v271_v39 = vrot.slane %v270_v29, 4  ;;  %v376_v40 = vrot.slane %v374_v30, 4  ;;  %v379_v41 = vrot.slane %v377_v31, 5  ;;  %v4945_v30 = vld [vmem:[%s4864_s29 + $0x10] sm:$0xf] }
  0x27   : > { %v385_v42 = vrot.slane %v383_v32, 5  ;;  %v266_v44 = vsel %vm4876_vm3, %v261_v35, %v265_v23  ;;  %v389_v45 = vrot.slane %v387_v37, 4  ;;  %v395_v46 = vrot.slane %v393_v38, 5 }
  0x28   : > { %4145 = vmatmul.msk.bf16.vlgmr.msra.gmra.mxu3 %vm687_vm4, %v683_v34  ;;  %v470_v48 = vshrl.u32 %v228_v33, 16  ;;  %v276_v49 = vsel %vm4876_vm3, %v271_v39, %v275_v28  ;;  %v639_v50 = vunpack.c.l.b16 %v266_v44  ;;  %v380_v51 = vor.u32 %v379_v41, %v376_v40  ;;  %v4948_v34 = vld [vmem:[%s4864_s29 + $0x14] sm:$0x1]  ;;  %v4957_v44 = vld [vmem:[%s4864_s29 + $0x48] sm:$0xf] }
  0x29   : > { %v473_v52 = vshll.u32 %v228_v33, 16  ;;  %v640_v53 = vunpack.c.l.b16 %v276_v49  ;;  %v390_v54 = vor.u32 %v389_v45, %v385_v42  ;;  %v479_v56 = vshll.u32 %v229_v43, 16  ;;  %v4962_v49 = vld [vmem:[%s4864_s29 + $0x4c] sm:$0xf] }
  0x2a   : > { %v472_v55 = vrot.slane %v470_v48, 4  ;;  %v381_v57 = vrot.slane %v380_v51, 4  ;;  %v483_v59 = vshrl.u32 %v229_v43, 16  ;;  %v489_v60 = vshll.u32 %v230_v47, 16 }
  0x2b   : > { %v475_v58 = vrot.slane %v473_v52, 5  ;;  %v671_v63 = vpack.c.b16 %v640_v53, %v639_v50  ;;  %v391_v0 = vrot.slane %v390_v54, 4  ;;  %v481_v3 = vrot.slane %v479_v56, 5 }
  0x2c   : > { %v386_v5 = vsel %vm4876_vm3, %v381_v57, %v385_v42  ;;  %v485_v7 = vrot.slane %v483_v59, 4  ;;  %v491_v8 = vrot.slane %v489_v60, 5  ;;  %v566_v12 = vshrl.u32 %v240_v62, 16 }
  0x2d   : > { %v476_v6 = vor.u32 %v475_v58, %v472_v55  ;;  %4133 = vmatmul.msk.bf16.vlgmr.msra.gmra.mxu0 %vm687_vm4, %v671_v63  ;;  %v396_v10 = vsel %vm4876_vm3, %v391_v0, %v395_v46  ;;  %v649_v11 = vunpack.c.l.b16 %v386_v5  ;;  %v569_v13 = vshll.u32 %v240_v62, 16  ;;  %v4967_v58 = vld [vmem:[%s4864_s29 + $0x50] sm:$0x1] }
  0x2e   : > { %v650_v14 = vunpack.c.l.b16 %v396_v10  ;;  %v486_v16 = vor.u32 %v485_v7, %v481_v3  ;;  %v575_v17 = vshll.u32 %v241_v4, 16  ;;  %v568_v18 = vrot.slane %v566_v12, 4 }
  0x2f   : > { %v477_v15 = vrot.slane %v476_v6, 4  ;;  %v571_v21 = vrot.slane %v569_v13, 5  ;;  %v579_v22 = vshrl.u32 %v241_v4, 16  ;;  %v585_v23 = vshll.u32 %v242_v9, 16  ;;  %v231_v6 = vld [vmem:[%s4864_s29 + $0x78] sm:$0xf] }
  0x30   : > { %v676_v26 = vpack.c.b16 %v650_v14, %v649_v11  ;;  %v487_v28 = vrot.slane %v486_v16, 4  ;;  %v577_v29 = vrot.slane %v575_v17, 5  ;;  %v278_v38 = vshrl.u32 %v4940_v24, 16  ;;  %v232_v11 = vld [vmem:[%s4864_s29 + $0x7c] sm:$0xf] }
  0x31   : > { %v482_v27 = vsel %vm4876_vm3, %v477_v15, %v481_v3  ;;  %v572_v32 = vor.u32 %v571_v21, %v568_v18  ;;  %v581_v33 = vrot.slane %v579_v22, 4  ;;  %v587_v37 = vrot.slane %v585_v23, 5  ;;  %v233_v21 = vld [vmem:[%s4864_s29 + $0x80] sm:$0x1] }
  0x32   : > { %v657_v31 = vunpack.c.l.b16 %v482_v27  ;;  %4138 = vmatmul.msk.bf16.gmra.mxu1 %vm687_vm4, %v676_v26  ;;  %v492_v35 = vsel %vm4876_vm3, %v487_v28, %v491_v8  ;;  %v281_v39 = vshll.u32 %v4940_v24, 16  ;;  %v287_v43 = vshll.u32 %v4945_v30, 16 }
  0x33   : > { %v658_v40 = vunpack.c.l.b16 %v492_v35  ;;  %v573_v41 = vrot.slane %v572_v32, 4  ;;  %v582_v42 = vor.u32 %v581_v33, %v577_v29  ;;  %v280_v45 = vrot.slane %v278_v38, 4 }
  0x34   : > { %v283_v46 = vrot.slane %v281_v39, 5  ;;  %v291_v47 = vshrl.u32 %v4945_v30, 16  ;;  %v297_v48 = vshll.u32 %v4948_v34, 16  ;;  %v289_v53 = vrot.slane %v287_v43, 5 }
  0x35   : > { %v680_v50 = vpack.c.b16 %v658_v40, %v657_v31  ;;  %v578_v51 = vsel %vm4876_vm3, %v573_v41, %v577_v29  ;;  %v583_v52 = vrot.slane %v582_v42, 4  ;;  %v398_v60 = vshrl.u32 %v4957_v44, 16  ;;  %v243_v40 = vld [vmem:[%s4864_s29 + $0xa8] sm:$0xf] }
  0x36   : > { %v665_v54 = vunpack.c.l.b16 %v578_v51  ;;  %v284_v55 = vor.u32 %v283_v46, %v280_v45  ;;  %v293_v56 = vrot.slane %v291_v47, 4  ;;  %v299_v57 = vrot.slane %v297_v48, 5  ;;  %v244_v45 = vld [vmem:[%s4864_s29 + $0xac] sm:$0xf]  ;;  %v245_v46 = vld [vmem:[%s4864_s29 + $0xb0] sm:$0x1] }
  0x37   : > { %4142 = vmatmul.msk.bf16.gmra.mxu2 %vm687_vm4, %v680_v50  ;;  %v588_v59 = vsel %vm4876_vm3, %v583_v52, %v587_v37  ;;  %v401_v62 = vshll.u32 %v4957_v44, 16  ;;  %v407_v63 = vshll.u32 %v4962_v49, 16  ;;  %v411_v5 = vshrl.u32 %v4962_v49, 16 }
  0x38   : > { %v666_v0 = vunpack.c.l.b16 %v588_v59  ;;  %v285_v3 = vrot.slane %v284_v55, 4  ;;  %v294_v4 = vor.u32 %v293_v56, %v289_v53  ;;  %v400_v7 = vrot.slane %v398_v60, 4 }
  0x39   : > { %v403_v8 = vrot.slane %v401_v62, 5  ;;  %v409_v9 = vrot.slane %v407_v63, 5  ;;  %v417_v10 = vshll.u32 %v4967_v58, 16  ;;  %v413_v15 = vrot.slane %v411_v5, 4 }
  0x3a   : > { %v684_v12 = vpack.c.b16 %v666_v0, %v665_v54  ;;  %v290_v13 = vsel %vm4876_vm3, %v285_v3, %v289_v53  ;;  %v295_v14 = vrot.slane %v294_v4, 4  ;;  %v494_v22 = vshrl.u32 %v231_v6, 16  ;;  %v4994_v4 = vld [vmem:[%s4864_s29 + $0x18] sm:$0xf] }
  0x3b   : > { %v641_v16 = vunpack.c.l.b16 %v290_v13  ;;  %v404_v17 = vor.u32 %v403_v8, %v400_v7  ;;  %v419_v18 = vrot.slane %v417_v10, 5  ;;  %v414_v26 = vor.u32 %v413_v15, %v409_v9  ;;  %v4999_v8 = vld [vmem:[%s4864_s29 + $0x1c] sm:$0xf] }
  0x3c   : > { %4146 = vmatmul.msk.bf16.gmra.mxu3 %vm687_vm4, %v684_v12  ;;  %v300_v23 = vsel %vm4876_vm3, %v295_v14, %v299_v57  ;;  %v497_v27 = vshll.u32 %v231_v6, 16  ;;  %v503_v28 = vshll.u32 %v232_v11, 16  ;;  %v496_v32 = vrot.slane %v494_v22, 4 }
  0x3d   : > { %v642_v29 = vunpack.c.l.b16 %v300_v23  ;;  %v405_v31 = vrot.slane %v404_v17, 4  ;;  %v507_v33 = vshrl.u32 %v232_v11, 16  ;;  %v415_v35 = vrot.slane %v414_v26, 4  ;;  %v5013_v26 = vld [vmem:[%s4864_s29 + $0x54] sm:$0xf] }
  0x3e   : > { %v499_v37 = vrot.slane %v497_v27, 5  ;;  %v505_v38 = vrot.slane %v503_v28, 5  ;;  %v513_v39 = vshll.u32 %v233_v21, 16  ;;  %v590_v54 = vshrl.u32 %v243_v40, 16 }
  0x3f   : > { %v672_v41 = vpack.c.b16 %v642_v29, %v641_v16  ;;  %v410_v42 = vsel %vm4876_vm3, %v405_v31, %v409_v9  ;;  %v509_v43 = vrot.slane %v507_v33, 4  ;;  %v420_v47 = vsel %vm4876_vm3, %v415_v35, %v419_v18  ;;  %v5002_v9 = vld [vmem:[%s4864_s29 + $0x20] sm:$0x1] }
  0x40   : > { %v651_v48 = vunpack.c.l.b16 %v410_v42  ;;  %v500_v50 = vor.u32 %v499_v37, %v496_v32  ;;  %v515_v51 = vrot.slane %v513_v39, 5  ;;  %v652_v52 = vunpack.c.l.b16 %v420_v47  ;;  %v5016_v32 = vld [vmem:[%s4864_s29 + $0x58] sm:$0xf]  ;;  %v5021_v39 = vld [vmem:[%s4864_s29 + $0x5c] sm:$0x1] }
  0x41   : > { %4134 = vmatmul.msk.bf16.gmra.mxu0 %vm687_vm4, %v672_v41  ;;  %v510_v53 = vor.u32 %v509_v43, %v505_v38  ;;  %v593_v55 = vshll.u32 %v243_v40, 16  ;;  %v599_v57 = vshll.u32 %v244_v45, 16  ;;  %v603_v59 = vshrl.u32 %v244_v45, 16 }
  0x42   : > { %v501_v56 = vrot.slane %v500_v50, 4  ;;  %v609_v60 = vshll.u32 %v245_v46, 16  ;;  %v677_v62 = vpack.c.b16 %v652_v52, %v651_v48  ;;  %v592_v0 = vrot.slane %v590_v54, 4  ;;  %v234_v50 = vld [vmem:[%s4864_s29 + $0x84] sm:$0xf] }
  0x43   : > { %v511_v63 = vrot.slane %v510_v53, 4  ;;  %v595_v3 = vrot.slane %v593_v55, 5  ;;  %v601_v6 = vrot.slane %v599_v57, 5  ;;  %v605_v7 = vrot.slane %v603_v59, 4 }
  0x44   : > { %v506_v5 = vsel %vm4876_vm3, %v501_v56, %v505_v38  ;;  %4139 = vmatmul.msk.bf16.gmra.mxu1 %vm687_vm4, %v677_v62  ;;  %v611_v13 = vrot.slane %v609_v60, 5  ;;  %v302_v16 = vshrl.u32 %v4994_v4, 16  ;;  %v305_v17 = vshll.u32 %v4994_v4, 16  ;;  %v235_v60 = vld [vmem:[%s4864_s29 + $0x88] sm:$0xf] }
  0x45   : > { %v516_v10 = vsel %vm4876_vm3, %v511_v63, %v515_v51  ;;  %v659_v11 = vunpack.c.l.b16 %v506_v5  ;;  %v596_v12 = vor.u32 %v595_v3, %v592_v0  ;;  %v606_v15 = vor.u32 %v605_v7, %v601_v6  ;;  %v236_v3 = vld [vmem:[%s4864_s29 + $0x8c] sm:$0x1] }
  0x46   : > { %v660_v14 = vunpack.c.l.b16 %v516_v10  ;;  %v311_v21 = vshll.u32 %v4999_v8, 16  ;;  %v315_v22 = vshrl.u32 %v4999_v8, 16  ;;  %v321_v23 = vshll.u32 %v5002_v9, 16 }
  0x47   : > { %v597_v18 = vrot.slane %v596_v12, 4  ;;  %v607_v28 = vrot.slane %v606_v15, 4  ;;  %v304_v29 = vrot.slane %v302_v16, 4  ;;  %v307_v31 = vrot.slane %v305_v17, 5 }
  0x48   : > { %v681_v27 = vpack.c.b16 %v660_v14, %v659_v11  ;;  %v313_v35 = vrot.slane %v311_v21, 5  ;;  %v317_v37 = vrot.slane %v315_v22, 4  ;;  %v323_v38 = vrot.slane %v321_v23, 5  ;;  %v246_v22 = vld [vmem:[%s4864_s29 + $0xb4] sm:$0xf] }
  0x49   : > { %v602_v33 = vsel %vm4876_vm3, %v597_v18, %v601_v6  ;;  %v612_v40 = vsel %vm4876_vm3, %v607_v28, %v611_v13  ;;  %v308_v42 = vor.u32 %v307_v31, %v304_v29  ;;  %v422_v43 = vshrl.u32 %v5013_v26, 16  ;;  %v247_v29 = vld [vmem:[%s4864_s29 + $0xb8] sm:$0xf] }
  0x4a   : > { %4143 = vmatmul.msk.bf16.gmra.mxu2 %vm687_vm4, %v681_v27  ;;  %v667_v41 = vunpack.c.l.b16 %v602_v33  ;;  %v668_v45 = vunpack.c.l.b16 %v612_v40  ;;  %v318_v46 = vor.u32 %v317_v37, %v313_v35  ;;  %v425_v47 = vshll.u32 %v5013_v26, 16 }
  0x4b   : > { %v431_v48 = vshll.u32 %v5016_v32, 16  ;;  %v309_v51 = vrot.slane %v308_v42, 4  ;;  %v424_v52 = vrot.slane %v422_v43, 4  ;;  %v435_v53 = vshrl.u32 %v5016_v32, 16 }
  0x4c   : > { %v441_v54 = vshll.u32 %v5021_v39, 16  ;;  %v685_v55 = vpack.c.b16 %v668_v45, %v667_v41  ;;  %v319_v56 = vrot.slane %v318_v46, 4  ;;  %v427_v57 = vrot.slane %v425_v47, 5 }
  0x4d   : > { %v433_v59 = vrot.slane %v431_v48, 5  ;;  %v314_v62 = vsel %vm4876_vm3, %v309_v51, %v313_v35  ;;  %v437_v63 = vrot.slane %v435_v53, 4  ;;  %v518_v5 = vshrl.u32 %v234_v50, 16 }
  0x4e   : > { %v443_v0 = vrot.slane %v441_v54, 5  ;;  %4147 = vmatmul.msk.bf16.gmra.mxu3 %vm687_vm4, %v685_v55  ;;  %v324_v6 = vsel %vm4876_vm3, %v319_v56, %v323_v38  ;;  %v643_v7 = vunpack.c.l.b16 %v314_v62  ;;  %v428_v10 = vor.u32 %v427_v57, %v424_v52  ;;  %v248_v38 = vld [vmem:[%s4864_s29 + $0xbc] sm:$0x1]  ;;  %v5048_v54 = vld [vmem:[%s4864_s29 + $0x24] sm:$0xf] }
  0x4f   : > { %v521_v11 = vshll.u32 %v234_v50, 16  ;;  %v644_v12 = vunpack.c.l.b16 %v324_v6  ;;  %v438_v13 = vor.u32 %v437_v63, %v433_v59  ;;  %v520_v14 = vrot.slane %v518_v5, 4  ;;  %v5057_v5 = vld [vmem:[%s4864_s29 + $0x2c] sm:$0x1] }
  0x50   : > { %v527_v15 = vshll.u32 %v235_v60, 16  ;;  %v429_v16 = vrot.slane %v428_v10, 4  ;;  %v531_v18 = vshrl.u32 %v235_v60, 16  ;;  %v537_v21 = vshll.u32 %v236_v3, 16  ;;  %v5053_v60 = vld [vmem:[%s4864_s29 + $0x28] sm:$0xf] }
  0x51   : > { %v523_v17 = vrot.slane %v521_v11, 5  ;;  %v673_v23 = vpack.c.b16 %v644_v12, %v643_v7  ;;  %v439_v27 = vrot.slane %v438_v13, 4  ;;  %v614_v42 = vshrl.u32 %v246_v22, 16 }
  0x52   : > { %v529_v28 = vrot.slane %v527_v15, 5  ;;  %v434_v31 = vsel %vm4876_vm3, %v429_v16, %v433_v59  ;;  %v533_v35 = vrot.slane %v531_v18, 4  ;;  %v539_v37 = vrot.slane %v537_v21, 5 }
  0x53   : > { %v524_v33 = vor.u32 %v523_v17, %v520_v14  ;;  %4135 = vmatmul.msk.bf16.gmra.mxu0 %vm687_vm4, %v673_v23  ;;  %v444_v40 = vsel %vm4876_vm3, %v439_v27, %v443_v0  ;;  %v653_v41 = vunpack.c.l.b16 %v434_v31  ;;  %v617_v43 = vshll.u32 %v246_v22, 16 }
  0x54   : > { %v654_v45 = vunpack.c.l.b16 %v444_v40  ;;  %v534_v47 = vor.u32 %v533_v35, %v529_v28  ;;  %v623_v48 = vshll.u32 %v247_v29, 16  ;;  %v616_v50 = vrot.slane %v614_v42, 4 }
  0x55   : > { %v525_v46 = vrot.slane %v524_v33, 4  ;;  %v619_v51 = vrot.slane %v617_v43, 5  ;;  %v627_v52 = vshrl.u32 %v247_v29, 16  ;;  %v633_v53 = vshll.u32 %v248_v38, 16  ;;  %v4263_v38 = vld [vmem:[%s4864_s29 + $0x10] sm:$0xf] }
  0x56   : > { %v678_v55 = vpack.c.b16 %v654_v45, %v653_v41  ;;  %v535_v57 = vrot.slane %v534_v47, 4  ;;  %v625_v59 = vrot.slane %v623_v48, 5  ;;  %v1073_v62 = vrot.slane %v4894_v2, 5 }
  0x57   : > { %v530_v56 = vsel %vm4876_vm3, %v525_v46, %v529_v28  ;;  %v620_v0 = vor.u32 %v619_v51, %v616_v50  ;;  %v629_v3 = vrot.slane %v627_v52, 4  ;;  %v635_v7 = vrot.slane %v633_v53, 5  ;;  %v4262_v28 = vld [vmem:[%s4864_s29 + $0xc] sm:$0xf] }
  0x58   : > { %v661_v63 = vunpack.c.l.b16 %v530_v56  ;;  %4140 = vmatmul.msk.bf16.gmra.mxu1 %vm687_vm4, %v678_v55  ;;  %v540_v6 = vsel %vm4876_vm3, %v535_v57, %v539_v37  ;;  %v326_v10 = vshrl.u32 %v5048_v54, 16  ;;  %v329_v11 = vshll.u32 %v5048_v54, 16  ;;  %v4489_v37 = vld [vmem:[%s6342_s1 + $0xc] sm:$0x3] }
  0x59   : > { %v662_v12 = vunpack.c.l.b16 %v540_v6  ;;  %v621_v13 = vrot.slane %v620_v0, 4  ;;  %v630_v14 = vor.u32 %v629_v3, %v625_v59  ;;  %v335_v2 = vshll.u32 %v5053_v60, 16  ;;  %v4264_v0 = vld [vmem:[%s4864_s29 + $0x14] sm:$0x1] }
  0x5a   : > { %v328_v15 = vrot.slane %v326_v10, 4  ;;  %v331_v16 = vrot.slane %v329_v11, 5  ;;  %v339_v17 = vshrl.u32 %v5053_v60, 16  ;;  %v345_v18 = vshll.u32 %v5057_v5, 16  ;;  %v4570_v11 = vld [vmem:[%s6342_s1 + $0xe] sm:$0x3] }
  0x5b   : > { %v682_v21 = vpack.c.b16 %v662_v12, %v661_v63  ;;  %v626_v22 = vsel %vm4876_vm3, %v621_v13, %v625_v59  ;;  %v631_v23 = vrot.slane %v630_v14, 4  ;;  %v337_v27 = vrot.slane %v335_v2, 5  ;;  %v4623_v13 = vld [vmem:[%s4864_s29] sm:$0xff] }
  0x5c   : > { %v669_v29 = vunpack.c.l.b16 %v626_v22  ;;  %v332_v31 = vor.u32 %v331_v16, %v328_v15  ;;  %v341_v33 = vrot.slane %v339_v17, 4  ;;  %v347_v35 = vrot.slane %v345_v18, 5  ;;  %v4424_v18 = vld [vmem:[%s6342_s1 + $0xa] sm:$0x3] }
  0x5d   : > { %4144 = vmatmul.msk.bf16.gmra.mxu2 %vm687_vm4, %v682_v21  ;;  %v636_v40 = vsel %vm4876_vm3, %v631_v23, %v635_v7  ;;  %v4229_v41 = vrot.slane %v4886_v61, 9  ;;  %v1070_v47 = vrot.slane %v4891_v1, 5  ;;  %v2847_v48 = vsel %vm736_vm0, %v4489_v37, 0  ;;  %v4603_v21 = vld [vmem:[%s6342_s1 + $0x10] sm:$0x3] }
  0x5e   : > { %v670_v42 = vunpack.c.l.b16 %v636_v40  ;;  %v333_v43 = vrot.slane %v332_v31, 4  ;;  %v342_v45 = vor.u32 %v341_v33, %v337_v27  ;;  %v1709_v50 = vshrl.u32 %v4262_v28, 16  ;;  %2856 = vmatpush.bf16.msra.mxu2 %v2847_v48 }
  0x5f   : > { %v1712_v51 = vshll.u32 %v4262_v28, 16  ;;  %v1718_v52 = vshll.u32 %v4263_v38, 16  ;;  %v1071_v56 = vsel %vm5078_vm7, %v4229_v41, %v1070_v47  ;;  %v1072_v59 = vrot.slane %v1070_v47, 4  ;;  %v4265_v41 = vld [vmem:[%s4864_s29 + $0x18] sm:$0xf] }
  0x60   : > { %v686_v53 = vpack.c.b16 %v670_v42, %v669_v29  ;;  %v338_v55 = vsel %vm4876_vm3, %v333_v43, %v337_v27  ;;  %v343_v61 = vrot.slane %v342_v45, 4  ;;  %v1182_v63 = vunpack.c.l.b16 %v1071_v56  ;;  %v4266_v45 = vld [vmem:[%s4864_s29 + $0x1c] sm:$0xf] }
  0x61   : > { %v645_v57 = vunpack.c.l.b16 %v338_v55  ;;  %v1711_v1 = vrot.slane %v1709_v50, 4  ;;  %v1714_v6 = vrot.slane %v1712_v51, 5  ;;  %v1720_v7 = vrot.slane %v1718_v52, 5  ;;  %v4639_v55 = vld [vmem:[%s4864_s29 + $0xc] sm:$0xff] }
  0x62   : > { %4148 = vmatmul.msk.bf16.gmra.mxu3 %vm687_vm4, %v686_v53  ;;  %v348_v3 = vsel %vm4876_vm3, %v343_v61, %v347_v35  ;;  %v1722_v10 = vshrl.u32 %v4263_v38, 16  ;;  %v1074_v14 = vsel %vm5078_vm7, %v1072_v59, %v1073_v62  ;;  %v1728_v17 = vshll.u32 %v4264_v0, 16 }
  0x63   : > { %v646_v12 = vunpack.c.l.b16 %v348_v3  ;;  %v1183_v2 = vunpack.c.l.b16 %v1074_v14  ;;  %v1715_v15 = vor.u32 %v1714_v6, %v1711_v1  ;;  %v3453_v23 = vsel %vm736_vm0, %v4570_v11, 0  ;;  %v4267_v3 = vld [vmem:[%s4864_s29 + $0x20] sm:$0x1] }
  0x64   : > { %v1724_v16 = vrot.slane %v1722_v10, 4  ;;  %3462 = vmatpush.bf16.msra.mxu3 %v3453_v23  ;;  %v2541_v62 = vsel %vm736_vm0, %v4424_v18, 0  ;;  %v3803_v31 = vsel %vm736_vm0, %v4603_v21, 0  ;;  %v4230_v33 = vrot.slane %v4940_v24, 9 }
  0x65   : > { %v674_v22 = vpack.c.b16 %v646_v12, %v645_v57  ;;  %v1214_v27 = vpack.c.b16 %v1183_v2, %v1182_v63  ;;  %v1716_v28 = vrot.slane %v1715_v15, 4  ;;  %v1077_v35 = vrot.slane %v4945_v30, 5  ;;  %3812 = vmatpush.bf16.msra.mxu0 %v3803_v31  ;;  %2550 = vmatpush.bf16.msra.mxu1 %v2541_v62  ;;  %v4268_v15 = vld [vmem:[%s4864_s29 + $0x24] sm:$0xf] }
  0x66   : > { %v1725_v29 = vor.u32 %v1724_v16, %v1720_v7  ;;  %v1730_v38 = vrot.slane %v1728_v17, 5  ;;  %v1080_v40 = vrot.slane %v4948_v34, 5  ;;  %v1733_v48 = vshrl.u32 %v4265_v41, 16  ;;  %v4269_v16 = vld [vmem:[%s4864_s29 + $0x28] sm:$0xf] }
  0x67   : > { %4136 = vmatmul.msk.bf16.gmra.mxu0 %vm687_vm4, %v674_v22  ;;  %v1078_v42 = vsel %vm5078_vm7, %v4230_v33, %v1077_v35  ;;  %v1079_v43 = vrot.slane %v1077_v35, 4  ;;  %v1721_v24 = vsel %vm4876_vm3, %v1716_v28, %v1720_v7  ;;  %v1736_v50 = vshll.u32 %v4265_v41, 16  ;;  %v4624_v7 = vld [vmem:[%s4864_s29 + $0xc] sm:$0xff] }
  0x68   : > { %4213 = vmatmul.msk.bf16.vlgmr.msrb.gmra.mxu1 %vm687_vm4, %v4623_v13  ;;  %v1726_v37 = vrot.slane %v1725_v29, 4  ;;  %v1184_v47 = vunpack.c.l.b16 %v1078_v42  ;;  %v1742_v52 = vshll.u32 %v4266_v45, 16  ;;  %v1746_v53 = vshrl.u32 %v4266_v45, 16  ;;  %v4640_v29 = vld [vmem:[%s4864_s29 + $0x18] sm:$0xff]  ;;  %v4270_v42 = vld [vmem:[%s4864_s29 + $0x2c] sm:$0x1] }
  0x69   : > { %v1081_v30 = vsel %vm5078_vm7, %v1079_v43, %v1080_v40  ;;  %v2094_v56 = vunpack.c.l.b16 %v1721_v24  ;;  %v1735_v59 = vrot.slane %v1733_v48, 4  ;;  %v1738_v63 = vrot.slane %v1736_v50, 5 }
  0x6a   : > { %v1731_v34 = vsel %vm4876_vm3, %v1726_v37, %v1730_v38  ;;  %v1185_v51 = vunpack.c.l.b16 %v1081_v30  ;;  %v1744_v0 = vrot.slane %v1742_v52, 5  ;;  %v1748_v1 = vrot.slane %v1746_v53, 4 }
  0x6b   : > { %v2095_v57 = vunpack.c.l.b16 %v1731_v34  ;;  %v1739_v10 = vor.u32 %v1738_v63, %v1735_v59  ;;  %v1752_v12 = vshll.u32 %v4267_v3, 16  ;;  %v1084_v17 = vrot.slane %v4999_v8, 5  ;;  %v4271_v34 = vld [vmem:[%s4864_s29 + $0x30] sm:$0xf] }
  0x6c   : > { %v1215_v61 = vpack.c.b16 %v1185_v51, %v1184_v47  ;;  %v1749_v11 = vor.u32 %v1748_v1, %v1744_v0  ;;  %v1757_v18 = vshrl.u32 %v4268_v15, 16  ;;  %v1760_v21 = vshll.u32 %v4268_v15, 16  ;;  %v4625_v47 = vld [vmem:[%s4864_s29 + $0x18] sm:$0xff]  ;;  %v4272_v51 = vld [vmem:[%s4864_s29 + $0x34] sm:$0xf] }
  0x6d   : > { %4246 = vmatmul.msk.bf16.vlgmr.msrb.gmra.mxu2 %vm687_vm4, %v1214_v27  ;;  %v2126_v6 = vpack.c.b16 %v2095_v57, %v2094_v56  ;;  %v1740_v13 = vrot.slane %v1739_v10, 4  ;;  %v1754_v2 = vrot.slane %v1752_v12, 5  ;;  %v1766_v27 = vshll.u32 %v4269_v16, 16 }
  0x6e   : > { %v1750_v14 = vrot.slane %v1749_v11, 4  ;;  %v1770_v28 = vshrl.u32 %v4269_v16, 16  ;;  %v4231_v62 = vrot.slane %v4994_v4, 9  ;;  %v1086_v31 = vrot.slane %v1084_v17, 4  ;;  %v4273_v16 = vld [vmem:[%s4864_s29 + $0x38] sm:$0x1] }
  0x6f   : > { %v1745_v22 = vsel %vm4876_vm3, %v1740_v13, %v1744_v0  ;;  %v1087_v8 = vrot.slane %v5002_v9, 5  ;;  %v1759_v37 = vrot.slane %v1757_v18, 4  ;;  %v1762_v38 = vrot.slane %v1760_v21, 5 }
  0x70   : > { %v1755_v23 = vsel %vm4876_vm3, %v1750_v14, %v1754_v2  ;;  %v2096_v33 = vunpack.c.l.b16 %v1745_v22  ;;  %v1768_v40 = vrot.slane %v1766_v27, 5  ;;  %v1772_v41 = vrot.slane %v1770_v28, 4 }
  0x71   : > { %v2097_v35 = vunpack.c.l.b16 %v1755_v23  ;;  %v1085_v43 = vsel %vm5078_vm7, %v4231_v62, %v1084_v17  ;;  %v1088_v4 = vsel %vm5078_vm7, %v1086_v31, %v1087_v8  ;;  %v1763_v9 = vor.u32 %v1762_v38, %v1759_v37  ;;  %v4626_v23 = vld [vmem:[%s4864_s29 + $0x24] sm:$0xff]  ;;  %v4274_v8 = vld [vmem:[%s4864_s29 + $0x3c] sm:$0xf] }
  0x72   : > { %4375 = vmatmul.msk.bf16.vlgmr.msrb.gmra.mxu3 %vm687_vm4, %v4639_v55  ;;  %v1773_v24 = vor.u32 %v1772_v41, %v1768_v40  ;;  %v1776_v30 = vshll.u32 %v4270_v42, 16  ;;  %v1186_v48 = vunpack.c.l.b16 %v1085_v43  ;;  %v1187_v50 = vunpack.c.l.b16 %v1088_v4 }
  0x73   : > { %v2127_v45 = vpack.c.b16 %v2097_v35, %v2096_v33  ;;  %v1764_v52 = vrot.slane %v1763_v9, 4  ;;  %v1091_v56 = vrot.slane %v5053_v60, 5  ;;  %v1781_v57 = vshrl.u32 %v4271_v34, 16  ;;  %v4641_v60 = vld [vmem:[%s4864_s29 + $0x24] sm:$0xff]  ;;  %v4275_v33 = vld [vmem:[%s4864_s29 + $0x40] sm:$0xf] }
  0x74   : > { %v1774_v53 = vrot.slane %v1773_v24, 4  ;;  %v1778_v55 = vrot.slane %v1776_v30, 5  ;;  %v1784_v59 = vshll.u32 %v4271_v34, 16  ;;  %v1790_v63 = vshll.u32 %v4272_v51, 16  ;;  %v4642_v24 = vld [vmem:[%s4864_s29 + $0x30] sm:$0xff] }
  0x75   : > { %v1794_v0 = vshrl.u32 %v4272_v51, 16  ;;  %v1769_v1 = vsel %vm4876_vm3, %v1764_v52, %v1768_v40  ;;  %v1094_v10 = vrot.slane %v5057_v5, 5  ;;  %v1783_v11 = vrot.slane %v1781_v57, 4  ;;  %v4700_v40 = vld [vmem:[%s4864_s29 + $0x34] sm:$0xf] }
  0x76   : > { %v1779_v3 = vsel %vm4876_vm3, %v1774_v53, %v1778_v55  ;;  %v1786_v12 = vrot.slane %v1784_v59, 5  ;;  %v1792_v13 = vrot.slane %v1790_v63, 5  ;;  %v2098_v2 = vunpack.c.l.b16 %v1769_v1  ;;  %v4702_v51 = vld [vmem:[%s4864_s29 + $0x38] sm:$0x1]  ;;  %v4276_v57 = vld [vmem:[%s4864_s29 + $0x44] sm:$0x1] }
  0x77   : > { %4392 = vmatmul.msk.bf16.vlgmr.msrb.gmra.mxu0 %vm687_vm4, %v2126_v6  ;;  %v4232_v6 = vrot.slane %v5048_v54, 9  ;;  %v1796_v14 = vrot.slane %v1794_v0, 4  ;;  %v2099_v15 = vunpack.c.l.b16 %v1779_v3  ;;  %v1800_v21 = vshll.u32 %v4273_v16, 16 }
  0x78   : > { %4214 = vmatmul.msk.bf16.gmra.mxu1 %vm687_vm4, %v4624_v7  ;;  %v1093_v7 = vrot.slane %v1091_v56, 4  ;;  %v1787_v5 = vor.u32 %v1786_v12, %v1783_v11  ;;  %v1098_v41 = vrot.slane %v4700_v40, 5  ;;  %v1805_v43 = vshrl.u32 %v4274_v8, 16 }
  0x79   : > { %v1092_v17 = vsel %vm5078_vm7, %v4232_v6, %v1091_v56  ;;  %v1797_v18 = vor.u32 %v1796_v14, %v1792_v13  ;;  %v2128_v22 = vpack.c.b16 %v2099_v15, %v2098_v2  ;;  %v1802_v31 = vrot.slane %v1800_v21, 5 }
  0x7a   : > { %v1095_v54 = vsel %vm5078_vm7, %v1093_v7, %v1094_v10  ;;  %v1188_v27 = vunpack.c.l.b16 %v1092_v17  ;;  %v1808_v4 = vshll.u32 %v4274_v8, 16  ;;  %v1100_v34 = vrot.slane %v1098_v41, 4  ;;  %v4627_v7 = vld [vmem:[%s4864_s29 + $0x30] sm:$0xff]  ;;  %v4277_v17 = vld [vmem:[%s4864_s29 + $0x48] sm:$0xf] }
  0x7b   : > { %v1189_v28 = vunpack.c.l.b16 %v1095_v54  ;;  %v1798_v62 = vrot.slane %v1797_v18, 4  ;;  %v1101_v52 = vrot.slane %v4702_v51, 5  ;;  %v1807_v53 = vrot.slane %v1805_v43, 4  ;;  %v4278_v54 = vld [vmem:[%s4864_s29 + $0x4c] sm:$0xf] }
  0x7c   : > { %v1810_v55 = vrot.slane %v1808_v4, 5  ;;  %v1824_v6 = vshll.u32 %v4276_v57, 16  ;;  %v1105_v18 = vrot.slane %v4910_v20, 5  ;;  %v4234_v8 = vrot.slane %v4907_v19, 9 }
  0x7d   : > { %4247 = vmatmul.msk.bf16.gmra.mxu2 %vm687_vm4, %v1215_v61  ;;  %v1216_v61 = vpack.c.b16 %v1187_v50, %v1186_v48  ;;  %v1217_v35 = vpack.c.b16 %v1189_v28, %v1188_v27  ;;  %v1803_v38 = vsel %vm4876_vm3, %v1798_v62, %v1802_v31  ;;  %v4701_v48 = vld [vmem:[%s4864_s29 + $0x30] sm:$0xf]  ;;  %v1102_v63 = vsel %vm5078_vm7, %v1100_v34, %v1101_v52  ;;  %v4643_v62 = vld [vmem:[%s4864_s29 + $0x3c] sm:$0xff] }
  0x7e   : > { %v2101_v30 = vunpack.c.l.b16 %v1803_v38  ;;  %v4233_v50 = vrot.slane %v4701_v48, 9  ;;  %v1811_v1 = vor.u32 %v1810_v55, %v1807_v53  ;;  %v1191_v11 = vunpack.c.l.b16 %v1102_v63  ;;  %v4280_v53 = vld [vmem:[%s4864_s29 + $0x54] sm:$0xf]  ;;  %v4281_v55 = vld [vmem:[%s4864_s29 + $0x58] sm:$0xf] }
  0x7f   : > { %v1826_v2 = vrot.slane %v1824_v6, 5  ;;  %v1832_v27 = vshll.u32 %v4277_v17, 16  ;;  %v1838_v28 = vshll.u32 %v4278_v54, 16  ;;  %v1108_v20 = vrot.slane %v4915_v25, 5 }
  0x80   : > { %v1099_v59 = vsel %vm5078_vm7, %v4233_v50, %v1098_v41  ;;  %v1106_v19 = vsel %vm5078_vm7, %v4234_v8, %v1105_v18  ;;  %v1862_v6 = vshll.u32 %v4281_v55, 16 }
  0x81   : > { %v1834_v41 = vrot.slane %v1832_v27, 5  ;;  %v1840_v43 = vrot.slane %v1838_v28, 5  ;;  %v1192_v51 = vunpack.c.l.b16 %v1106_v19 }
  0x82   : > { %4376 = vmatmul.msk.bf16.gmra.mxu3 %vm687_vm4, %v4640_v29  ;;  %v1788_v29 = vrot.slane %v1787_v5, 4 }
  0x84   : > { %v1793_v37 = vsel %vm4876_vm3, %v1788_v29, %v1792_v13  ;;  %v1812_v13 = vrot.slane %v1811_v1, 4  ;;  %v1842_v29 = vshrl.u32 %v4278_v54, 16  ;;  %v1853_v1 = vshrl.u32 %v4280_v53, 16  ;;  %v4644_v54 = vld [vmem:[%s4864_s29 + $0x48] sm:$0xff] }
  0x85   : > { %v2100_v9 = vunpack.c.l.b16 %v1793_v37 }
  0x86   : > { %v1844_v4 = vrot.slane %v1842_v29, 4  ;;  %v4282_v29 = vld [vmem:[%s4864_s29 + $0x5c] sm:$0x1] }
  0x87   : > { %4393 = vmatmul.msk.bf16.gmra.mxu0 %vm687_vm4, %v2127_v45  ;;  %v1814_v45 = vshll.u32 %v4275_v33, 16  ;;  %v2129_v0 = vpack.c.b16 %v2101_v30, %v2100_v9  ;;  %v4628_v30 = vld [vmem:[%s4864_s29 + $0x3c] sm:$0xff] }
  0x88   : > { %4215 = vmatmul.msk.bf16.gmra.mxu1 %vm687_vm4, %v4625_v47  ;;  %v1818_v47 = vshrl.u32 %v4275_v33, 16  ;;  %v1107_v33 = vrot.slane %v1105_v18, 4  ;;  %v1845_v50 = vor.u32 %v1844_v4, %v1840_v43 }
  0x8a   : > { %v1820_v56 = vrot.slane %v1818_v47, 4  ;;  %v1109_v47 = vsel %vm5078_vm7, %v1107_v33, %v1108_v20  ;;  %v1846_v57 = vrot.slane %v1845_v50, 4 }
  0x8b   : > { %v1193_v52 = vunpack.c.l.b16 %v1109_v47 }
  0x8d   : > { %4248 = vmatmul.msk.bf16.gmra.mxu2 %vm687_vm4, %v1216_v61  ;;  %v1816_v61 = vrot.slane %v1814_v45, 5  ;;  %v4279_v45 = vld [vmem:[%s4864_s29 + $0x50] sm:$0x1]  ;;  %v1219_v63 = vpack.c.b16 %v1193_v52, %v1192_v51  ;;  %v1119_v52 = vrot.slane %v5016_v32, 5  ;;  %v1122_v32 = vrot.slane %v5021_v39, 5 }
  0x8e   : > { %v1848_v34 = vshll.u32 %v4279_v45, 16 }
  0x8f   : > { %v1821_v3 = vor.u32 %v1820_v56, %v1816_v61  ;;  %v1817_v21 = vsel %vm4876_vm3, %v1812_v13, %v1816_v61 }
  0x91   : > { %v1822_v14 = vrot.slane %v1821_v3, 4  ;;  %v1856_v3 = vshll.u32 %v4280_v53, 16 }
  0x92   : > { %4377 = vmatmul.msk.bf16.gmra.mxu3 %vm687_vm4, %v4641_v60  ;;  %v1190_v60 = vunpack.c.l.b16 %v1099_v59  ;;  %v1850_v59 = vrot.slane %v1848_v34, 5 }
  0x94   : > { %v1218_v16 = vpack.c.b16 %v1191_v11, %v1190_v60  ;;  %v1866_v60 = vshrl.u32 %v4281_v55, 16  ;;  %v1851_v13 = vsel %vm4876_vm3, %v1846_v57, %v1850_v59 }
  0x95   : > { %v2105_v28 = vunpack.c.l.b16 %v1851_v13 }
  0x97   : > { %4394 = vmatmul.msk.bf16.gmra.mxu0 %vm687_vm4, %v2128_v22  ;;  %v1827_v22 = vsel %vm4876_vm3, %v1822_v14, %v1826_v2  ;;  %v1855_v2 = vrot.slane %v1853_v1, 4 }
  0x98   : > { %4216 = vmatmul.msk.bf16.gmra.mxu1 %vm687_vm4, %v4626_v23  ;;  %v1829_v23 = vshrl.u32 %v4277_v17, 16  ;;  %v2103_v37 = vunpack.c.l.b16 %v1827_v22  ;;  %v1864_v17 = vrot.slane %v1862_v6, 5  ;;  %v1115_v22 = vrot.slane %v4967_v58, 5 }
  0x9a   : > { %v1831_v40 = vrot.slane %v1829_v23, 4  ;;  %v1868_v23 = vrot.slane %v1866_v60, 4  ;;  %v1121_v60 = vrot.slane %v1119_v52, 4 }
  0x9c   : > { %v1835_v48 = vor.u32 %v1834_v41, %v1831_v40  ;;  %v1869_v58 = vor.u32 %v1868_v23, %v1864_v17  ;;  %v4629_v40 = vld [vmem:[%s4864_s29 + $0x48] sm:$0xff] }
  0x9d   : > { %v5176_v42 = vpop.f32.mrf.mxu1  ;;  %4249 = vmatmul.msk.bf16.gmra.mxu2 %vm687_vm4, %v1217_v35  ;;  %v2102_v35 = vunpack.c.l.b16 %v1817_v21 }
  0x9e   : > { %v1836_v56 = vrot.slane %v1835_v48, 4  ;;  %v1870_v19 = vrot.slane %v1869_v58, 4  ;;  %v4284_v48 = vld [vmem:[%s4864_s29 + $0x64] sm:$0xf] }
  0x9f   : > { %v2130_v25 = vpack.c.b16 %v2103_v37, %v2102_v35  ;;  %v1872_v35 = vshll.u32 %v4282_v29, 16  ;;  %v1886_v57 = vshll.u32 %v4284_v48, 16  ;;  %v1890_v59 = vshrl.u32 %v4284_v48, 16 }
  0xa0   : > { %v1841_v11 = vsel %vm4876_vm3, %v1836_v56, %v1840_v43 }
  0xa1   : > { %v2104_v27 = vunpack.c.l.b16 %v1841_v11  ;;  %v1874_v47 = vrot.slane %v1872_v35, 5 }
  0xa2   : > { %4378 = vmatmul.msk.bf16.gmra.mxu3 %vm687_vm4, %v4642_v24 }
  0xa3   : > { %v2131_v37 = vpack.c.b16 %v2105_v28, %v2104_v27  ;;  %v1875_v51 = vsel %vm4876_vm3, %v1870_v19, %v1874_v47  ;;  %v4630_v28 = vld [vmem:[%s4864_s29 + $0x54] sm:$0xff]  ;;  %v4703_v19 = vld [vmem:[%s4864_s29 + $0x64] sm:$0xf] }
  0xa4   : > { %v2107_v6 = vunpack.c.l.b16 %v1875_v51  ;;  %v1126_v47 = vrot.slane %v4703_v19, 5 }
  0xa5   : > { %v5189_v10 = vpop.f32.mrf.mxu1 }
  0xa7   : > { %v5191_v12 = vpop.f32.mrf.mxu2  ;;  %4395 = vmatmul.msk.bf16.gmra.mxu0 %vm687_vm4, %v2129_v0 }
  0xa8   : > { %4217 = vmatmul.msk.bf16.gmra.mxu1 %vm687_vm4, %v4627_v7  ;;  %v1112_v7 = vrot.slane %v4962_v49, 5  ;;  %v4235_v49 = vrot.slane %v4957_v44, 9 }
  0xaa   : > { %v5195_v15 = vpop.f32.mrf.mxu0  ;;  %v1114_v21 = vrot.slane %v1112_v7, 4  ;;  %v1113_v20 = vsel %vm5078_vm7, %v4235_v49, %v1112_v7  ;;  %v4236_v7 = vrot.slane %v5013_v26, 9  ;;  %v1123_v26 = vsel %vm5078_vm7, %v1121_v60, %v1122_v32 }
  0xab   : > { %v5199_v5 = vpop.f32.mrf.mxu3  ;;  %v1194_v41 = vunpack.c.l.b16 %v1113_v20  ;;  %v1197_v20 = vunpack.c.l.b16 %v1123_v26 }
  0xac   : > { %v1116_v44 = vsel %vm5078_vm7, %v1114_v21, %v1115_v22  ;;  %v1120_v21 = vsel %vm5078_vm7, %v4236_v7, %v1119_v52  ;;  %v1128_v7 = vrot.slane %v1126_v47, 4 }
  0xad   : > { %4250 = vmatmul.msk.bf16.gmra.mxu2 %vm687_vm4, %v1218_v16  ;;  %v1858_v16 = vrot.slane %v1856_v3, 5  ;;  %v1195_v43 = vunpack.c.l.b16 %v1116_v44  ;;  %v4645_v3 = vld [vmem:[%s4864_s29 + $0x54] sm:$0xff] }
  0xaf   : > { %v5208_v31 = vpop.f32.mrf.mxu1  ;;  %v5212_v38 = vpop.f32.mrf.mxu2  ;;  %v1859_v8 = vor.u32 %v1858_v16, %v1855_v2  ;;  %v1220_v50 = vpack.c.b16 %v1195_v43, %v1194_v41  ;;  %v1888_v2 = vrot.slane %v1886_v57, 5  ;;  %v1892_v16 = vrot.slane %v1890_v59, 4  ;;  %v4286_v41 = vld [vmem:[%s4864_s29 + $0x6c] sm:$0xf]  ;;  %v4287_v43 = vld [vmem:[%s4864_s29 + $0x70] sm:$0xf] }
  0xb0   : > { %v1904_v51 = vshll.u32 %v4286_v41, 16  ;;  %v1910_v52 = vshll.u32 %v4287_v43, 16  ;;  %v4704_v57 = vld [vmem:[%s4864_s29 + $0x68] sm:$0x1] }
  0xb1   : > { %v1860_v45 = vrot.slane %v1859_v8, 4  ;;  %v1893_v23 = vor.u32 %v1892_v16, %v1888_v2  ;;  %v1196_v8 = vunpack.c.l.b16 %v1120_v21  ;;  %v1129_v59 = vrot.slane %v4704_v57, 5  ;;  %v4288_v21 = vld [vmem:[%s4864_s29 + $0x74] sm:$0x1] }
  0xb2   : > { %4379 = vmatmul.msk.bf16.gmra.mxu3 %vm687_vm4, %v4643_v62  ;;  %v5220_v9 = vpop.f32.mrf.mxu0  ;;  %v1912_v16 = vrot.slane %v1910_v52, 5  ;;  %v4706_v52 = vld [vmem:[%s4864_s29 + $0x70] sm:$0xf] }
  0xb3   : > { %v5222_v24 = vpop.f32.mrf.mxu3  ;;  %v1865_v34 = vsel %vm4876_vm3, %v1860_v45, %v1864_v17  ;;  %v1894_v35 = vrot.slane %v1893_v23, 4 }
  0xb4   : > { %v2106_v1 = vunpack.c.l.b16 %v1865_v34  ;;  %v1901_v34 = vshrl.u32 %v4286_v41, 16 }
  0xb6   : > { %v2132_v22 = vpack.c.b16 %v2107_v6, %v2106_v1  ;;  %v4646_v1 = vld [vmem:[%s4864_s29 + $0x60] sm:$0xff] }
  0xb7   : > { %4396 = vmatmul.msk.bf16.gmra.mxu0 %vm687_vm4, %v2130_v25  ;;  %v5228_v61 = vpop.f32.mrf.mxu1 }
  0xb8   : > { %4218 = vmatmul.msk.bf16.gmra.mxu1 %vm687_vm4, %v4628_v30  ;;  %v4283_v30 = vld [vmem:[%s4864_s29 + $0x60] sm:$0xf] }
  0xb9   : > { %v1877_v55 = vshrl.u32 %v4283_v30, 16  ;;  %v1880_v56 = vshll.u32 %v4283_v30, 16 }
  0xba   : > { %v5231_v0 = vpop.f32.mrf.mxu2 }
  0xbb   : > { %v1879_v11 = vrot.slane %v1877_v55, 4  ;;  %v1882_v13 = vrot.slane %v1880_v56, 5  ;;  %v1914_v55 = vshrl.u32 %v4287_v43, 16 }
  0xbd   : > { %4251 = vmatmul.msk.bf16.gmra.mxu2 %vm687_vm4, %v1219_v63  ;;  %v1883_v39 = vor.u32 %v1882_v13, %v1879_v11  ;;  %v1903_v13 = vrot.slane %v1901_v34, 4 }
  0xbe   : > { %v5238_v14 = vpop.f32.mrf.mxu0 }
  0xbf   : > { %v5242_v18 = vpop.f32.mrf.mxu3  ;;  %v1884_v58 = vrot.slane %v1883_v39, 4 }
  0xc1   : > { %v5247_v62 = vpop.f32.mrf.mxu1  ;;  %v1889_v48 = vsel %vm4876_vm3, %v1884_v58, %v1888_v2  ;;  %v1906_v2 = vrot.slane %v1904_v51, 5  ;;  %v4290_v51 = vld [vmem:[%s4864_s29 + $0x7c] sm:$0xf] }
  0xc2   : > { %4380 = vmatmul.msk.bf16.gmra.mxu3 %vm687_vm4, %v4644_v54  ;;  %v5250_v33 = vpop.f32.mrf.mxu2  ;;  %v4285_v54 = vld [vmem:[%s4864_s29 + $0x68] sm:$0x1]  ;;  %v2108_v60 = vunpack.c.l.b16 %v1889_v48 }
  0xc3   : > { %v1896_v27 = vshll.u32 %v4285_v54, 16  ;;  %v1916_v54 = vrot.slane %v1914_v55, 4  ;;  %v1133_v55 = vrot.slane %v4706_v52, 5 }
  0xc6   : > { %v5257_v4 = vpop.f32.mrf.mxu0 }
  0xc7   : > { %4397 = vmatmul.msk.bf16.gmra.mxu0 %vm687_vm4, %v2131_v37  ;;  %v5260_v25 = vpop.f32.mrf.mxu3  ;;  %v1898_v37 = vrot.slane %v1896_v27, 5  ;;  %v4631_v27 = vld [vmem:[%s4864_s29 + $0x60] sm:$0xff] }
  0xc8   : > { %4219 = vmatmul.msk.bf16.gmra.mxu1 %vm687_vm4, %v4629_v40  ;;  %v1221_v40 = vpack.c.b16 %v1197_v20, %v1196_v8  ;;  %v1917_v8 = vor.u32 %v1916_v54, %v1912_v16  ;;  %v1920_v20 = vshll.u32 %v4288_v21, 16  ;;  %v4647_v54 = vld [vmem:[%s4864_s29 + $0x6c] sm:$0xff] }
  0xc9   : > { %v5270_v53 = vpop.f32.mrf.mxu1 }
  0xca   : > { %v1922_v48 = vrot.slane %v1920_v20, 5 }
  0xcd   : > { %v5272_v63 = vpop.f32.mrf.mxu2  ;;  %4252 = vmatmul.msk.bf16.gmra.mxu2 %vm687_vm4, %v1220_v50  ;;  %v1899_v50 = vsel %vm4876_vm3, %v1894_v35, %v1898_v37 }
  0xce   : > { %v2109_v32 = vunpack.c.l.b16 %v1899_v50  ;;  %v4289_v50 = vld [vmem:[%s4864_s29 + $0x78] sm:$0xf] }
  0xcf   : > { %v1925_v57 = vshrl.u32 %v4289_v50, 16 }
  0xd0   : > { %v5278_v17 = vpop.f32.mrf.mxu0  ;;  %v2133_v39 = vpack.c.b16 %v2109_v32, %v2108_v60 }
  0xd1   : > { %v5281_v49 = vpop.f32.mrf.mxu3 }
  0xd2   : > { %4381 = vmatmul.msk.bf16.gmra.mxu3 %vm687_vm4, %v4645_v3  ;;  %v4705_v3 = vld [vmem:[%s4864_s29 + $0x60] sm:$0xf] }
  0xd3   : > { %v4237_v6 = vrot.slane %v4705_v3, 9 }
  0xd5   : > { %v5289_v29 = vpop.f32.mrf.mxu1  ;;  %v5291_v44 = vpop.f32.mrf.mxu2  ;;  %v1127_v26 = vsel %vm5078_vm7, %v4237_v6, %v1126_v47  ;;  %v1918_v47 = vrot.slane %v1917_v8, 4  ;;  %v1934_v6 = vshll.u32 %v4290_v51, 16 }
  0xd6   : > { %v1198_v37 = vunpack.c.l.b16 %v1127_v26  ;;  %v4708_v26 = vld [vmem:[%s4864_s29 + $0x6c] sm:$0xf] }
  0xd7   : > { %4398 = vmatmul.msk.bf16.gmra.mxu0 %vm687_vm4, %v2132_v22  ;;  %v1130_v22 = vsel %vm5078_vm7, %v1128_v7, %v1129_v59  ;;  %v1928_v59 = vshll.u32 %v4289_v50, 16  ;;  %v1923_v3 = vsel %vm4876_vm3, %v1918_v47, %v1922_v48  ;;  %v1938_v7 = vshrl.u32 %v4290_v51, 16  ;;  %v4632_v51 = vld [vmem:[%s4864_s29 + $0x6c] sm:$0xff] }
  0xd8   : > { %4220 = vmatmul.msk.bf16.gmra.mxu1 %vm687_vm4, %v4630_v28  ;;  %v5297_v45 = vpop.f32.mrf.mxu0  ;;  %v1907_v28 = vor.u32 %v1906_v2, %v1903_v13  ;;  %v4707_v13 = vld [vmem:[%s4864_s29 + $0x74] sm:$0x1] }
  0xd9   : > { %v5300_v30 = vpop.f32.mrf.mxu3  ;;  %v1136_v2 = vrot.slane %v4707_v13, 5  ;;  %v1930_v8 = vrot.slane %v1928_v59, 5 }
  0xda   : > { %v1908_v19 = vrot.slane %v1907_v28, 4  ;;  %v1927_v28 = vrot.slane %v1925_v57, 4 }
  0xdc   : > { %v1931_v50 = vor.u32 %v1930_v8, %v1927_v28 }
  0xdd   : > { %4253 = vmatmul.msk.bf16.gmra.mxu2 %vm687_vm4, %v1221_v40  ;;  %v5307_v56 = vpop.f32.mrf.mxu1  ;;  %v1199_v40 = vunpack.c.l.b16 %v1130_v22  ;;  %v4238_v22 = vrot.slane %v4708_v26, 9 }
  0xdf   : > { %v1222_v34 = vpack.c.b16 %v1199_v40, %v1198_v37  ;;  %v1940_v37 = vrot.slane %v1938_v7, 4  ;;  %v1134_v47 = vsel %vm5078_vm7, %v4238_v22, %v1133_v55 }
  0xe0   : > { %v5312_v11 = vpop.f32.mrf.mxu2 }
  0xe2   : > { %4382 = vmatmul.msk.bf16.gmra.mxu3 %vm687_vm4, %v4646_v1  ;;  %v1913_v1 = vsel %vm4876_vm3, %v1908_v19, %v1912_v16  ;;  %v4291_v19 = vld [vmem:[%s4864_s29 + $0x80] sm:$0x1] }
  0xe3   : > { %v2110_v16 = vunpack.c.l.b16 %v1913_v1  ;;  %v1944_v57 = vshll.u32 %v4291_v19, 16 }
  0xe4   : > { %v5320_v23 = vpop.f32.mrf.mxu0 }
  0xe5   : > { %v5323_v58 = vpop.f32.mrf.mxu3  ;;  %v969_v35 = vpop.f32.mrf.mxu1 }
  0xe6   : > { %v970_v41 = vadd.f32 %v969_v35, %v5195_v15  ;;  %v1936_v35 = vrot.slane %v1934_v6, 5 }
  0xe7   : > { %4399 = vmatmul.msk.bf16.gmra.mxu0 %vm687_vm4, %v2133_v39  ;;  %v1135_v39 = vrot.slane %v1133_v55, 4  ;;  %v1932_v55 = vrot.slane %v1931_v50, 4 }
  0xe8   : > { %v5327_v43 = vpop.f32.mrf.mxu2  ;;  %4221 = vmatmul.msk.bf16.gmra.mxu1 %vm687_vm4, %v4631_v27  ;;  %v2111_v27 = vunpack.c.l.b16 %v1923_v3  ;;  %v1941_v52 = vor.u32 %v1940_v37, %v1936_v35 }
  0xea   : > { %v2134_v48 = vpack.c.b16 %v2111_v27, %v2110_v16  ;;  %v1942_v13 = vrot.slane %v1941_v52, 4  ;;  %v4293_v16 = vld [vmem:[%s4864_s29 + $0x88] sm:$0xf]  ;;  %v4709_v27 = vld [vmem:[%s4864_s29 + $0x7c] sm:$0xf] }
  0xeb   : > { %v1140_v28 = vrot.slane %v4709_v27, 5  ;;  %v1958_v19 = vshll.u32 %v4293_v16, 16 }
  0xec   : > { %v5333_v15 = vpop.f32.mrf.mxu0 }
  0xed   : > { %v5339_v60 = vpop.f32.mrf.mxu3  ;;  %4254 = vmatmul.msk.bf16.gmra.mxu2 %vm687_vm4, %v1222_v34  ;;  %v971_v32 = vpop.f32.mrf.mxu1 }
  0xee   : > { %v972_v21 = vadd.f32 %v971_v32, %v5220_v9  ;;  %v1137_v9 = vsel %vm5078_vm7, %v1135_v39, %v1136_v2  ;;  %v1946_v2 = vrot.slane %v1944_v57, 5 }
  0xef   : > { %v1201_v3 = vunpack.c.l.b16 %v1137_v9  ;;  %v4710_v9 = vld [vmem:[%s4864_s29 + $0x80] sm:$0x1] }
  0xf0   : > { %v1290_v20 = vpop.f32.mrf.mxu2  ;;  %v1947_v37 = vsel %vm4876_vm3, %v1942_v13, %v1946_v2 }
  0xf1   : > { %v1370_v40 = vadd.f32 %v1290_v20, %v970_v41  ;;  %v1200_v41 = vunpack.c.l.b16 %v1134_v47  ;;  %v1962_v47 = vshrl.u32 %v4293_v16, 16 }
  0xf2   : > { %4383 = vmatmul.msk.bf16.gmra.mxu3 %vm687_vm4, %v4647_v54  ;;  %v4292_v54 = vld [vmem:[%s4864_s29 + $0x84] sm:$0xf] }
  0xf3   : > { %v1223_v39 = vpack.c.b16 %v1201_v3, %v1200_v41  ;;  %v1949_v8 = vshrl.u32 %v4292_v54, 16  ;;  %v2113_v41 = vunpack.c.l.b16 %v1947_v37  ;;  %v1964_v13 = vrot.slane %v1962_v47, 4 }
  0xf4   : > { %v2202_v34 = vpop.f32.mrf.mxu0 }
  0xf5   : > { %v1596_v59 = vpop.f32.mrf.mxu3  ;;  %v974_v1 = vpop.f32.mrf.mxu1  ;;  %v1951_v3 = vrot.slane %v1949_v8, 4 }
  0xf6   : > { %v1676_v6 = vadd.f32 %v1596_v59, %v1370_v40  ;;  %v975_v7 = vadd.f32 %v974_v1, %v5238_v14  ;;  %v1937_v14 = vsel %vm4876_vm3, %v1932_v55, %v1936_v35  ;;  %v1952_v40 = vshll.u32 %v4292_v54, 16  ;;  %v4711_v35 = vld [vmem:[%s4864_s29 + $0x78] sm:$0xf] }
  0xf7   : > { %4400 = vmatmul.msk.bf16.gmra.mxu0 %vm687_vm4, %v2134_v48  ;;  %v1143_v48 = vrot.slane %v4710_v9, 5  ;;  %v4239_v57 = vrot.slane %v4711_v35, 9  ;;  %v1142_v59 = vrot.slane %v1140_v28, 4  ;;  %v2112_v1 = vunpack.c.l.b16 %v1937_v14  ;;  %v4633_v14 = vld [vmem:[%s4864_s29 + $0x78] sm:$0xff] }
  0xf8   : > { %v1292_v32 = vpop.f32.mrf.mxu2  ;;  %4222 = vmatmul.msk.bf16.gmra.mxu1 %vm687_vm4, %v4632_v51  ;;  %v5357_v26 = vadd.f32 %v2202_v34, %v1676_v6  ;;  %v4648_v51 = vld [vmem:[%s4864_s29 + $0x78] sm:$0xff]  ;;  %v1954_v55 = vrot.slane %v1952_v40, 5 }
  0xf9   : > { %v1371_v22 = vadd.f32 %v1292_v32, %v972_v21  ;;  %v1960_v32 = vrot.slane %v1958_v19, 5  ;;  %v2135_v16 = vpack.c.b16 %v2113_v41, %v2112_v1  ;;  %v4296_v1 = vld [vmem:[%s4864_s29 + $0x94] sm:$0xf]  ;;  %v4712_v41 = vld [vmem:[%s4864_s29 + $0x88] sm:$0xf] }
  0xfa   : > { %v1955_v8 = vor.u32 %v1954_v55, %v1951_v3  ;;  %v1147_v3 = vrot.slane %v4712_v41, 5 }
  0xfb   : > { %v1965_v37 = vor.u32 %v1964_v13, %v1960_v32 }
  0xfc   : > { %v2204_v20 = vpop.f32.mrf.mxu0 }
  0xfd   : > { %v1598_v21 = vpop.f32.mrf.mxu3  ;;  %4255 = vmatmul.msk.bf16.gmra.mxu2 %vm687_vm4, %v1223_v39  ;;  %v976_v50 = vpop.f32.mrf.mxu1  ;;  %v4294_v39 = vld [vmem:[%s4864_s29 + $0x8c] sm:$0x1] }
  0xfe   : > { %v1677_v34 = vadd.f32 %v1598_v21, %v1371_v22  ;;  %v977_v52 = vadd.f32 %v976_v50, %v5257_v4  ;;  %v1141_v4 = vsel %vm5078_vm7, %v4239_v57, %v1140_v28  ;;  %v1144_v22 = vsel %vm5078_vm7, %v1142_v59, %v1143_v48 }
  0xff   : > { %v1968_v40 = vshll.u32 %v4294_v39, 16  ;;  %v1203_v47 = vunpack.c.l.b16 %v1144_v22  ;;  %v1956_v48 = vrot.slane %v1955_v8, 4  ;;  %v1966_v50 = vrot.slane %v1965_v37, 4  ;;  %v4713_v22 = vld [vmem:[%s4864_s29 + $0x8c] sm:$0x1]  ;;  %v4649_v8 = vld [vmem:[%s4864_s29 + $0x84] sm:$0xff] }
 0x100   : > { %v1295_v6 = vpop.f32.mrf.mxu2  ;;  %v5370_v2 = vadd.f32 %v2204_v20, %v1677_v34  ;;  %v1982_v39 = vshll.u32 %v4296_v1, 16 }
 0x101   : > { %v1372_v54 = vadd.f32 %v1295_v6, %v975_v7  ;;  %v1202_v7 = vunpack.c.l.b16 %v1141_v4  ;;  %v1970_v34 = vrot.slane %v1968_v40, 5  ;;  %v1961_v13 = vsel %vm4876_vm3, %v1956_v48, %v1960_v32  ;;  %v4714_v40 = vld [vmem:[%s4864_s29 + $0x84] sm:$0xf] }
 0x102   : > { %4384 = vmatmul.msk.bf16.gmra.mxu3 %vm687_vm4, %v4648_v51  ;;  %v4295_v51 = vld [vmem:[%s4864_s29 + $0x90] sm:$0xf]  ;;  %v1986_v4 = vshrl.u32 %v4296_v1, 16  ;;  %v2114_v32 = vunpack.c.l.b16 %v1961_v13  ;;  %v1984_v48 = vrot.slane %v1982_v39, 5 }
 0x103   : > { %v1224_v59 = vpack.c.b16 %v1203_v47, %v1202_v7  ;;  %v1976_v6 = vshll.u32 %v4295_v51, 16 }
 0x104   : > { %v2207_v27 = vpop.f32.mrf.mxu0 }
 0x105   : > { %v1601_v19 = vpop.f32.mrf.mxu3  ;;  %v979_v20 = vpop.f32.mrf.mxu1 }
 0x106   : > { %v1678_v9 = vadd.f32 %v1601_v19, %v1372_v54  ;;  %v980_v21 = vadd.f32 %v979_v20, %v5278_v17  ;;  %v1973_v17 = vshrl.u32 %v4295_v51, 16  ;;  %v1971_v54 = vsel %vm4876_vm3, %v1966_v50, %v1970_v34 }
 0x107   : > { %4401 = vmatmul.msk.bf16.gmra.mxu0 %vm687_vm4, %v2135_v16  ;;  %v1150_v16 = vrot.slane %v4713_v22, 5  ;;  %v4240_v19 = vrot.slane %v4714_v40, 9  ;;  %v1149_v20 = vrot.slane %v1147_v3, 4  ;;  %v2115_v7 = vunpack.c.l.b16 %v1971_v54 }
 0x108   : > { %v1297_v28 = vpop.f32.mrf.mxu2  ;;  %4223 = vmatmul.msk.bf16.gmra.mxu1 %vm687_vm4, %v4633_v14  ;;  %v5383_v35 = vadd.f32 %v2207_v27, %v1678_v9  ;;  %v1975_v47 = vrot.slane %v1973_v17, 4  ;;  %v1978_v9 = vrot.slane %v1976_v6, 5  ;;  %v1988_v50 = vrot.slane %v1986_v4, 4  ;;  %v4634_v17 = vld [vmem:[%s4864_s29 + $0x84] sm:$0xff] }
 0x109   : > { %v1373_v57 = vadd.f32 %v1297_v28, %v977_v52  ;;  %v2136_v1 = vpack.c.b16 %v2115_v7, %v2114_v32  ;;  %v4299_v32 = vld [vmem:[%s4864_s29 + $0xa0] sm:$0xf]  ;;  %v4715_v7 = vld [vmem:[%s4864_s29 + $0x94] sm:$0xf] }
 0x10a   : > { %v1979_v41 = vor.u32 %v1978_v9, %v1975_v47  ;;  %v1989_v6 = vor.u32 %v1988_v50, %v1984_v48  ;;  %v1154_v47 = vrot.slane %v4715_v7, 5 }
 0x10c   : > { %v2209_v55 = vpop.f32.mrf.mxu0 }
 0x10d   : > { %v1603_v52 = vpop.f32.mrf.mxu3  ;;  %4256 = vmatmul.msk.bf16.gmra.mxu2 %vm687_vm4, %v1224_v59  ;;  %v981_v27 = vpop.f32.mrf.mxu1  ;;  %v4297_v59 = vld [vmem:[%s4864_s29 + $0x98] sm:$0x1] }
 0x10e   : > { %v1679_v14 = vadd.f32 %v1603_v52, %v1373_v57  ;;  %v982_v37 = vadd.f32 %v981_v27, %v5297_v45  ;;  %v1148_v45 = vsel %vm5078_vm7, %v4240_v19, %v1147_v3  ;;  %v1151_v57 = vsel %vm5078_vm7, %v1149_v20, %v1150_v16 }
 0x10f   : > { %v1992_v54 = vshll.u32 %v4297_v59, 16  ;;  %v1205_v4 = vunpack.c.l.b16 %v1151_v57  ;;  %v1980_v3 = vrot.slane %v1979_v41, 4  ;;  %v1990_v27 = vrot.slane %v1989_v6, 4  ;;  %v4716_v57 = vld [vmem:[%s4864_s29 + $0x98] sm:$0x1] }
 0x110   : > { %v1300_v28 = vpop.f32.mrf.mxu2  ;;  %v5396_v34 = vadd.f32 %v2209_v55, %v1679_v14  ;;  %v2006_v59 = vshll.u32 %v4299_v32, 16 }
 0x111   : > { %v1374_v51 = vadd.f32 %v1300_v28, %v980_v21  ;;  %v1204_v21 = vunpack.c.l.b16 %v1148_v45  ;;  %v1994_v14 = vrot.slane %v1992_v54, 5  ;;  %v2010_v45 = vshrl.u32 %v4299_v32, 16 }
 0x112   : > { %4385 = vmatmul.msk.bf16.gmra.mxu3 %vm687_vm4, %v4649_v8  ;;  %v4298_v8 = vld [vmem:[%s4864_s29 + $0x9c] sm:$0xf] }
 0x113   : > { %v1225_v20 = vpack.c.b16 %v1205_v4, %v1204_v21  ;;  %v1997_v9 = vshrl.u32 %v4298_v8, 16  ;;  %v1995_v50 = vsel %vm4876_vm3, %v1990_v27, %v1994_v14  ;;  %v2012_v27 = vrot.slane %v2010_v45, 4 }
 0x114   : > { %v2212_v13 = vpop.f32.mrf.mxu0  ;;  %v2117_v21 = vunpack.c.l.b16 %v1995_v50 }
 0x115   : > { %v1606_v39 = vpop.f32.mrf.mxu3  ;;  %v984_v55 = vpop.f32.mrf.mxu1  ;;  %v1999_v4 = vrot.slane %v1997_v9, 4 }
 0x116   : > { %v1680_v22 = vadd.f32 %v1606_v39, %v1374_v51  ;;  %v985_v52 = vadd.f32 %v984_v55, %v5320_v23  ;;  %v1985_v23 = vsel %vm4876_vm3, %v1980_v3, %v1984_v48  ;;  %v2000_v51 = vshll.u32 %v4298_v8, 16  ;;  %v4717_v48 = vld [vmem:[%s4864_s29 + $0x90] sm:$0xf] }
 0x117   : > { %4402 = vmatmul.msk.bf16.gmra.mxu0 %vm687_vm4, %v2136_v1  ;;  %v1157_v1 = vrot.slane %v4716_v57, 5  ;;  %v4241_v54 = vrot.slane %v4717_v48, 9  ;;  %v1156_v39 = vrot.slane %v1154_v47, 4  ;;  %v2116_v55 = vunpack.c.l.b16 %v1985_v23  ;;  %v4635_v23 = vld [vmem:[%s4864_s29 + $0x90] sm:$0xff] }
 0x118   : > { %v1302_v16 = vpop.f32.mrf.mxu2  ;;  %4224 = vmatmul.msk.bf16.gmra.mxu1 %vm687_vm4, %v4634_v17  ;;  %v5409_v40 = vadd.f32 %v2212_v13, %v1680_v22  ;;  %v4650_v17 = vld [vmem:[%s4864_s29 + $0x90] sm:$0xff]  ;;  %v2002_v3 = vrot.slane %v2000_v51, 5 }
 0x119   : > { %v1375_v19 = vadd.f32 %v1302_v16, %v982_v37  ;;  %v2008_v16 = vrot.slane %v2006_v59, 5  ;;  %v2137_v32 = vpack.c.b16 %v2117_v21, %v2116_v55  ;;  %v4718_v21 = vld [vmem:[%s4864_s29 + $0xa0] sm:$0xf] }
 0x11a   : > { %v2003_v9 = vor.u32 %v2002_v3, %v1999_v4  ;;  %v1161_v4 = vrot.slane %v4718_v21, 5 }
 0x11b   : > { %v2013_v50 = vor.u32 %v2012_v27, %v2008_v16 }
 0x11c   : > { %v2214_v28 = vpop.f32.mrf.mxu0 }
 0x11d   : > { %v1608_v37 = vpop.f32.mrf.mxu3  ;;  %4257 = vmatmul.msk.bf16.gmra.mxu2 %vm687_vm4, %v1225_v20  ;;  %v986_v41 = vpop.f32.mrf.mxu1  ;;  %v4300_v20 = vld [vmem:[%s4864_s29 + $0xa4] sm:$0x1] }
 0x11e   : > { %v1681_v13 = vadd.f32 %v1608_v37, %v1375_v19  ;;  %v987_v6 = vadd.f32 %v986_v41, %v5333_v15  ;;  %v1155_v15 = vsel %vm5078_vm7, %v4241_v54, %v1154_v47  ;;  %v1158_v19 = vsel %vm5078_vm7, %v1156_v39, %v1157_v1  ;;  %v4301_v37 = vld [vmem:[%s4864_s29 + $0xa8] sm:$0xf]  ;;  %v4302_v39 = vld [vmem:[%s4864_s29 + $0xac] sm:$0xf] }
 0x11f   : > { %v2016_v51 = vshll.u32 %v4300_v20, 16  ;;  %v1207_v45 = vunpack.c.l.b16 %v1158_v19  ;;  %v2004_v1 = vrot.slane %v2003_v9, 4  ;;  %v2014_v41 = vrot.slane %v2013_v50, 4  ;;  %v4719_v19 = vld [vmem:[%s4864_s29 + $0xa4] sm:$0x1]  ;;  %v4651_v50 = vld [vmem:[%s4864_s29 + $0x9c] sm:$0xff] }
 0x120   : > { %v1305_v22 = vpop.f32.mrf.mxu2  ;;  %v5422_v14 = vadd.f32 %v2214_v28, %v1681_v13  ;;  %v2021_v55 = vshrl.u32 %v4301_v37, 16  ;;  %v2030_v20 = vshll.u32 %v4302_v39, 16 }
 0x121   : > { %v1376_v8 = vadd.f32 %v1305_v22, %v985_v52  ;;  %v1206_v52 = vunpack.c.l.b16 %v1155_v15  ;;  %v2018_v13 = vrot.slane %v2016_v51, 5  ;;  %v2024_v22 = vshll.u32 %v4301_v37, 16  ;;  %v4720_v51 = vld [vmem:[%s4864_s29 + $0x9c] sm:$0xf] }
 0x122   : > { %4386 = vmatmul.msk.bf16.gmra.mxu3 %vm687_vm4, %v4650_v17  ;;  %v2009_v27 = vsel %vm4876_vm3, %v2004_v1, %v2008_v16  ;;  %v2034_v15 = vshrl.u32 %v4302_v39, 16  ;;  %v2032_v1 = vrot.slane %v2030_v20, 5  ;;  %v4303_v39 = vld [vmem:[%s4864_s29 + $0xb0] sm:$0x1] }
 0x123   : > { %v1226_v54 = vpack.c.b16 %v1207_v45, %v1206_v52  ;;  %v1163_v52 = vrot.slane %v1161_v4, 4  ;;  %v2026_v45 = vrot.slane %v2024_v22, 5  ;;  %v4636_v22 = vld [vmem:[%s4864_s29 + $0x9c] sm:$0xff] }
 0x124   : > { %v2217_v7 = vpop.f32.mrf.mxu0 }
 0x125   : > { %v1611_v28 = vpop.f32.mrf.mxu3  ;;  %v989_v59 = vpop.f32.mrf.mxu1 }
 0x126   : > { %v1682_v57 = vadd.f32 %v1611_v28, %v1376_v8  ;;  %v2019_v8 = vsel %vm4876_vm3, %v2014_v41, %v2018_v13  ;;  %v4242_v28 = vrot.slane %v4720_v51, 9  ;;  %v990_v16 = vadd.f32 %v989_v59, %v5176_v42 }
 0x127   : > { %4403 = vmatmul.msk.bf16.gmra.mxu0 %vm687_vm4, %v2137_v32  ;;  %v1164_v32 = vrot.slane %v4719_v19, 5  ;;  %v2119_v37 = vunpack.c.l.b16 %v2019_v8  ;;  %v2036_v41 = vrot.slane %v2034_v15, 4  ;;  %v2040_v8 = vshll.u32 %v4303_v39, 16 }
 0x128   : > { %v1307_v47 = vpop.f32.mrf.mxu2  ;;  %4225 = vmatmul.msk.bf16.gmra.mxu1 %vm687_vm4, %v4635_v23  ;;  %v5434_v17 = vadd.f32 %v2217_v7, %v1682_v57  ;;  %v2023_v23 = vrot.slane %v2021_v55, 4  ;;  %v2118_v57 = vunpack.c.l.b16 %v2009_v27 }
 0x129   : > { %v1377_v48 = vadd.f32 %v1307_v47, %v987_v6  ;;  %v1165_v55 = vsel %vm5078_vm7, %v1163_v52, %v1164_v32  ;;  %v2037_v27 = vor.u32 %v2036_v41, %v2032_v1  ;;  %v2042_v51 = vrot.slane %v2040_v8, 5  ;;  %v4652_v8 = vld [vmem:[%s4864_s29 + $0xa8] sm:$0xff] }
 0x12a   : > { %v2027_v21 = vor.u32 %v2026_v45, %v2023_v23  ;;  %v2138_v42 = vpack.c.b16 %v2119_v37, %v2118_v57  ;;  %v1209_v19 = vunpack.c.l.b16 %v1165_v55  ;;  %v4722_v55 = vld [vmem:[%s4864_s29 + $0xb0] sm:$0x1] }
 0x12b   : > { %v2038_v23 = vrot.slane %v2037_v27, 4 }
 0x12c   : > { %v2219_v3 = vpop.f32.mrf.mxu0 }
 0x12d   : > { %v1613_v6 = vpop.f32.mrf.mxu3  ;;  %4258 = vmatmul.msk.bf16.gmra.mxu2 %vm687_vm4, %v1226_v54  ;;  %v991_v7 = vpop.f32.mrf.mxu1 }
 0x12e   : > { %v1683_v9 = vadd.f32 %v1613_v6, %v1377_v48  ;;  %v1162_v48 = vsel %vm5078_vm7, %v4242_v28, %v1161_v4  ;;  %v992_v4 = vadd.f32 %v991_v7, %v5189_v10  ;;  %v4305_v28 = vld [vmem:[%s4864_s29 + $0xb8] sm:$0xf] }
 0x12f   : > { %v1208_v15 = vunpack.c.l.b16 %v1162_v48  ;;  %v2054_v7 = vshll.u32 %v4305_v28, 16  ;;  %v2043_v48 = vsel %vm4876_vm3, %v2038_v23, %v2042_v51  ;;  %v4306_v51 = vld [vmem:[%s4864_s29 + $0xbc] sm:$0x1] }
 0x130   : > { %v1310_v47 = vpop.f32.mrf.mxu2  ;;  %v5447_v13 = vadd.f32 %v2219_v3, %v1683_v9  ;;  %v2028_v9 = vrot.slane %v2027_v21, 4  ;;  %v1171_v21 = vrot.slane %v4722_v55, 5 }
 0x131   : > { %v1378_v54 = vadd.f32 %v1310_v47, %v990_v16  ;;  %v1227_v16 = vpack.c.b16 %v1209_v19, %v1208_v15  ;;  %v4721_v47 = vld [vmem:[%s4864_s29 + $0xac] sm:$0xf] }
 0x132   : > { %4387 = vmatmul.msk.bf16.gmra.mxu3 %vm687_vm4, %v4651_v50  ;;  %v4304_v50 = vld [vmem:[%s4864_s29 + $0xb4] sm:$0xf]  ;;  %v2033_v37 = vsel %vm4876_vm3, %v2028_v9, %v2032_v1  ;;  %v1168_v41 = vrot.slane %v4721_v47, 5  ;;  %v2064_v47 = vshll.u32 %v4306_v51, 16 }
 0x133   : > { %v2045_v57 = vshrl.u32 %v4304_v50, 16  ;;  %v2048_v10 = vshll.u32 %v4304_v50, 16  ;;  %v2121_v50 = vunpack.c.l.b16 %v2043_v48 }
 0x134   : > { %v2222_v59 = vpop.f32.mrf.mxu0  ;;  %v1170_v19 = vrot.slane %v1168_v41, 4 }
 0x135   : > { %v1616_v3 = vpop.f32.mrf.mxu3  ;;  %v994_v20 = vpop.f32.mrf.mxu1  ;;  %v2047_v1 = vrot.slane %v2045_v57, 4 }
 0x136   : > { %v1684_v6 = vadd.f32 %v1616_v3, %v1378_v54  ;;  %v2058_v54 = vshrl.u32 %v4305_v28, 16  ;;  %v4723_v3 = vld [vmem:[%s4864_s29 + $0xa8] sm:$0xf]  ;;  %v995_v9 = vadd.f32 %v994_v20, %v5208_v31  ;;  %v1172_v57 = vsel %vm5078_vm7, %v1170_v19, %v1171_v21  ;;  %v4308_v19 = vld [vmem:[%s4864_s29 + $0xc4] sm:$0xf] }
 0x137   : > { %4404 = vmatmul.msk.bf16.gmra.mxu0 %vm687_vm4, %v2138_v42  ;;  %v4243_v15 = vrot.slane %v4723_v3, 9  ;;  %v1211_v55 = vunpack.c.l.b16 %v1172_v57  ;;  %v2082_v57 = vshrl.u32 %v4308_v19, 16 }
 0x138   : > { %v1312_v32 = vpop.f32.mrf.mxu2  ;;  %4226 = vmatmul.msk.bf16.gmra.mxu1 %vm687_vm4, %v4636_v22  ;;  %v5461_v52 = vadd.f32 %v2222_v59, %v1684_v6  ;;  %v2120_v59 = vunpack.c.l.b16 %v2033_v37  ;;  %v2050_v6 = vrot.slane %v2048_v10, 5 }
 0x139   : > { %v1379_v45 = vadd.f32 %v1312_v32, %v992_v4  ;;  %v2056_v4 = vrot.slane %v2054_v7, 5  ;;  %v2060_v32 = vrot.slane %v2058_v54, 4  ;;  %v4637_v7 = vld [vmem:[%s4864_s29 + $0xa8] sm:$0xff] }
 0x13a   : > { %v2051_v37 = vor.u32 %v2050_v6, %v2047_v1  ;;  %v2139_v31 = vpack.c.b16 %v2121_v50, %v2120_v59  ;;  %v2066_v1 = vrot.slane %v2064_v47, 5  ;;  %v4307_v59 = vld [vmem:[%s4864_s29 + $0xc0] sm:$0xf]  ;;  %v4725_v50 = vld [vmem:[%s4864_s29 + $0xb8] sm:$0xf] }
 0x13b   : > { %v2061_v20 = vor.u32 %v2060_v32, %v2056_v4  ;;  %v1175_v32 = vrot.slane %v4725_v50, 5  ;;  %v2072_v51 = vshll.u32 %v4307_v59, 16  ;;  %v4727_v47 = vld [vmem:[%s4864_s29 + $0x14] sm:$0x1] }
 0x13c   : > { %v2224_v39 = vpop.f32.mrf.mxu0 }
 0x13d   : > { %v1618_v42 = vpop.f32.mrf.mxu3  ;;  %4259 = vmatmul.msk.bf16.gmra.mxu2 %vm687_vm4, %v1227_v16  ;;  %v996_v22 = vpop.f32.mrf.mxu1  ;;  %v2062_v21 = vrot.slane %v2061_v20, 4 }
 0x13e   : > { %v1685_v27 = vadd.f32 %v1618_v42, %v1379_v45  ;;  %v1169_v45 = vsel %vm5078_vm7, %v4243_v15, %v1168_v41  ;;  %v997_v41 = vadd.f32 %v996_v22, %v5228_v61  ;;  %v2069_v22 = vshrl.u32 %v4307_v59, 16  ;;  %v4653_v59 = vld [vmem:[%s4864_s29 + $0xb4] sm:$0xff] }
 0x13f   : > { %v1210_v48 = vunpack.c.l.b16 %v1169_v45  ;;  %v2078_v45 = vshll.u32 %v4308_v19, 16  ;;  %v2074_v19 = vrot.slane %v2072_v51, 5  ;;  %v5512_v51 = vld [vmem:[%s4864_s29 + $0x18] sm:$0xf] }
 0x140   : > { %v1315_v23 = vpop.f32.mrf.mxu2  ;;  %v5474_v28 = vadd.f32 %v2224_v39, %v1685_v27  ;;  %v2052_v27 = vrot.slane %v2051_v37, 4  ;;  %v4726_v37 = vld [vmem:[%s4864_s29 + $0xc] sm:$0xf] }
 0x141   : > { %v1380_v16 = vadd.f32 %v1315_v23, %v995_v9  ;;  %v1228_v9 = vpack.c.b16 %v1211_v55, %v1210_v48  ;;  %v4728_v48 = vld [vmem:[%s4864_s29 + $0xb4] sm:$0xf]  ;;  %v4729_v55 = vld [vmem:[%s4864_s29 + $0xbc] sm:$0x1] }
 0x142   : > { %4388 = vmatmul.msk.bf16.gmra.mxu3 %vm687_vm4, %v4652_v8  ;;  %v4724_v8 = vld [vmem:[%s4864_s29 + $0x10] sm:$0xf]  ;;  %v2057_v61 = vsel %vm4876_vm3, %v2052_v27, %v2056_v4 }
 0x143   : > { %v2332_v3 = vrot.slane %v4724_v8, 5  ;;  %v2122_v27 = vunpack.c.l.b16 %v2057_v61 }
 0x144   : > { %v2227_v10 = vpop.f32.mrf.mxu0 }
 0x145   : > { %v1621_v54 = vpop.f32.mrf.mxu3  ;;  %v999_v39 = vpop.f32.mrf.mxu1  ;;  %v2334_v20 = vrot.slane %v2332_v3, 4 }
 0x146   : > { %v1686_v42 = vadd.f32 %v1621_v54, %v1380_v16  ;;  %v2067_v16 = vsel %vm4876_vm3, %v2062_v21, %v2066_v1  ;;  %v1177_v21 = vrot.slane %v1175_v32, 4  ;;  %v1000_v50 = vadd.f32 %v999_v39, %v5247_v62 }
 0x147   : > { %4405 = vmatmul.msk.bf16.gmra.mxu0 %vm687_vm4, %v2139_v31  ;;  %v4408_v31 = vrot.slane %v4726_v37, 9  ;;  %v2123_v8 = vunpack.c.l.b16 %v2067_v16  ;;  %v2080_v37 = vrot.slane %v2078_v45, 5  ;;  %v5516_v45 = vld [vmem:[%s4864_s29 + $0x1c] sm:$0xf] }
 0x148   : > { %v1317_v15 = vpop.f32.mrf.mxu2  ;;  %4227 = vmatmul.msk.bf16.gmra.mxu1 %vm687_vm4, %v4637_v7  ;;  %v5489_v23 = vadd.f32 %v2227_v10, %v1686_v42  ;;  %v2335_v7 = vrot.slane %v4727_v47, 5  ;;  %v4244_v10 = vrot.slane %v4728_v48, 9  ;;  %v1178_v42 = vrot.slane %v4729_v55, 5 }
 0x149   : > { %v1381_v6 = vadd.f32 %v1317_v15, %v997_v41  ;;  %v2071_v15 = vrot.slane %v2069_v22, 4  ;;  %v2084_v47 = vrot.slane %v2082_v57, 4  ;;  %v2140_v16 = vpack.c.b16 %v2123_v8, %v2122_v27 }
 0x14a   : > { %6349 = vst [vmem:[#allocation2_spill] sm:$0xff] %v5489_v23  ;;  %v1176_v55 = vsel %vm5078_vm7, %v4244_v10, %v1175_v32  ;;  %v4309_v23 = vld [vmem:[%s4864_s29 + $0xc8] sm:$0x1]  ;;  %v1179_v22 = vsel %vm5078_vm7, %v1177_v21, %v1178_v42  ;;  %v2971_v21 = vshrl.u32 %v5512_v51, 16  ;;  %v2980_v27 = vshll.u32 %v5516_v45, 16 }
 0x14b   : > { %v2075_v32 = vor.u32 %v2074_v19, %v2071_v15  ;;  %v2085_v57 = vor.u32 %v2084_v47, %v2080_v37  ;;  %v1213_v42 = vunpack.c.l.b16 %v1179_v22  ;;  %v2984_v8 = vshrl.u32 %v5516_v45, 16 }
 0x14c   : > { %v2229_v54 = vpop.f32.mrf.mxu0 }
 0x14d   : > { %v1623_v4 = vpop.f32.mrf.mxu3  ;;  %4260 = vmatmul.msk.bf16.gmra.mxu2 %vm687_vm4, %v1228_v9  ;;  %v1001_v41 = vpop.f32.mrf.mxu1  ;;  %v2333_v9 = vsel %vm5078_vm7, %v4408_v31, %v2332_v3  ;;  %v2088_v3 = vshll.u32 %v4309_v23, 16  ;;  %v2086_v15 = vrot.slane %v2085_v57, 4 }
 0x14e   : > { %v1687_v1 = vadd.f32 %v1623_v4, %v1381_v6  ;;  %v2336_v6 = vsel %vm5078_vm7, %v2334_v20, %v2335_v7  ;;  %v2444_v62 = vunpack.c.l.b16 %v2333_v9  ;;  %v4638_v7 = vld [vmem:[%s4864_s29 + $0xb4] sm:$0xff]  ;;  %v1212_v4 = vunpack.c.l.b16 %v1176_v55 }
 0x14f   : > { %v2445_v39 = vunpack.c.l.b16 %v2336_v6  ;;  %v2090_v55 = vrot.slane %v2088_v3, 5  ;;  %v2973_v9 = vrot.slane %v2971_v21, 4 }
 0x150   : > { %v1320_v48 = vpop.f32.mrf.mxu2  ;;  %v5520_v10 = vadd.f32 %v2229_v54, %v1687_v1  ;;  %v1002_v54 = vadd.f32 %v1001_v41, %v5270_v53  ;;  %v2076_v1 = vrot.slane %v2075_v32, 4  ;;  %v1229_v47 = vpack.c.b16 %v1213_v42, %v1212_v4 }
 0x151   : > { %v1382_v61 = vadd.f32 %v1320_v48, %v1000_v50  ;;  %v5518_v31 = vpack.c.b16 %v2445_v39, %v2444_v62  ;;  %v2974_v50 = vshll.u32 %v5512_v51, 16  ;;  %v2982_v62 = vrot.slane %v2980_v27, 5 }
 0x152   : > { %4389 = vmatmul.msk.bf16.gmra.mxu3 %vm687_vm4, %v4653_v59  ;;  %6350 = vst [vmem:[#allocation3_spill] sm:$0xff] %v5520_v10  ;;  %v2986_v39 = vrot.slane %v2984_v8, 4  ;;  %v2081_v53 = vsel %vm4876_vm3, %v2076_v1, %v2080_v37  ;;  %v2091_v41 = vsel %vm4876_vm3, %v2086_v15, %v2090_v55  ;;  %v5542_v1 = vld [vmem:[%s4864_s29 + $0x24] sm:$0xf] }
 0x153   : > { %v2976_v6 = vrot.slane %v2974_v50, 5  ;;  %v2124_v21 = vunpack.c.l.b16 %v2081_v53  ;;  %v2125_v50 = vunpack.c.l.b16 %v2091_v41  ;;  %v4587_v41 = vrot.slane %v5512_v51, 9 }
 0x154   : > { %v2232_v20 = vpop.f32.mrf.mxu0  ;;  %v2987_v3 = vor.u32 %v2986_v39, %v2982_v62 }
 0x155   : > { %v1626_v48 = vpop.f32.mrf.mxu3  ;;  %v1004_v59 = vpop.f32.mrf.mxu1  ;;  %v2977_v57 = vor.u32 %v2976_v6, %v2973_v9  ;;  %v2141_v15 = vpack.c.b16 %v2125_v50, %v2124_v21  ;;  %v4732_v50 = vld [vmem:[%s4864_s29 + $0x18] sm:$0xf] }
 0x156   : > { %v1688_v23 = vadd.f32 %v1626_v48, %v1382_v61  ;;  %v4443_v61 = vld [vmem:[%s4864_s29 + $0x20] sm:$0x1]  ;;  %v1005_v42 = vadd.f32 %v1004_v59, %v5289_v29  ;;  %v4730_v29 = vld [vmem:[%s4864_s29 + $0x1c] sm:$0xf] }
 0x157   : > { %4406 = vmatmul.msk.bf16.gmra.mxu0 %vm687_vm4, %v2140_v16  ;;  %v2978_v8 = vrot.slane %v2977_v57, 4  ;;  %v2339_v59 = vrot.slane %v4730_v29, 5 }
 0x158   : > { %v1322_v19 = vpop.f32.mrf.mxu2  ;;  %4228 = vmatmul.msk.bf16.gmra.mxu1 %vm687_vm4, %v4638_v7  ;;  %v5530_v10 = vadd.f32 %v2232_v20, %v1688_v23  ;;  %v2990_v7 = vshll.u32 %v4443_v61, 16  ;;  %v4654_v20 = vld [vmem:[%s4864_s29 + $0xc0] sm:$0xff]  ;;  %v2988_v23 = vrot.slane %v2987_v3, 4 }
 0x159   : > { %v1383_v22 = vadd.f32 %v1322_v19, %v1002_v54  ;;  %v3594_v19 = vrot.slane %v5516_v45, 5  ;;  %v2983_v39 = vsel %vm4876_vm3, %v2978_v8, %v2982_v62  ;;  %v2995_v45 = vshrl.u32 %v5542_v1, 16 }
 0x15a   : > { %v2992_v54 = vrot.slane %v2990_v7, 5  ;;  %v3356_v51 = vunpack.c.l.b16 %v2983_v39 }
 0x15b   : > { %v3596_v7 = vrot.slane %v3594_v19, 4 }
 0x15c   : > { %v2234_v48 = vpop.f32.mrf.mxu0  ;;  %v2993_v53 = vsel %vm4876_vm3, %v2988_v23, %v2992_v54  ;;  %v4655_v23 = vld [vmem:[%s4864_s29 + $0x18] sm:$0xff] }
 0x15d   : > { %v1628_v16 = vpop.f32.mrf.mxu3  ;;  %4261 = vmatmul.msk.bf16.gmra.mxu2 %vm687_vm4, %v1229_v47  ;;  %v1006_v32 = vpop.f32.mrf.mxu1  ;;  %v5546_v47 = vld [vmem:[%s4864_s29 + $0x28] sm:$0xf]  ;;  %v3357_v54 = vunpack.c.l.b16 %v2993_v53 }
 0x15e   : > { %v1689_v4 = vadd.f32 %v1628_v16, %v1383_v22  ;;  %v3004_v57 = vshll.u32 %v5546_v47, 16  ;;  %v3008_v3 = vshrl.u32 %v5546_v47, 16  ;;  %v1007_v62 = vadd.f32 %v1006_v32, %v5307_v56 }
 0x160   : > { %v1325_v37 = vpop.f32.mrf.mxu2  ;;  %v5548_v55 = vadd.f32 %v2234_v48, %v1689_v4  ;;  %v2998_v48 = vshll.u32 %v5542_v1, 16  ;;  %v3597_v4 = vrot.slane %v4443_v61, 5  ;;  %v2997_v61 = vrot.slane %v2995_v45, 4 }
 0x161   : > { %v1384_v27 = vadd.f32 %v1325_v37, %v1005_v42  ;;  %v4409_v37 = vrot.slane %v4732_v50, 9  ;;  %v5571_v29 = vrot.slane %v3004_v57, 5 }
 0x162   : > { %4390 = vmatmul.msk.bf16.gmra.mxu3 %vm687_vm4, %v4654_v20  ;;  %v4731_v20 = vld [vmem:[%s4864_s29 + $0x20] sm:$0x1]  ;;  %v3000_v32 = vrot.slane %v2998_v48, 5 }
 0x163   : > { %v2342_v42 = vrot.slane %v4731_v20, 5  ;;  %v2340_v20 = vsel %vm5078_vm7, %v4409_v37, %v2339_v59  ;;  %v5587_v37 = vld [vmem:[%s4864_s29 + $0x30] sm:$0xf] }
 0x164   : > { %v2237_v9 = vpop.f32.mrf.mxu0  ;;  %v3001_v57 = vor.u32 %v3000_v32, %v2997_v61  ;;  %v3019_v32 = vshrl.u32 %v5587_v37, 16 }
 0x165   : > { %v1631_v6 = vpop.f32.mrf.mxu3  ;;  %v1009_v22 = vpop.f32.mrf.mxu1 }
 0x166   : > { %v1690_v16 = vadd.f32 %v1631_v6, %v1384_v27  ;;  %v2341_v27 = vrot.slane %v2339_v59, 4  ;;  %v3010_v6 = vrot.slane %v3008_v3, 4  ;;  %v1010_v59 = vadd.f32 %v1009_v22, %v5191_v12 }
 0x167   : > { %4407 = vmatmul.msk.bf16.gmra.mxu0 %vm687_vm4, %v2141_v15  ;;  %v3595_v15 = vsel %vm5078_vm7, %v4587_v41, %v3594_v19  ;;  %v3601_v12 = vrot.slane %v5546_v47, 5  ;;  %v4588_v47 = vrot.slane %v5542_v1, 9 }
 0x168   : > { %v1327_v21 = vpop.f32.mrf.mxu2  ;;  %4425 = vmatmul.msk.bf16.vlgmr.msra.gmra.mxu1 %vm687_vm4, %v5518_v31  ;;  %v5569_v56 = vadd.f32 %v2237_v9, %v1690_v16  ;;  %v3598_v31 = vsel %vm5078_vm7, %v3596_v7, %v3597_v4  ;;  %v2343_v53 = vsel %vm5078_vm7, %v2341_v27, %v2342_v42  ;;  %v3388_v9 = vpack.c.b16 %v3357_v54, %v3356_v51  ;;  %v5590_v27 = vld [vmem:[%s4864_s29 + $0x34] sm:$0xf] }
 0x169   : > { %v1385_v8 = vadd.f32 %v1327_v21, %v1007_v62  ;;  %v5580_v62 = vld [vmem:[%s4864_s29 + $0x2c] sm:$0x1]  ;;  %v3706_v41 = vunpack.c.l.b16 %v3595_v15  ;;  %v3707_v48 = vunpack.c.l.b16 %v3598_v31  ;;  %v3011_v3 = vor.u32 %v3010_v6, %v5571_v29 }
 0x16a   : > { %v2446_v7 = vunpack.c.l.b16 %v2340_v20  ;;  %v2447_v4 = vunpack.c.l.b16 %v2343_v53  ;;  %v3014_v42 = vshll.u32 %v5580_v62, 16  ;;  %v3022_v6 = vshll.u32 %v5587_v37, 16 }
 0x16b   : > { %v3738_v51 = vpack.c.b16 %v3707_v48, %v3706_v41  ;;  %v3028_v31 = vshll.u32 %v5590_v27, 16  ;;  %v3032_v20 = vshrl.u32 %v5590_v27, 16  ;;  %v4734_v48 = vld [vmem:[%s4864_s29 + $0x2c] sm:$0x1] }
 0x16c   : > { %v2239_v39 = vpop.f32.mrf.mxu0  ;;  %v2477_v54 = vpack.c.b16 %v2447_v4, %v2446_v7  ;;  %v3016_v15 = vrot.slane %v3014_v42, 5  ;;  %v3603_v4 = vrot.slane %v3601_v12, 4  ;;  %v3024_v1 = vrot.slane %v3022_v6, 5 }
 0x16d   : > { %v1633_v19 = vpop.f32.mrf.mxu3  ;;  %4554 = vmatmul.msk.bf16.vlgmr.msra.gmra.mxu2 %vm687_vm4, %v4655_v23  ;;  %v1011_v45 = vpop.f32.mrf.mxu1  ;;  %v3012_v23 = vrot.slane %v3011_v3, 4 }
 0x16e   : > { %v1691_v16 = vadd.f32 %v1633_v19, %v1385_v8  ;;  %v3002_v8 = vrot.slane %v3001_v57, 4  ;;  %v2349_v57 = vrot.slane %v4734_v48, 5 }
 0x16f   : > { %v3017_v7 = vsel %vm4876_vm3, %v3012_v23, %v3016_v15  ;;  %v3602_v15 = vsel %vm5078_vm7, %v4588_v47, %v3601_v12 }
 0x170   : > { %v1330_v21 = vpop.f32.mrf.mxu2  ;;  %v5594_v22 = vadd.f32 %v2239_v39, %v1691_v16  ;;  %v3604_v39 = vrot.slane %v5580_v62, 5  ;;  %v1012_v16 = vadd.f32 %v1011_v45, %v5212_v38  ;;  %v3034_v62 = vrot.slane %v3032_v20, 4 }
 0x171   : > { %v1386_v50 = vadd.f32 %v1330_v21, %v1010_v59  ;;  %v3007_v59 = vsel %vm4876_vm3, %v3002_v8, %v5571_v29  ;;  %v3021_v21 = vrot.slane %v3019_v32, 4  ;;  %v3359_v8 = vunpack.c.l.b16 %v3017_v7 }
 0x172   : > { %4571 = vmatmul.msk.bf16.vlgmr.msra.gmra.mxu3 %vm687_vm4, %v3388_v9  ;;  %6351 = vst [vmem:[#allocation4_spill] sm:$0xff] %v5594_v22  ;;  %v4733_v9 = vld [vmem:[%s4864_s29 + $0x28] sm:$0xf]  ;;  %v3358_v29 = vunpack.c.l.b16 %v3007_v59  ;;  %v5617_v22 = vld [vmem:[%s4864_s29 + $0x38] sm:$0x1] }
 0x173   : > { %v2346_v41 = vrot.slane %v4733_v9, 5  ;;  %v4735_v9 = vld [vmem:[%s4864_s29 + $0x24] sm:$0xf]  ;;  %v3025_v32 = vor.u32 %v3024_v1, %v3021_v21 }
 0x174   : > { %v2242_v61 = vpop.f32.mrf.mxu0  ;;  %v4410_v38 = vrot.slane %v4735_v9, 9  ;;  %v3389_v12 = vpack.c.b16 %v3359_v8, %v3358_v29  ;;  %v4736_v29 = vld [vmem:[%s4864_s29 + $0x34] sm:$0xf] }
 0x175   : > { %v1636_v53 = vpop.f32.mrf.mxu3  ;;  %v1014_v19 = vpop.f32.mrf.mxu1  ;;  %v2348_v45 = vrot.slane %v2346_v41, 4  ;;  %v2353_v8 = vrot.slane %v4736_v29, 5 }
 0x176   : > { %v1692_v3 = vadd.f32 %v1636_v53, %v1386_v50  ;;  %v3030_v50 = vrot.slane %v3028_v31, 5  ;;  %v1015_v47 = vadd.f32 %v1014_v19, %v5231_v0 }
 0x177   : > { %4604 = vmatmul.msk.bf16.vlgmr.msra.gmra.mxu0 %vm687_vm4, %v3738_v51  ;;  %v4656_v51 = vld [vmem:[%s4864_s29 + $0x24] sm:$0xff]  ;;  %v2350_v20 = vsel %vm5078_vm7, %v2348_v45, %v2349_v57  ;;  %v5632_v57 = vld [vmem:[%s4864_s29 + $0x3c] sm:$0xf] }
 0x178   : > { %v1332_v42 = vpop.f32.mrf.mxu2  ;;  %4426 = vmatmul.msk.bf16.gmra.mxu1 %vm687_vm4, %v2477_v54  ;;  %v5614_v48 = vadd.f32 %v2242_v61, %v1692_v3  ;;  %v3605_v54 = vsel %vm5078_vm7, %v3603_v4, %v3604_v39  ;;  %v2347_v61 = vsel %vm5078_vm7, %v4410_v38, %v2346_v41  ;;  %v3035_v3 = vor.u32 %v3034_v62, %v3030_v50  ;;  %v5636_v38 = vld [vmem:[%s4864_s29 + $0x40] sm:$0xf] }
 0x179   : > { %v1387_v53 = vadd.f32 %v1332_v42, %v1012_v16  ;;  %v3038_v16 = vshll.u32 %v5617_v22, 16  ;;  %v3708_v39 = vunpack.c.l.b16 %v3602_v15  ;;  %v3709_v7 = vunpack.c.l.b16 %v3605_v54 }
 0x17a   : > { %v2448_v42 = vunpack.c.l.b16 %v2347_v61  ;;  %v2449_v21 = vunpack.c.l.b16 %v2350_v20  ;;  %v3026_v41 = vrot.slane %v3025_v32, 4  ;;  %v3043_v61 = vshrl.u32 %v5632_v57, 16 }
 0x17b   : > { %v3040_v9 = vrot.slane %v3038_v16, 5  ;;  %v3739_v62 = vpack.c.b16 %v3709_v7, %v3708_v39  ;;  %v3046_v20 = vshll.u32 %v5632_v57, 16  ;;  %v3056_v16 = vshrl.u32 %v5636_v38, 16 }
 0x17c   : > { %v2244_v23 = vpop.f32.mrf.mxu0  ;;  %v2478_v45 = vpack.c.b16 %v2449_v21, %v2448_v42  ;;  %v3031_v32 = vsel %vm4876_vm3, %v3026_v41, %v3030_v50  ;;  %v2355_v21 = vrot.slane %v2353_v8, 4  ;;  %v4657_v41 = vld [vmem:[%s4864_s29 + $0x30] sm:$0xff] }
 0x17d   : > { %v1638_v6 = vpop.f32.mrf.mxu3  ;;  %4555 = vmatmul.msk.bf16.gmra.mxu2 %vm687_vm4, %v4656_v51  ;;  %v1016_v31 = vpop.f32.mrf.mxu1  ;;  %v3036_v51 = vrot.slane %v3035_v3, 4  ;;  %v3052_v3 = vshll.u32 %v5636_v38, 16  ;;  %v3360_v7 = vunpack.c.l.b16 %v3031_v32  ;;  %v3058_v29 = vrot.slane %v3056_v16, 4 }
 0x17e   : > { %v1693_v59 = vadd.f32 %v1638_v6, %v1387_v53  ;;  %v3608_v53 = vrot.slane %v5590_v27, 5  ;;  %v4589_v27 = vrot.slane %v5587_v37, 9  ;;  %v1017_v50 = vadd.f32 %v1016_v31, %v5250_v33 }
 0x17f   : > { %v3041_v6 = vsel %vm4876_vm3, %v3036_v51, %v3040_v9  ;;  %v3045_v31 = vrot.slane %v3043_v61, 4 }
 0x180   : > { %v1335_v4 = vpop.f32.mrf.mxu2  ;;  %v5638_v0 = vadd.f32 %v2244_v23, %v1693_v59  ;;  %v3610_v59 = vrot.slane %v3608_v53, 4  ;;  %v3361_v51 = vunpack.c.l.b16 %v3041_v6  ;;  %v3609_v9 = vsel %vm5078_vm7, %v4589_v27, %v3608_v53 }
 0x181   : > { %v1388_v1 = vadd.f32 %v1335_v4, %v1015_v47  ;;  %v4737_v47 = vld [vmem:[%s4864_s29 + $0x38] sm:$0x1]  ;;  %v4738_v4 = vld [vmem:[%s4864_s29 + $0x30] sm:$0xf]  ;;  %v3710_v27 = vunpack.c.l.b16 %v3609_v9 }
 0x182   : > { %4572 = vmatmul.msk.bf16.gmra.mxu3 %vm687_vm4, %v3389_v12  ;;  %v3611_v12 = vrot.slane %v5617_v22, 5  ;;  %v2356_v39 = vrot.slane %v4737_v47, 5  ;;  %v4411_v42 = vrot.slane %v4738_v4, 9  ;;  %v3048_v22 = vrot.slane %v3046_v20, 5  ;;  %v5677_v4 = vld [vmem:[%s4864_s29 + $0x48] sm:$0xf] }
 0x184   : > { %v2247_v19 = vpop.f32.mrf.mxu0  ;;  %v2354_v32 = vsel %vm5078_vm7, %v4411_v42, %v2353_v8  ;;  %v2357_v6 = vsel %vm5078_vm7, %v2355_v21, %v2356_v39  ;;  %v5680_v42 = vld [vmem:[%s4864_s29 + $0x4c] sm:$0xf] }
 0x185   : > { %v1641_v15 = vpop.f32.mrf.mxu3  ;;  %v1019_v54 = vpop.f32.mrf.mxu1 }
 0x186   : > { %v1694_v23 = vadd.f32 %v1641_v15, %v1388_v1  ;;  %v1020_v8 = vadd.f32 %v1019_v54, %v5272_v63  ;;  %v3615_v63 = vrot.slane %v5636_v38, 5  ;;  %v4590_v38 = vrot.slane %v5632_v57, 9 }
 0x187   : > { %4605 = vmatmul.msk.bf16.gmra.mxu0 %vm687_vm4, %v3739_v62  ;;  %v5661_v62 = vrot.slane %v3052_v3, 5  ;;  %v3049_v3 = vor.u32 %v3048_v22, %v3045_v31  ;;  %v3067_v31 = vshrl.u32 %v5677_v4, 16  ;;  %v3070_v22 = vshll.u32 %v5677_v4, 16 }
 0x188   : > { %v1337_v37 = vpop.f32.mrf.mxu2  ;;  %4427 = vmatmul.msk.bf16.gmra.mxu1 %vm687_vm4, %v2478_v45  ;;  %v5659_v33 = vadd.f32 %v2247_v19, %v1694_v23  ;;  %v3612_v45 = vsel %vm5078_vm7, %v3610_v59, %v3611_v12  ;;  %v3390_v19 = vpack.c.b16 %v3361_v51, %v3360_v7  ;;  %v2450_v59 = vunpack.c.l.b16 %v2354_v32 }
 0x189   : > { %v1389_v1 = vadd.f32 %v1337_v37, %v1017_v50  ;;  %v5670_v50 = vld [vmem:[%s4864_s29 + $0x44] sm:$0x1]  ;;  %v3711_v20 = vunpack.c.l.b16 %v3612_v45  ;;  %v3059_v16 = vor.u32 %v3058_v29, %v5661_v62  ;;  %v2451_v12 = vunpack.c.l.b16 %v2357_v6 }
 0x18a   : > { %v3062_v47 = vshll.u32 %v5670_v50, 16  ;;  %v3050_v21 = vrot.slane %v3049_v3, 4  ;;  %v3076_v29 = vshll.u32 %v5680_v42, 16  ;;  %v3080_v45 = vshrl.u32 %v5680_v42, 16 }
 0x18b   : > { %v3740_v7 = vpack.c.b16 %v3711_v20, %v3710_v27  ;;  %v4740_v27 = vld [vmem:[%s4864_s29 + $0x44] sm:$0x1]  ;;  %v3072_v57 = vrot.slane %v3070_v22, 5 }
 0x18c   : > { %v2249_v15 = vpop.f32.mrf.mxu0  ;;  %v3064_v51 = vrot.slane %v3062_v47, 5  ;;  %v2363_v20 = vrot.slane %v4740_v27, 5  ;;  %v3069_v47 = vrot.slane %v3067_v31, 4  ;;  %v5707_v27 = vld [vmem:[%s4864_s29 + $0x50] sm:$0x1] }
 0x18d   : > { %v1643_v53 = vpop.f32.mrf.mxu3  ;;  %4556 = vmatmul.msk.bf16.gmra.mxu2 %vm687_vm4, %v4657_v41  ;;  %v1021_v61 = vpop.f32.mrf.mxu1  ;;  %v2479_v41 = vpack.c.b16 %v2451_v12, %v2450_v59  ;;  %v3617_v59 = vrot.slane %v3615_v63, 4 }
 0x18e   : > { %v1695_v23 = vadd.f32 %v1643_v53, %v1389_v1  ;;  %v3060_v1 = vrot.slane %v3059_v16, 4  ;;  %v4739_v53 = vld [vmem:[%s4864_s29 + $0x40] sm:$0xf]  ;;  %v3055_v16 = vsel %vm4876_vm3, %v3050_v21, %v5661_v62  ;;  %v3073_v31 = vor.u32 %v3072_v57, %v3069_v47 }
 0x18f   : > { %v3362_v62 = vunpack.c.l.b16 %v3055_v16 }
 0x190   : > { %v1340_v39 = vpop.f32.mrf.mxu2  ;;  %v5684_v54 = vadd.f32 %v2249_v15, %v1695_v23  ;;  %v3618_v15 = vrot.slane %v5670_v50, 5  ;;  %v1022_v23 = vadd.f32 %v1021_v61, %v5291_v44  ;;  %v3082_v50 = vrot.slane %v3080_v45, 4 }
 0x191   : > { %v1390_v37 = vadd.f32 %v1340_v39, %v1020_v8  ;;  %v3065_v8 = vsel %vm4876_vm3, %v3060_v1, %v3064_v51  ;;  %v3078_v39 = vrot.slane %v3076_v29, 5  ;;  %v3616_v51 = vsel %vm5078_vm7, %v4590_v38, %v3615_v63 }
 0x192   : > { %4573 = vmatmul.msk.bf16.gmra.mxu3 %vm687_vm4, %v3390_v19  ;;  %v2360_v19 = vrot.slane %v4739_v53, 5  ;;  %v3363_v21 = vunpack.c.l.b16 %v3065_v8 }
 0x194   : > { %v2252_v9 = vpop.f32.mrf.mxu0  ;;  %v2362_v61 = vrot.slane %v2360_v19, 4  ;;  %v3391_v63 = vpack.c.b16 %v3363_v21, %v3362_v62  ;;  %v4742_v62 = vld [vmem:[%s4864_s29 + $0x4c] sm:$0xf] }
 0x195   : > { %v1646_v32 = vpop.f32.mrf.mxu3  ;;  %v1024_v6 = vpop.f32.mrf.mxu1  ;;  %v2367_v21 = vrot.slane %v4742_v62, 5 }
 0x196   : > { %v1696_v3 = vadd.f32 %v1646_v32, %v1390_v37  ;;  %v4741_v32 = vld [vmem:[%s4864_s29 + $0x3c] sm:$0xf]  ;;  %v2364_v45 = vsel %vm5078_vm7, %v2362_v61, %v2363_v20  ;;  %v1025_v38 = vadd.f32 %v1024_v6, %v5312_v11  ;;  %v5722_v20 = vld [vmem:[%s4864_s29 + $0x54] sm:$0xf] }
 0x197   : > { %4606 = vmatmul.msk.bf16.gmra.mxu0 %vm687_vm4, %v3740_v7  ;;  %v4658_v7 = vld [vmem:[%s4864_s29 + $0x3c] sm:$0xff]  ;;  %v4412_v44 = vrot.slane %v4741_v32, 9  ;;  %v2453_v47 = vunpack.c.l.b16 %v2364_v45  ;;  %v3094_v45 = vshll.u32 %v5722_v20, 16 }
 0x198   : > { %v1342_v12 = vpop.f32.mrf.mxu2  ;;  %4428 = vmatmul.msk.bf16.gmra.mxu1 %vm687_vm4, %v2479_v41  ;;  %v5704_v53 = vadd.f32 %v2252_v9, %v1696_v3  ;;  %v3619_v41 = vsel %vm5078_vm7, %v3617_v59, %v3618_v15  ;;  %v3083_v3 = vor.u32 %v3082_v50, %v3078_v39  ;;  %v3712_v15 = vunpack.c.l.b16 %v3616_v51 }
 0x199   : > { %v1391_v37 = vadd.f32 %v1342_v12, %v1022_v23  ;;  %v2361_v9 = vsel %vm5078_vm7, %v4412_v44, %v2360_v19  ;;  %v3086_v23 = vshll.u32 %v5707_v27, 16  ;;  %v3713_v8 = vunpack.c.l.b16 %v3619_v41  ;;  %v5726_v44 = vld [vmem:[%s4864_s29 + $0x58] sm:$0xf] }
 0x19a   : > { %v2452_v12 = vunpack.c.l.b16 %v2361_v9  ;;  %v3074_v19 = vrot.slane %v3073_v31, 4  ;;  %v3091_v9 = vshrl.u32 %v5722_v20, 16 }
 0x19b   : > { %v3088_v32 = vrot.slane %v3086_v23, 5  ;;  %v3741_v50 = vpack.c.b16 %v3713_v8, %v3712_v15  ;;  %v3104_v23 = vshrl.u32 %v5726_v44, 16 }
 0x19c   : > { %v2254_v1 = vpop.f32.mrf.mxu0  ;;  %v2480_v61 = vpack.c.b16 %v2453_v47, %v2452_v12  ;;  %v3079_v31 = vsel %vm4876_vm3, %v3074_v19, %v3078_v39  ;;  %v2369_v47 = vrot.slane %v2367_v21, 4  ;;  %v4659_v19 = vld [vmem:[%s4864_s29 + $0x48] sm:$0xff] }
 0x19d   : > { %v1648_v22 = vpop.f32.mrf.mxu3  ;;  %4557 = vmatmul.msk.bf16.gmra.mxu2 %vm687_vm4, %v4658_v7  ;;  %v1026_v29 = vpop.f32.mrf.mxu1  ;;  %v3084_v7 = vrot.slane %v3083_v3, 4  ;;  %v3100_v3 = vshll.u32 %v5726_v44, 16  ;;  %v3364_v8 = vunpack.c.l.b16 %v3079_v31  ;;  %v3106_v62 = vrot.slane %v3104_v23, 4 }
 0x19e   : > { %v1697_v16 = vadd.f32 %v1648_v22, %v1391_v37  ;;  %v3622_v37 = vrot.slane %v5680_v42, 5  ;;  %v4591_v42 = vrot.slane %v5677_v4, 9  ;;  %v1027_v39 = vadd.f32 %v1026_v29, %v5327_v43 }
 0x19f   : > { %v3089_v22 = vsel %vm4876_vm3, %v3084_v7, %v3088_v32  ;;  %v3093_v29 = vrot.slane %v3091_v9, 4 }
 0x1a0   : > { %v1345_v59 = vpop.f32.mrf.mxu2  ;;  %v5728_v11 = vadd.f32 %v2254_v1, %v1697_v16  ;;  %v3624_v16 = vrot.slane %v3622_v37, 4  ;;  %v3365_v7 = vunpack.c.l.b16 %v3089_v22  ;;  %v3623_v32 = vsel %vm5078_vm7, %v4591_v42, %v3622_v37 }
 0x1a1   : > { %v1392_v57 = vadd.f32 %v1345_v59, %v1025_v38  ;;  %v4743_v38 = vld [vmem:[%s4864_s29 + $0x50] sm:$0x1]  ;;  %v4744_v59 = vld [vmem:[%s4864_s29 + $0x48] sm:$0xf]  ;;  %v3714_v42 = vunpack.c.l.b16 %v3623_v32 }
 0x1a2   : > { %4574 = vmatmul.msk.bf16.gmra.mxu3 %vm687_vm4, %v3391_v63  ;;  %v3625_v63 = vrot.slane %v5707_v27, 5  ;;  %v2370_v15 = vrot.slane %v4743_v38, 5  ;;  %v4413_v12 = vrot.slane %v4744_v59, 9  ;;  %v3096_v27 = vrot.slane %v3094_v45, 5  ;;  %v5767_v59 = vld [vmem:[%s4864_s29 + $0x60] sm:$0xf] }
 0x1a4   : > { %v2257_v6 = vpop.f32.mrf.mxu0  ;;  %v2368_v31 = vsel %vm5078_vm7, %v4413_v12, %v2367_v21  ;;  %v2371_v22 = vsel %vm5078_vm7, %v2369_v47, %v2370_v15  ;;  %v5770_v12 = vld [vmem:[%s4864_s29 + $0x64] sm:$0xf] }
 0x1a5   : > { %v1651_v51 = vpop.f32.mrf.mxu3  ;;  %v1029_v41 = vpop.f32.mrf.mxu1 }
 0x1a6   : > { %v1698_v1 = vadd.f32 %v1651_v51, %v1392_v57  ;;  %v1030_v21 = vadd.f32 %v1029_v41, %v5199_v5  ;;  %v3629_v5 = vrot.slane %v5726_v44, 5  ;;  %v4592_v44 = vrot.slane %v5722_v20, 9 }
 0x1a7   : > { %4607 = vmatmul.msk.bf16.gmra.mxu0 %vm687_vm4, %v3741_v50  ;;  %v5751_v50 = vrot.slane %v3100_v3, 5  ;;  %v3097_v3 = vor.u32 %v3096_v27, %v3093_v29  ;;  %v3115_v29 = vshrl.u32 %v5767_v59, 16  ;;  %v3118_v27 = vshll.u32 %v5767_v59, 16 }
 0x1a8   : > { %v1347_v4 = vpop.f32.mrf.mxu2  ;;  %4429 = vmatmul.msk.bf16.gmra.mxu1 %vm687_vm4, %v2480_v61  ;;  %v5749_v43 = vadd.f32 %v2257_v6, %v1698_v1  ;;  %v3626_v61 = vsel %vm5078_vm7, %v3624_v16, %v3625_v63  ;;  %v3392_v6 = vpack.c.b16 %v3365_v7, %v3364_v8  ;;  %v2454_v16 = vunpack.c.l.b16 %v2368_v31 }
 0x1a9   : > { %v1393_v57 = vadd.f32 %v1347_v4, %v1027_v39  ;;  %v5760_v39 = vld [vmem:[%s4864_s29 + $0x5c] sm:$0x1]  ;;  %v3715_v45 = vunpack.c.l.b16 %v3626_v61  ;;  %v3107_v23 = vor.u32 %v3106_v62, %v5751_v50  ;;  %v2455_v63 = vunpack.c.l.b16 %v2371_v22 }
 0x1aa   : > { %v3110_v38 = vshll.u32 %v5760_v39, 16  ;;  %v3098_v47 = vrot.slane %v3097_v3, 4  ;;  %v3124_v62 = vshll.u32 %v5770_v12, 16  ;;  %v3128_v61 = vshrl.u32 %v5770_v12, 16 }
 0x1ab   : > { %v3742_v8 = vpack.c.b16 %v3715_v45, %v3714_v42  ;;  %v4746_v42 = vld [vmem:[%s4864_s29 + $0x5c] sm:$0x1]  ;;  %v3120_v20 = vrot.slane %v3118_v27, 5 }
 0x1ac   : > { %v2259_v51 = vpop.f32.mrf.mxu0  ;;  %v3112_v7 = vrot.slane %v3110_v38, 5  ;;  %v2377_v45 = vrot.slane %v4746_v42, 5  ;;  %v3117_v38 = vrot.slane %v3115_v29, 4  ;;  %v5797_v42 = vld [vmem:[%s4864_s29 + $0x68] sm:$0x1] }
 0x1ad   : > { %v1653_v37 = vpop.f32.mrf.mxu3  ;;  %4558 = vmatmul.msk.bf16.gmra.mxu2 %vm687_vm4, %v4659_v19  ;;  %v1031_v9 = vpop.f32.mrf.mxu1  ;;  %v2481_v19 = vpack.c.b16 %v2455_v63, %v2454_v16  ;;  %v3631_v16 = vrot.slane %v3629_v5, 4 }
 0x1ae   : > { %v1699_v1 = vadd.f32 %v1653_v37, %v1393_v57  ;;  %v3108_v57 = vrot.slane %v3107_v23, 4  ;;  %v4745_v37 = vld [vmem:[%s4864_s29 + $0x58] sm:$0xf]  ;;  %v3103_v23 = vsel %vm4876_vm3, %v3098_v47, %v5751_v50  ;;  %v3121_v29 = vor.u32 %v3120_v20, %v3117_v38 }
 0x1af   : > { %v3366_v50 = vunpack.c.l.b16 %v3103_v23 }
 0x1b0   : > { %v1350_v15 = vpop.f32.mrf.mxu2  ;;  %v5774_v41 = vadd.f32 %v2259_v51, %v1699_v1  ;;  %v3632_v51 = vrot.slane %v5760_v39, 5  ;;  %v1032_v1 = vadd.f32 %v1031_v9, %v5222_v24  ;;  %v3130_v39 = vrot.slane %v3128_v61, 4 }
 0x1b1   : > { %v1394_v4 = vadd.f32 %v1350_v15, %v1030_v21  ;;  %v3113_v21 = vsel %vm4876_vm3, %v3108_v57, %v3112_v7  ;;  %v3126_v15 = vrot.slane %v3124_v62, 5  ;;  %v3630_v7 = vsel %vm5078_vm7, %v4592_v44, %v3629_v5 }
 0x1b2   : > { %4575 = vmatmul.msk.bf16.gmra.mxu3 %vm687_vm4, %v3392_v6  ;;  %v2374_v6 = vrot.slane %v4745_v37, 5  ;;  %v3367_v47 = vunpack.c.l.b16 %v3113_v21  ;;  %v3716_v23 = vunpack.c.l.b16 %v3630_v7 }
 0x1b4   : > { %v2262_v32 = vpop.f32.mrf.mxu0  ;;  %v2376_v9 = vrot.slane %v2374_v6, 4  ;;  %v3393_v44 = vpack.c.b16 %v3367_v47, %v3366_v50 }
 0x1b5   : > { %v1656_v31 = vpop.f32.mrf.mxu3  ;;  %v1034_v22 = vpop.f32.mrf.mxu1 }
 0x1b6   : > { %v1700_v3 = vadd.f32 %v1656_v31, %v1394_v4  ;;  %v4747_v31 = vld [vmem:[%s4864_s29 + $0x54] sm:$0xf]  ;;  %v2378_v61 = vsel %vm5078_vm7, %v2376_v9, %v2377_v45  ;;  %v5812_v45 = vld [vmem:[%s4864_s29 + $0x6c] sm:$0xf]  ;;  %v3636_v9 = vrot.slane %v5770_v12, 5 }
 0x1b7   : > { %4608 = vmatmul.msk.bf16.gmra.mxu0 %vm687_vm4, %v3742_v8  ;;  %v4660_v8 = vld [vmem:[%s4864_s29 + $0x54] sm:$0xff]  ;;  %v4414_v24 = vrot.slane %v4747_v31, 9  ;;  %v2457_v38 = vunpack.c.l.b16 %v2378_v61 }
 0x1b8   : > { %v1352_v63 = vpop.f32.mrf.mxu2  ;;  %4430 = vmatmul.msk.bf16.gmra.mxu1 %vm687_vm4, %v2481_v19  ;;  %v5794_v37 = vadd.f32 %v2262_v32, %v1700_v3  ;;  %v3633_v19 = vsel %vm5078_vm7, %v3631_v16, %v3632_v51  ;;  %v3131_v3 = vor.u32 %v3130_v39, %v3126_v15  ;;  %v1035_v51 = vadd.f32 %v1034_v22, %v5242_v18 }
 0x1b9   : > { %v1395_v4 = vadd.f32 %v1352_v63, %v1032_v1  ;;  %v2375_v32 = vsel %vm5078_vm7, %v4414_v24, %v2374_v6  ;;  %v3134_v1 = vshll.u32 %v5797_v42, 16  ;;  %v3717_v21 = vunpack.c.l.b16 %v3633_v19  ;;  %v5815_v24 = vld [vmem:[%s4864_s29 + $0x70] sm:$0xf] }
 0x1ba   : > { %v2456_v63 = vunpack.c.l.b16 %v2375_v32  ;;  %v3122_v6 = vrot.slane %v3121_v29, 4  ;;  %v4748_v29 = vld [vmem:[%s4864_s29 + $0x64] sm:$0xf]  ;;  %v3139_v32 = vshrl.u32 %v5812_v45, 16  ;;  %v3152_v12 = vshrl.u32 %v5815_v24, 16 }
 0x1bb   : > { %v3136_v31 = vrot.slane %v3134_v1, 5  ;;  %v3743_v39 = vpack.c.b16 %v3717_v21, %v3716_v23  ;;  %v4749_v1 = vld [vmem:[%s4864_s29 + $0x68] sm:$0x1] }
 0x1bc   : > { %v2264_v57 = vpop.f32.mrf.mxu0  ;;  %v2482_v22 = vpack.c.b16 %v2457_v38, %v2456_v63  ;;  %v3127_v7 = vsel %vm4876_vm3, %v3122_v6, %v3126_v15  ;;  %v3639_v63 = vrot.slane %v5797_v42, 5  ;;  %v4750_v6 = vld [vmem:[%s4864_s29 + $0x60] sm:$0xf] }
 0x1bd   : > { %v1658_v27 = vpop.f32.mrf.mxu3  ;;  %4559 = vmatmul.msk.bf16.gmra.mxu2 %vm687_vm4, %v4660_v8  ;;  %v1036_v62 = vpop.f32.mrf.mxu1  ;;  %v3132_v8 = vrot.slane %v3131_v3, 4  ;;  %v3148_v3 = vshll.u32 %v5815_v24, 16  ;;  %v3368_v23 = vunpack.c.l.b16 %v3127_v7 }
 0x1be   : > { %v1701_v5 = vadd.f32 %v1658_v27, %v1395_v4  ;;  %v2381_v27 = vrot.slane %v4748_v29, 5  ;;  %v1037_v15 = vadd.f32 %v1036_v62, %v5260_v25  ;;  %v5840_v29 = vld [vmem:[%s4864_s29 + $0x74] sm:$0x1] }
 0x1bf   : > { %v3137_v19 = vsel %vm4876_vm3, %v3132_v8, %v3136_v31  ;;  %v4415_v8 = vrot.slane %v4750_v6, 9  ;;  %v3150_v62 = vrot.slane %v3148_v3, 5 }
 0x1c0   : > { %v1355_v16 = vpop.f32.mrf.mxu2  ;;  %v5817_v4 = vadd.f32 %v2264_v57, %v1701_v5  ;;  %v3142_v57 = vshll.u32 %v5812_v45, 16  ;;  %v2384_v5 = vrot.slane %v4749_v1, 5  ;;  %v3369_v21 = vunpack.c.l.b16 %v3137_v19 }
 0x1c1   : > { %v1396_v20 = vadd.f32 %v1355_v16, %v1035_v51  ;;  %v3638_v16 = vrot.slane %v3636_v9, 4  ;;  %v2383_v31 = vrot.slane %v2381_v27, 4 }
 0x1c2   : > { %4576 = vmatmul.msk.bf16.gmra.mxu3 %vm687_vm4, %v3393_v44  ;;  %v4593_v44 = vrot.slane %v5767_v59, 9  ;;  %v3144_v25 = vrot.slane %v3142_v57, 5  ;;  %v3154_v59 = vrot.slane %v3152_v12, 4  ;;  %v3394_v19 = vpack.c.b16 %v3369_v21, %v3368_v23 }
 0x1c3   : > { %v3640_v42 = vsel %vm5078_vm7, %v3638_v16, %v3639_v63 }
 0x1c4   : > { %v2267_v18 = vpop.f32.mrf.mxu0  ;;  %v3155_v12 = vor.u32 %v3154_v59, %v3150_v62 }
 0x1c5   : > { %v1661_v50 = vpop.f32.mrf.mxu3  ;;  %v1039_v47 = vpop.f32.mrf.mxu1 }
 0x1c6   : > { %v1702_v61 = vadd.f32 %v1661_v50, %v1396_v20  ;;  %v4661_v20 = vld [vmem:[%s4864_s29 + $0x60] sm:$0xff] }
 0x1c7   : > { %4609 = vmatmul.msk.bf16.gmra.mxu0 %vm687_vm4, %v3743_v39  ;;  %v3141_v39 = vrot.slane %v3139_v32, 4  ;;  %v2382_v32 = vsel %vm5078_vm7, %v4415_v8, %v2381_v27  ;;  %v3643_v8 = vrot.slane %v5815_v24, 5 }
 0x1c8   : > { %v1357_v51 = vpop.f32.mrf.mxu2  ;;  %4431 = vmatmul.msk.bf16.gmra.mxu1 %vm687_vm4, %v2482_v22  ;;  %v5837_v50 = vadd.f32 %v2267_v18, %v1702_v61  ;;  %v3637_v22 = vsel %vm5078_vm7, %v4593_v44, %v3636_v9  ;;  %v2385_v61 = vsel %vm5078_vm7, %v2383_v31, %v2384_v5  ;;  %v3158_v9 = vshll.u32 %v5840_v29, 16 }
 0x1c9   : > { %v1397_v38 = vadd.f32 %v1357_v51, %v1037_v15  ;;  %v3145_v3 = vor.u32 %v3144_v25, %v3141_v39  ;;  %v1040_v15 = vadd.f32 %v1039_v47, %v5281_v49  ;;  %v3718_v44 = vunpack.c.l.b16 %v3637_v22  ;;  %v5861_v39 = vld [vmem:[%s4864_s29 + $0x7c] sm:$0xf] }
 0x1ca   : > { %v3719_v51 = vunpack.c.l.b16 %v3640_v42  ;;  %v2458_v63 = vunpack.c.l.b16 %v2382_v32  ;;  %v2459_v23 = vunpack.c.l.b16 %v2385_v61  ;;  %v3156_v5 = vrot.slane %v3155_v12, 4 }
 0x1cb   : > { %v3146_v27 = vrot.slane %v3145_v3, 4  ;;  %v3645_v12 = vrot.slane %v3643_v8, 4 }
 0x1cc   : > { %v2269_v1 = vpop.f32.mrf.mxu0  ;;  %v3744_v6 = vpack.c.b16 %v3719_v51, %v3718_v44  ;;  %v2483_v47 = vpack.c.b16 %v2459_v23, %v2458_v63  ;;  %v4752_v44 = vld [vmem:[%s4864_s29 + $0x6c] sm:$0xf] }
 0x1cd   : > { %v1663_v7 = vpop.f32.mrf.mxu3  ;;  %4560 = vmatmul.msk.bf16.gmra.mxu2 %vm687_vm4, %v4661_v20  ;;  %v1041_v18 = vpop.f32.mrf.mxu1  ;;  %v5854_v20 = vld [vmem:[%s4864_s29 + $0x78] sm:$0xf]  ;;  %v3151_v24 = vsel %vm4876_vm3, %v3146_v27, %v3150_v62  ;;  %v4416_v62 = vrot.slane %v4752_v44, 9  ;;  %v4662_v23 = vld [vmem:[%s4864_s29 + $0x6c] sm:$0xff] }
 0x1ce   : > { %v1703_v57 = vadd.f32 %v1663_v7, %v1397_v38  ;;  %v3160_v38 = vrot.slane %v3158_v9, 5  ;;  %v3163_v25 = vshrl.u32 %v5854_v20, 16  ;;  %v3166_v59 = vshll.u32 %v5854_v20, 16 }
 0x1cf   : > { %v4594_v7 = vrot.slane %v5812_v45, 9  ;;  %v1042_v3 = vadd.f32 %v1041_v18, %v5300_v30  ;;  %v3172_v45 = vshll.u32 %v5861_v39, 16  ;;  %v3176_v9 = vshrl.u32 %v5861_v39, 16 }
 0x1d0   : > { %v1360_v16 = vpop.f32.mrf.mxu2  ;;  %v5858_v31 = vadd.f32 %v2269_v1, %v1703_v57  ;;  %v3161_v1 = vsel %vm4876_vm3, %v3156_v5, %v3160_v38  ;;  %v3646_v57 = vrot.slane %v5840_v29, 5  ;;  %v3165_v51 = vrot.slane %v3163_v25, 4  ;;  %v4467_v25 = vld [vmem:[%s4864_s29 + $0x80] sm:$0x1] }
 0x1d1   : > { %v1398_v21 = vadd.f32 %v1360_v16, %v1040_v15  ;;  %v3168_v16 = vrot.slane %v3166_v59, 5  ;;  %v3370_v30 = vunpack.c.l.b16 %v3151_v24  ;;  %v3371_v18 = vunpack.c.l.b16 %v3161_v1 }
 0x1d2   : > { %4577 = vmatmul.msk.bf16.gmra.mxu3 %vm687_vm4, %v3394_v19  ;;  %v4751_v19 = vld [vmem:[%s4864_s29 + $0x70] sm:$0xf]  ;;  %v3644_v38 = vsel %vm5078_vm7, %v4594_v7, %v3643_v8 }
 0x1d3   : > { %v2388_v32 = vrot.slane %v4751_v19, 5  ;;  %v3169_v59 = vor.u32 %v3168_v16, %v3165_v51  ;;  %v3395_v7 = vpack.c.b16 %v3371_v18, %v3370_v30  ;;  %v3720_v24 = vunpack.c.l.b16 %v3644_v38 }
 0x1d4   : > { %v2272_v49 = vpop.f32.mrf.mxu0 }
 0x1d5   : > { %v1666_v22 = vpop.f32.mrf.mxu3  ;;  %v1044_v42 = vpop.f32.mrf.mxu1  ;;  %v2390_v29 = vrot.slane %v2388_v32, 4  ;;  %v3170_v16 = vrot.slane %v3169_v59, 4 }
 0x1d6   : > { %v1704_v61 = vadd.f32 %v1666_v22, %v1398_v21  ;;  %v4753_v21 = vld [vmem:[%s4864_s29 + $0x74] sm:$0x1]  ;;  %v3178_v22 = vrot.slane %v3176_v9, 4 }
 0x1d7   : > { %4610 = vmatmul.msk.bf16.gmra.mxu0 %vm687_vm4, %v3744_v6  ;;  %v2391_v27 = vrot.slane %v4753_v21, 5  ;;  %v3647_v6 = vsel %vm5078_vm7, %v3645_v12, %v3646_v57  ;;  %v1045_v57 = vadd.f32 %v1044_v42, %v5323_v58  ;;  %v5894_v21 = vld [vmem:[%s4864_s29 + $0x84] sm:$0xf]  ;;  %v5900_v58 = vld [vmem:[%s4864_s29 + $0x88] sm:$0xf] }
 0x1d8   : > { %v1362_v15 = vpop.f32.mrf.mxu2  ;;  %4432 = vmatmul.msk.bf16.gmra.mxu1 %vm687_vm4, %v2483_v47  ;;  %v5880_v5 = vadd.f32 %v2272_v49, %v1704_v61  ;;  %v3174_v47 = vrot.slane %v3172_v45, 5  ;;  %v2389_v49 = vsel %vm5078_vm7, %v4416_v62, %v2388_v32  ;;  %v3721_v1 = vunpack.c.l.b16 %v3647_v6 }
 0x1d9   : > { %v1399_v63 = vadd.f32 %v1362_v15, %v1042_v3  ;;  %v2392_v61 = vsel %vm5078_vm7, %v2390_v29, %v2391_v27  ;;  %v3182_v45 = vshll.u32 %v4467_v25, 16  ;;  %v2460_v44 = vunpack.c.l.b16 %v2389_v49  ;;  %v4754_v49 = vld [vmem:[%s4864_s29 + $0x7c] sm:$0xf] }
 0x1da   : > { %v3179_v12 = vor.u32 %v3178_v22, %v3174_v47  ;;  %v2461_v51 = vunpack.c.l.b16 %v2392_v61  ;;  %v3745_v32 = vpack.c.b16 %v3721_v1, %v3720_v24  ;;  %v3650_v62 = vrot.slane %v5861_v39, 5 }
 0x1db   : > { %v3184_v29 = vrot.slane %v3182_v45, 5  ;;  %v4595_v27 = vrot.slane %v5854_v20, 9  ;;  %v3175_v38 = vsel %vm4876_vm3, %v3170_v16, %v3174_v47  ;;  %v3187_v6 = vshrl.u32 %v5894_v21, 16  ;;  %v4663_v16 = vld [vmem:[%s4864_s29 + $0x78] sm:$0xff] }
 0x1dc   : > { %v2274_v19 = vpop.f32.mrf.mxu0  ;;  %v2484_v18 = vpack.c.b16 %v2461_v51, %v2460_v44  ;;  %v3190_v22 = vshll.u32 %v5894_v21, 16  ;;  %v2395_v61 = vrot.slane %v4754_v49, 5  ;;  %v3372_v1 = vunpack.c.l.b16 %v3175_v38 }
 0x1dd   : > { %v1668_v3 = vpop.f32.mrf.mxu3  ;;  %4561 = vmatmul.msk.bf16.gmra.mxu2 %vm687_vm4, %v4662_v23  ;;  %v1046_v15 = vpop.f32.mrf.mxu1 }
 0x1de   : > { %v1705_v8 = vadd.f32 %v1668_v3, %v1399_v63  ;;  %v3180_v63 = vrot.slane %v3179_v12, 4  ;;  %v3653_v3 = vrot.slane %v4467_v25, 5  ;;  %v1047_v47 = vadd.f32 %v1046_v15, %v5339_v60  ;;  %v4755_v12 = vld [vmem:[%s4864_s29 + $0x78] sm:$0xf] }
 0x1df   : > { %v3651_v25 = vsel %vm5078_vm7, %v4595_v27, %v3650_v62  ;;  %v4417_v45 = vrot.slane %v4755_v12, 9  ;;  %v3192_v44 = vrot.slane %v3190_v22, 5 }
 0x1e0   : > { %v1365_v9 = vpop.f32.mrf.mxu2  ;;  %v5902_v42 = vadd.f32 %v2274_v19, %v1705_v8  ;;  %v3196_v19 = vshll.u32 %v5900_v58, 16  ;;  %v3200_v8 = vshrl.u32 %v5900_v58, 16  ;;  %v3185_v24 = vsel %vm4876_vm3, %v3180_v63, %v3184_v29 }
 0x1e1   : > { %v1400_v23 = vadd.f32 %v1365_v9, %v1045_v57  ;;  %v3189_v9 = vrot.slane %v3187_v6, 4  ;;  %v3373_v63 = vunpack.c.l.b16 %v3185_v24  ;;  %v3722_v27 = vunpack.c.l.b16 %v3651_v25 }
 0x1e2   : > { %4578 = vmatmul.msk.bf16.gmra.mxu3 %vm687_vm4, %v3395_v7  ;;  %v3652_v7 = vrot.slane %v3650_v62, 4  ;;  %v3202_v38 = vrot.slane %v3200_v8, 4  ;;  %v3657_v24 = vrot.slane %v5900_v58, 5 }
 0x1e4   : > { %v2277_v30 = vpop.f32.mrf.mxu0  ;;  %v3654_v29 = vsel %vm5078_vm7, %v3652_v7, %v3653_v3  ;;  %v3193_v3 = vor.u32 %v3192_v44, %v3189_v9  ;;  %v3659_v58 = vrot.slane %v3657_v24, 4 }
 0x1e5   : > { %v1671_v59 = vpop.f32.mrf.mxu3  ;;  %v2552_v39 = vpop.f32.mrf.mxu1  ;;  %v3723_v6 = vunpack.c.l.b16 %v3654_v29 }
 0x1e6   : > { %v1706_v20 = vadd.f32 %v1671_v59, %v1400_v23  ;;  %v2397_v23 = vrot.slane %v2395_v61, 4  ;;  %v4470_v59 = vld [vmem:[%s4864_s29 + $0x8c] sm:$0x1] }
 0x1e7   : > { %4611 = vmatmul.msk.bf16.gmra.mxu0 %vm687_vm4, %v3745_v32  ;;  %v4756_v32 = vld [vmem:[%s4864_s29 + $0x80] sm:$0x1]  ;;  %v3746_v29 = vpack.c.b16 %v3723_v6, %v3722_v27 }
 0x1e8   : > { %v1367_v57 = vpop.f32.mrf.mxu2  ;;  %4433 = vmatmul.msk.bf16.gmra.mxu1 %vm687_vm4, %v2484_v18  ;;  %v2398_v60 = vrot.slane %v4756_v32, 5  ;;  %v5921_v15 = vadd.f32 %v2277_v30, %v1706_v20  ;;  %v5925_v18 = vrot.slane %v3196_v19, 5  ;;  %v2396_v30 = vsel %vm5078_vm7, %v4417_v45, %v2395_v61  ;;  %v5937_v32 = vld [vmem:[%s4864_s29 + $0x90] sm:$0xf]  ;;  %v5940_v45 = vld [vmem:[%s4864_s29 + $0x94] sm:$0xf] }
 0x1e9   : > { %v1401_v51 = vadd.f32 %v1367_v57, %v1047_v47  ;;  %v3396_v19 = vpack.c.b16 %v3373_v63, %v3372_v1  ;;  %v3206_v47 = vshll.u32 %v4470_v59, 16  ;;  %v2632_v57 = vadd.f32 %v2552_v39, %v5357_v26 }
 0x1ea   : > { %v2399_v20 = vsel %vm5078_vm7, %v2397_v23, %v2398_v60  ;;  %v3203_v8 = vor.u32 %v3202_v38, %v5925_v18  ;;  %v2462_v12 = vunpack.c.l.b16 %v2396_v30  ;;  %v3194_v61 = vrot.slane %v3193_v3, 4  ;;  %v4757_v30 = vld [vmem:[%s4864_s29 + $0x88] sm:$0xf] }
 0x1eb   : > { %v3208_v44 = vrot.slane %v3206_v47, 5  ;;  %v3660_v23 = vrot.slane %v4470_v59, 5  ;;  %v3211_v26 = vshrl.u32 %v5937_v32, 16  ;;  %v3214_v38 = vshll.u32 %v5937_v32, 16  ;;  %v5954_v59 = vld [vmem:[%s6343_s2] ss:$0 sm:$0xff] }
 0x1ec   : > { %v2279_v62 = vpop.f32.mrf.mxu0  ;;  %v3204_v9 = vrot.slane %v3203_v8, 4  ;;  %v3220_v27 = vshll.u32 %v5940_v45, 16  ;;  %v3224_v3 = vshrl.u32 %v5940_v45, 16 }
 0x1ed   : > { %v1673_v49 = vpop.f32.mrf.mxu3  ;;  %4562 = vmatmul.msk.bf16.gmra.mxu2 %vm687_vm4, %v4663_v16  ;;  %v2554_v22 = vpop.f32.mrf.mxu1  ;;  %v2463_v16 = vunpack.c.l.b16 %v2399_v20  ;;  %v2402_v20 = vrot.slane %v4757_v30, 5  ;;  %v3661_v8 = vsel %vm5078_vm7, %v3659_v58, %v3660_v23  ;;  %v3213_v47 = vrot.slane %v3211_v26, 4 }
 0x1ee   : > { %v1707_v7 = vadd.f32 %v1673_v49, %v1401_v51  ;;  %v4596_v51 = vrot.slane %v5894_v21, 9 }
 0x1ef   : > { %v2485_v63 = vpack.c.b16 %v2463_v16, %v2462_v12  ;;  %v5969_v16 = vrot.slane %v3220_v27, 5  ;;  %v3725_v27 = vunpack.c.l.b16 %v3661_v8 }
 0x1f0   : > { %v2858_v25 = vpop.f32.mrf.mxu2  ;;  %v5945_v39 = vadd.f32 %v2279_v62, %v1707_v7  ;;  %v3199_v62 = vsel %vm4876_vm3, %v3194_v61, %v5925_v18  ;;  %v3209_v7 = vsel %vm4876_vm3, %v3204_v9, %v3208_v44  ;;  %v3216_v18 = vrot.slane %v3214_v38, 5  ;;  %v4758_v61 = vld [vmem:[%s4864_s29 + $0x84] sm:$0xf] }
 0x1f1   : > { %v2938_v1 = vadd.f32 %v2858_v25, %v2632_v57  ;;  %v2633_v25 = vadd.f32 %v2554_v22, %v5370_v2  ;;  %v2404_v9 = vrot.slane %v2402_v20, 4  ;;  %v3374_v26 = vunpack.c.l.b16 %v3199_v62  ;;  %v5981_v2 = vld [vmem:[%s4864_s29 + $0x98] sm:$0x1] }
 0x1f2   : > { %4579 = vmatmul.msk.bf16.gmra.mxu3 %vm687_vm4, %v3396_v19  ;;  %v3658_v19 = vsel %vm5078_vm7, %v4596_v51, %v3657_v24  ;;  %v4759_v24 = vld [vmem:[%s4864_s29 + $0x8c] sm:$0x1]  ;;  %v3226_v51 = vrot.slane %v3224_v3, 4  ;;  %v3217_v62 = vor.u32 %v3216_v18, %v3213_v47  ;;  %v3230_v8 = vshll.u32 %v5981_v2, 16 }
 0x1f3   : > { %v2405_v44 = vrot.slane %v4759_v24, 5  ;;  %v3724_v38 = vunpack.c.l.b16 %v3658_v19 }
 0x1f4   : > { %v3814_v60 = vpop.f32.mrf.mxu0  ;;  %v3218_v47 = vrot.slane %v3217_v62, 4  ;;  %v4760_v62 = vld [vmem:[%s4864_s29 + $0x94] sm:$0xf] }
 0x1f5   : > { %v3464_v49 = vpop.f32.mrf.mxu3  ;;  %v2557_v6 = vpop.f32.mrf.mxu1 }
 0x1f6   : > { %v3544_v21 = vadd.f32 %v3464_v49, %v2938_v1  ;;  %v4418_v1 = vrot.slane %v4758_v61, 9 }
 0x1f7   : > { %4612 = vmatmul.msk.bf16.gmra.mxu0 %vm687_vm4, %v3746_v29  ;;  %v4664_v29 = vld [vmem:[%s4864_s29 + $0x84] sm:$0xff] }
 0x1f8   : > { %v3894_v57 = vadd.f32 %v3814_v60, %v3544_v21  ;;  %v2860_v12 = vpop.f32.mrf.mxu2  ;;  %4434 = vmatmul.msk.bf16.gmra.mxu1 %vm687_vm4, %v2485_v63  ;;  %v3375_v60 = vunpack.c.l.b16 %v3209_v7  ;;  %v2403_v3 = vsel %vm5078_vm7, %v4418_v1, %v2402_v20  ;;  %v2406_v21 = vsel %vm5078_vm7, %v2404_v9, %v2405_v44  ;;  %v5997_v20 = vld [vmem:[%s4864_s29 + $0xa0] sm:$0xf] }
 0x1f9   : > { %v2939_v23 = vadd.f32 %v2860_v12, %v2633_v25  ;;  %v3227_v7 = vor.u32 %v3226_v51, %v5969_v16  ;;  %v2634_v12 = vadd.f32 %v2557_v6, %v5383_v35  ;;  %v2464_v61 = vunpack.c.l.b16 %v2403_v3 }
 0x1fa   : > { %v3930_v58 = vadd.f32 %v5954_v59, %v3894_v57  ;;  %v3397_v19 = vpack.c.b16 %v3375_v60, %v3374_v26  ;;  %v2465_v24 = vunpack.c.l.b16 %v2406_v21  ;;  %v3747_v1 = vpack.c.b16 %v3725_v27, %v3724_v38 }
 0x1fb   : > { %v3228_v18 = vrot.slane %v3227_v7, 4  ;;  %v3232_v51 = vrot.slane %v3230_v8, 5  ;;  %v3664_v35 = vrot.slane %v5940_v45, 5  ;;  %v3244_v26 = vshll.u32 %v5997_v20, 16 }
 0x1fc   : > { %v3962_v22 = vmax.f32 %v3930_v58, 0.0  ;;  %v3816_v63 = vpop.f32.mrf.mxu0  ;;  %v5994_v58 = vld [vmem:[%s4864_s29 + $0x9c] sm:$0xf]  ;;  %v3248_v60 = vshrl.u32 %v5997_v20, 16  ;;  %v2486_v38 = vpack.c.b16 %v2465_v24, %v2464_v61  ;;  %v4597_v3 = vrot.slane %v5937_v32, 9 }
 0x1fd   : > { %v3466_v49 = vpop.f32.mrf.mxu3  ;;  %4563 = vmatmul.msk.bf16.gmra.mxu2 %vm687_vm4, %v4664_v29  ;;  %v2559_v30 = vpop.f32.mrf.mxu1  ;;  %v3235_v6 = vshrl.u32 %v5994_v58, 16  ;;  %v3667_v21 = vrot.slane %v5981_v2, 5  ;;  %v2409_v45 = vrot.slane %v4760_v62, 5  ;;  %v3666_v8 = vrot.slane %v3664_v35, 4 }
 0x1fe   : > { %3995 = vst.msk [vmem:[%s5978_s19] sm:$0xff] %vm3994_vm8, %v3962_v22  ;;  %v3545_v57 = vadd.f32 %v3466_v49, %v2939_v23  ;;  %v3238_v23 = vshll.u32 %v5994_v58, 16  ;;  %v2635_v61 = vadd.f32 %v2559_v30, %v5396_v34  ;;  %v3665_v34 = vsel %vm5078_vm7, %v4597_v3, %v3664_v35 }
 0x1ff   : > { %v3237_v32 = vrot.slane %v3235_v6, 4  ;;  %v3668_v30 = vsel %vm5078_vm7, %v3666_v8, %v3667_v21  ;;  %v3726_v8 = vunpack.c.l.b16 %v3665_v34 }
 0x200   : > { %v3895_v25 = vadd.f32 %v3816_v63, %v3545_v57  ;;  %v2863_v29 = vpop.f32.mrf.mxu2  ;;  %v3223_v57 = vsel %vm4876_vm3, %v3218_v47, %v5969_v16  ;;  %v3240_v2 = vrot.slane %v3238_v23, 5  ;;  %v4665_v16 = vld [vmem:[%s4864_s29 + $0x90] sm:$0xff] }
 0x201   : > { %v2940_v44 = vadd.f32 %v2863_v29, %v2634_v12  ;;  %v3250_v12 = vrot.slane %v3248_v60, 4  ;;  %v3376_v47 = vunpack.c.l.b16 %v3223_v57 }
 0x202   : > { %v3931_v9 = vadd.f32 %v5954_v59, %v3895_v25  ;;  %4580 = vmatmul.msk.bf16.gmra.mxu3 %vm687_vm4, %v3397_v19  ;;  %v3233_v19 = vsel %vm4876_vm3, %v3228_v18, %v3232_v51  ;;  %v6017_v25 = vrot.slane %v3244_v26, 5  ;;  %v4761_v18 = vld [vmem:[%s4864_s29 + $0x90] sm:$0xf]  ;;  %v2411_v51 = vrot.slane %v2409_v45, 4 }
 0x203   : > { %v3377_v26 = vunpack.c.l.b16 %v3233_v19  ;;  %v3241_v60 = vor.u32 %v3240_v2, %v3237_v32  ;;  %v3727_v32 = vunpack.c.l.b16 %v3668_v30 }
 0x204   : > { %v3963_v22 = vmax.f32 %v3931_v9, 0.0  ;;  %v3819_v63 = vpop.f32.mrf.mxu0  ;;  %v6022_v9 = vld [vmem:[%s4864_s29 + $0xa4] sm:$0x1] }
 0x205   : > { %v3469_v27 = vpop.f32.mrf.mxu3  ;;  %v2562_v49 = vpop.f32.mrf.mxu1  ;;  %v3398_v21 = vpack.c.b16 %v3377_v26, %v3376_v47  ;;  %v3242_v2 = vrot.slane %v3241_v60, 4  ;;  %v3748_v47 = vpack.c.b16 %v3727_v32, %v3726_v8  ;;  %v3674_v60 = vrot.slane %v6022_v9, 5 }
 0x206   : > { %3996 = vst.msk [vmem:[%s5978_s19 + $0x8] sm:$0xff] %vm3994_vm8, %v3963_v22  ;;  %v3546_v7 = vadd.f32 %v3469_v27, %v2940_v44  ;;  %v4419_v44 = vrot.slane %v4761_v18, 9  ;;  %v4762_v22 = vld [vmem:[%s4864_s29 + $0x98] sm:$0x1] }
 0x207   : > { %4613 = vmatmul.msk.bf16.gmra.mxu0 %vm687_vm4, %v3747_v1  ;;  %v2412_v1 = vrot.slane %v4762_v22, 5  ;;  %v6044_v22 = vld [vmem:[%s4864_s29 + $0xa8] sm:$0xf] }
 0x208   : > { %v3896_v29 = vadd.f32 %v3819_v63, %v3546_v7  ;;  %v2865_v24 = vpop.f32.mrf.mxu2  ;;  %4435 = vmatmul.msk.bf16.gmra.mxu1 %vm687_vm4, %v2486_v38  ;;  %v3251_v63 = vor.u32 %v3250_v12, %v6017_v25  ;;  %v3254_v38 = vshll.u32 %v6022_v9, 16  ;;  %v2410_v19 = vsel %vm5078_vm7, %v4419_v44, %v2409_v45 }
 0x209   : > { %v2941_v23 = vadd.f32 %v2865_v24, %v2635_v61  ;;  %v2413_v35 = vsel %vm5078_vm7, %v2411_v51, %v2412_v1  ;;  %v3671_v61 = vrot.slane %v5997_v20, 5  ;;  %v2466_v18 = vunpack.c.l.b16 %v2410_v19 }
 0x20a   : > { %v3932_v6 = vadd.f32 %v5954_v59, %v3896_v29  ;;  %v3252_v12 = vrot.slane %v3251_v63, 4  ;;  %v3256_v29 = vrot.slane %v3254_v38, 5  ;;  %v2467_v44 = vunpack.c.l.b16 %v2413_v35 }
 0x20b   : > { %v3247_v20 = vsel %vm4876_vm3, %v3242_v2, %v6017_v25  ;;  %v3259_v63 = vshrl.u32 %v6044_v22, 16  ;;  %v3262_v25 = vshll.u32 %v6044_v22, 16 }
 0x20c   : > { %v3964_v27 = vmax.f32 %v3932_v6, 0.0  ;;  %v3821_v62 = vpop.f32.mrf.mxu0  ;;  %v3673_v6 = vrot.slane %v3671_v61, 4  ;;  %v2487_v30 = vpack.c.b16 %v2467_v44, %v2466_v18  ;;  %v3378_v9 = vunpack.c.l.b16 %v3247_v20  ;;  %v4765_v44 = vld [vmem:[%s4864_s29 + $0xa4] sm:$0x1]  ;;  %v6079_v20 = vld [vmem:[%s4864_s29 + $0xb0] sm:$0x1] }
 0x20d   : > { %v3471_v7 = vpop.f32.mrf.mxu3  ;;  %4564 = vmatmul.msk.bf16.gmra.mxu2 %vm687_vm4, %v4665_v16  ;;  %v2564_v57 = vpop.f32.mrf.mxu1  ;;  %v2636_v16 = vadd.f32 %v2562_v49, %v5409_v40  ;;  %v3257_v40 = vsel %vm4876_vm3, %v3252_v12, %v3256_v29  ;;  %v4598_v49 = vrot.slane %v5994_v58, 9  ;;  %v3261_v29 = vrot.slane %v3259_v63, 4 }
 0x20e   : > { %3997 = vst.msk [vmem:[%s5978_s19 + $0x10] sm:$0xff] %vm3994_vm8, %v3964_v27  ;;  %v3547_v3 = vadd.f32 %v3471_v7, %v2941_v23  ;;  %v6055_v23 = vld [vmem:[%s4864_s29 + $0xac] sm:$0xf]  ;;  %v2637_v32 = vadd.f32 %v2564_v57, %v5422_v14  ;;  %v3675_v12 = vsel %vm5078_vm7, %v3673_v6, %v3674_v60 }
 0x20f   : > { %v3268_v19 = vshll.u32 %v6055_v23, 16  ;;  %v3272_v35 = vshrl.u32 %v6055_v23, 16 }
 0x210   : > { %v3897_v24 = vadd.f32 %v3821_v62, %v3547_v3  ;;  %v2868_v45 = vpop.f32.mrf.mxu2  ;;  %v4763_v62 = vld [vmem:[%s4864_s29 + $0xa0] sm:$0xf]  ;;  %v3379_v3 = vunpack.c.l.b16 %v3257_v40 }
 0x211   : > { %v2942_v1 = vadd.f32 %v2868_v45, %v2636_v16  ;;  %v2416_v7 = vrot.slane %v4763_v62, 5  ;;  %v4764_v16 = vld [vmem:[%s4864_s29 + $0x9c] sm:$0xf]  ;;  %v6076_v14 = vrot.slane %v3268_v19, 5  ;;  %v3274_v57 = vrot.slane %v3272_v35, 4 }
 0x212   : > { %v3933_v51 = vadd.f32 %v5954_v59, %v3897_v24  ;;  %4581 = vmatmul.msk.bf16.gmra.mxu3 %vm687_vm4, %v3398_v21  ;;  %v3672_v21 = vsel %vm5078_vm7, %v4598_v49, %v3671_v61  ;;  %v4666_v24 = vld [vmem:[%s4864_s29 + $0x9c] sm:$0xff]  ;;  %v4420_v45 = vrot.slane %v4764_v16, 9  ;;  %v3278_v19 = vshll.u32 %v6079_v20, 16 }
 0x213   : > { %v2418_v18 = vrot.slane %v2416_v7, 4  ;;  %v3728_v6 = vunpack.c.l.b16 %v3672_v21 }
 0x214   : > { %v3965_v26 = vmax.f32 %v3933_v51, 0.0  ;;  %v3824_v34 = vpop.f32.mrf.mxu0  ;;  %v2419_v51 = vrot.slane %v4765_v44, 5  ;;  %v2417_v60 = vsel %vm5078_vm7, %v4420_v45, %v2416_v7  ;;  %v6095_v7 = vld [vmem:[%s4864_s29 + $0xb8] sm:$0xf]  ;;  %v3280_v45 = vrot.slane %v3278_v19, 5 }
 0x215   : > { %v3474_v38 = vpop.f32.mrf.mxu3  ;;  %v2567_v27 = vpop.f32.mrf.mxu1  ;;  %v3296_v44 = vshrl.u32 %v6095_v7, 16 }
 0x216   : > { %3998 = vst.msk [vmem:[%s5978_s19 + $0x18] sm:$0xff] %vm3994_vm8, %v3965_v26  ;;  %v3548_v58 = vadd.f32 %v3474_v38, %v2942_v1  ;;  %v2420_v63 = vsel %vm5078_vm7, %v2418_v18, %v2419_v51  ;;  %v2638_v21 = vadd.f32 %v2567_v27, %v5434_v17  ;;  %v3292_v18 = vshll.u32 %v6095_v7, 16 }
 0x217   : > { %4614 = vmatmul.msk.bf16.gmra.mxu0 %vm687_vm4, %v3748_v47  ;;  %v3264_v47 = vrot.slane %v3262_v25, 5  ;;  %v3399_v25 = vpack.c.b16 %v3379_v3, %v3378_v9 }
 0x218   : > { %v3898_v8 = vadd.f32 %v3824_v34, %v3548_v58  ;;  %v2870_v2 = vpop.f32.mrf.mxu2  ;;  %4436 = vmatmul.msk.bf16.gmra.mxu1 %vm687_vm4, %v2487_v30  ;;  %v3729_v34 = vunpack.c.l.b16 %v3675_v12  ;;  %v3275_v58 = vor.u32 %v3274_v57, %v6076_v14  ;;  %v6092_v12 = vld [vmem:[%s4864_s29 + $0xb4] sm:$0xf] }
 0x219   : > { %v2943_v1 = vadd.f32 %v2870_v2, %v2637_v32  ;;  %v3265_v38 = vor.u32 %v3264_v47, %v3261_v29  ;;  %v2468_v32 = vunpack.c.l.b16 %v2417_v60  ;;  %v2469_v2 = vunpack.c.l.b16 %v2420_v63 }
 0x21a   : > { %v3934_v61 = vadd.f32 %v5954_v59, %v3898_v8  ;;  %v3276_v3 = vrot.slane %v3275_v58, 4  ;;  %v3283_v17 = vshrl.u32 %v6092_v12, 16  ;;  %v3286_v27 = vshll.u32 %v6092_v12, 16 }
 0x21b   : > { %v3266_v29 = vrot.slane %v3265_v38, 4  ;;  %v4599_v63 = vrot.slane %v6044_v22, 9  ;;  %v4667_v22 = vld [vmem:[%s4864_s29 + $0xa8] sm:$0xff] }
 0x21c   : > { %v3966_v40 = vmax.f32 %v3934_v61, 0.0  ;;  %v3826_v49 = vpop.f32.mrf.mxu0  ;;  %v2488_v61 = vpack.c.b16 %v2469_v2, %v2468_v32  ;;  %v3281_v60 = vsel %vm4876_vm3, %v3276_v3, %v3280_v45  ;;  %v3288_v38 = vrot.slane %v3286_v27, 5  ;;  %v4767_v32 = vld [vmem:[%s4864_s29 + $0xa8] sm:$0xf] }
 0x21d   : > { %v3476_v26 = vpop.f32.mrf.mxu3  ;;  %4565 = vmatmul.msk.bf16.gmra.mxu2 %vm687_vm4, %v4666_v24  ;;  %v2569_v30 = vpop.f32.mrf.mxu1  ;;  %v3749_v24 = vpack.c.b16 %v3729_v34, %v3728_v6  ;;  %v3271_v34 = vsel %vm4876_vm3, %v3266_v29, %v6076_v14  ;;  %v4421_v2 = vrot.slane %v4767_v32, 9  ;;  %v4768_v29 = vld [vmem:[%s4864_s29 + $0xb0] sm:$0x1] }
 0x21e   : > { %3999 = vst.msk [vmem:[%s5978_s19 + $0x20] sm:$0xff] %vm3994_vm8, %v3966_v40  ;;  %v3549_v62 = vadd.f32 %v3476_v26, %v2943_v1  ;;  %v3678_v1 = vrot.slane %v6055_v23, 5  ;;  %v3285_v23 = vrot.slane %v3283_v17, 4  ;;  %v2639_v19 = vadd.f32 %v2569_v30, %v5447_v13 }
 0x21f   : > { %v3380_v45 = vunpack.c.l.b16 %v3271_v34  ;;  %v3381_v13 = vunpack.c.l.b16 %v3281_v60 }
 0x220   : > { %v3899_v35 = vadd.f32 %v3826_v49, %v3549_v62  ;;  %v2873_v8 = vpop.f32.mrf.mxu2  ;;  %v4766_v49 = vld [vmem:[%s4864_s29 + $0xac] sm:$0xf]  ;;  %v6114_v62 = vrot.slane %v3292_v18, 5  ;;  %v3680_v14 = vrot.slane %v3678_v1, 4  ;;  %v3679_v30 = vsel %vm5078_vm7, %v4599_v63, %v3678_v1 }
 0x221   : > { %v2944_v9 = vadd.f32 %v2873_v8, %v2638_v21  ;;  %v2423_v6 = vrot.slane %v4766_v49, 5  ;;  %v3681_v21 = vrot.slane %v6079_v20, 5  ;;  %v6120_v8 = vld [vmem:[%s4864_s29 + $0xbc] sm:$0x1]  ;;  %v3289_v17 = vor.u32 %v3288_v38, %v3285_v23 }
 0x222   : > { %v3935_v16 = vadd.f32 %v5954_v59, %v3899_v35  ;;  %4582 = vmatmul.msk.bf16.gmra.mxu3 %vm687_vm4, %v3399_v25  ;;  %v3298_v25 = vrot.slane %v3296_v44, 4  ;;  %v3302_v27 = vshll.u32 %v6120_v8, 16  ;;  %v3730_v34 = vunpack.c.l.b16 %v3679_v30  ;;  %v4769_v30 = vld [vmem:[%s4864_s29 + $0xb8] sm:$0xf] }
 0x223   : > { %v3290_v63 = vrot.slane %v3289_v17, 4  ;;  %v2430_v17 = vrot.slane %v4769_v30, 5 }
 0x224   : > { %v3967_v51 = vmax.f32 %v3935_v16, 0.0  ;;  %v3829_v47 = vpop.f32.mrf.mxu0  ;;  %v2426_v16 = vrot.slane %v4768_v29, 5  ;;  %v3299_v20 = vor.u32 %v3298_v25, %v6114_v62  ;;  %v3304_v38 = vrot.slane %v3302_v27, 5 }
 0x225   : > { %v3479_v57 = vpop.f32.mrf.mxu3  ;;  %v2572_v40 = vpop.f32.mrf.mxu1 }
 0x226   : > { %4000 = vst.msk [vmem:[%s5978_s19 + $0x28] sm:$0xff] %vm3994_vm8, %v3967_v51  ;;  %v3550_v26 = vadd.f32 %v3479_v57, %v2944_v9  ;;  %v3682_v51 = vsel %vm5078_vm7, %v3680_v14, %v3681_v21  ;;  %v2424_v57 = vsel %vm5078_vm7, %v4421_v2, %v2423_v6  ;;  %v3300_v23 = vrot.slane %v3299_v20, 4 }
 0x227   : > { %4615 = vmatmul.msk.bf16.gmra.mxu0 %vm687_vm4, %v3749_v24  ;;  %v2425_v24 = vrot.slane %v2423_v6, 4  ;;  %v3731_v60 = vunpack.c.l.b16 %v3682_v51  ;;  %v6141_v6 = vld [vmem:[%s4864_s29 + $0xc0] sm:$0xf]  ;;  %v3295_v2 = vsel %vm4876_vm3, %v3290_v63, %v6114_v62  ;;  %v4600_v51 = vrot.slane %v6092_v12, 9  ;;  %v4770_v63 = vld [vmem:[%s4864_s29 + $0xb4] sm:$0xf] }
 0x228   : > { %v3900_v58 = vadd.f32 %v3829_v47, %v3550_v26  ;;  %v2875_v35 = vpop.f32.mrf.mxu2  ;;  %4437 = vmatmul.msk.bf16.gmra.mxu1 %vm687_vm4, %v2488_v61  ;;  %v3400_v26 = vpack.c.b16 %v3381_v13, %v3380_v45  ;;  %v3310_v20 = vshll.u32 %v6141_v6, 16 }
 0x229   : > { %v2945_v3 = vadd.f32 %v2875_v35, %v2639_v19  ;;  %v2427_v1 = vsel %vm5078_vm7, %v2425_v24, %v2426_v16  ;;  %v2470_v35 = vunpack.c.l.b16 %v2424_v57  ;;  %v3750_v32 = vpack.c.b16 %v3731_v60, %v3730_v34  ;;  %v4668_v60 = vld [vmem:[%s4864_s29 + $0xb4] sm:$0xff] }
 0x22a   : > { %v3936_v9 = vadd.f32 %v5954_v59, %v3900_v58  ;;  %v2640_v58 = vadd.f32 %v2572_v40, %v5461_v52  ;;  %v2471_v14 = vunpack.c.l.b16 %v2427_v1  ;;  %v3685_v24 = vrot.slane %v6095_v7, 5  ;;  %v6150_v52 = vld [vmem:[%s4864_s29 + $0xc4] sm:$0xf] }
 0x22b   : > { %v3316_v62 = vshll.u32 %v6150_v52, 16  ;;  %v3320_v27 = vshrl.u32 %v6150_v52, 16 }
 0x22c   : > { %v3968_v18 = vmax.f32 %v3936_v9, 0.0  ;;  %v3831_v44 = vpop.f32.mrf.mxu0  ;;  %v2489_v16 = vpack.c.b16 %v2471_v14, %v2470_v35  ;;  %v3305_v9 = vsel %vm4876_vm3, %v3300_v23, %v3304_v38  ;;  %v4422_v23 = vrot.slane %v4770_v63, 9 }
 0x22d   : > { %v3481_v47 = vpop.f32.mrf.mxu3  ;;  %4566 = vmatmul.msk.bf16.gmra.mxu2 %vm687_vm4, %v4667_v22  ;;  %v2574_v61 = vpop.f32.mrf.mxu1  ;;  %v2432_v38 = vrot.slane %v2430_v17, 4  ;;  %v3318_v14 = vrot.slane %v3316_v62, 5 }
 0x22e   : > { %4001 = vst.msk [vmem:[%s5978_s19 + $0x30] sm:$0xff] %vm3994_vm8, %v3968_v18  ;;  %v3551_v49 = vadd.f32 %v3481_v47, %v2945_v3  ;;  %v3307_v3 = vshrl.u32 %v6141_v6, 16  ;;  %v3382_v18 = vunpack.c.l.b16 %v3295_v2  ;;  %v3687_v47 = vrot.slane %v3685_v24, 4 }
 0x22f   : > { %v2641_v1 = vadd.f32 %v2574_v61, %v5474_v28  ;;  %v3322_v28 = vrot.slane %v3320_v27, 4  ;;  %v6171_v61 = vld [vmem:[%s4864_s29 + $0xc8] sm:$0x1]  ;;  %v6352_v27 = vld [vmem:[#allocation2_spill] sm:$0xff] }
 0x230   : > { %v3901_v25 = vadd.f32 %v3831_v44, %v3551_v49  ;;  %v2878_v19 = vpop.f32.mrf.mxu2  ;;  %v3383_v44 = vunpack.c.l.b16 %v3305_v9  ;;  %v3309_v34 = vrot.slane %v3307_v3, 4 }
 0x231   : > { %v2946_v22 = vadd.f32 %v2878_v19, %v2640_v58  ;;  %v3312_v19 = vrot.slane %v3310_v20, 5  ;;  %v3323_v30 = vor.u32 %v3322_v28, %v3318_v14 }
 0x232   : > { %v3937_v21 = vadd.f32 %v5954_v59, %v3901_v25  ;;  %4583 = vmatmul.msk.bf16.gmra.mxu3 %vm687_vm4, %v3400_v26  ;;  %v3688_v26 = vrot.slane %v6120_v8, 5  ;;  %v4771_v25 = vld [vmem:[%s4864_s29 + $0xbc] sm:$0x1]  ;;  %v3686_v8 = vsel %vm5078_vm7, %v4600_v51, %v3685_v24  ;;  %v3326_v24 = vshll.u32 %v6171_v61, 16 }
 0x233   : > { %v2433_v58 = vrot.slane %v4771_v25, 5  ;;  %v3313_v9 = vor.u32 %v3312_v19, %v3309_v34  ;;  %v3732_v20 = vunpack.c.l.b16 %v3686_v8  ;;  %v6193_v25 = vld [vmem:[%s4864_s29 + $0xd0] sm:$0xf] }
 0x234   : > { %v3969_v40 = vmax.f32 %v3937_v21, 0.0  ;;  %v3834_v29 = vpop.f32.mrf.mxu0 }
 0x235   : > { %v3484_v45 = vpop.f32.mrf.mxu3  ;;  %v2577_v13 = vpop.f32.mrf.mxu1 }
 0x236   : > { %4002 = vst.msk [vmem:[%s5978_s19 + $0x38] sm:$0xff] %vm3994_vm8, %v3969_v40  ;;  %v3552_v7 = vadd.f32 %v3484_v45, %v2946_v22  ;;  %v3401_v45 = vpack.c.b16 %v3383_v44, %v3382_v18  ;;  %v2642_v51 = vadd.f32 %v2577_v13, %v6352_v27  ;;  %v3324_v44 = vrot.slane %v3323_v30, 4  ;;  %v4669_v30 = vld [vmem:[%s4864_s29 + $0xc0] sm:$0xff]  ;;  %v4774_v27 = vld [vmem:[%s4864_s29 + $0xc8] sm:$0x1] }
 0x237   : > { %4616 = vmatmul.msk.bf16.gmra.mxu0 %vm687_vm4, %v3750_v32  ;;  %v3689_v32 = vsel %vm5078_vm7, %v3687_v47, %v3688_v26  ;;  %v3328_v26 = vrot.slane %v3326_v24, 5  ;;  %v3692_v13 = vrot.slane %v6150_v52, 5  ;;  %v4601_v52 = vrot.slane %v6141_v6, 9 }
 0x238   : > { %v3902_v57 = vadd.f32 %v3834_v29, %v3552_v7  ;;  %v2880_v49 = vpop.f32.mrf.mxu2  ;;  %4438 = vmatmul.msk.bf16.gmra.mxu1 %vm687_vm4, %v2489_v16  ;;  %v2431_v29 = vsel %vm5078_vm7, %v4422_v23, %v2430_v17  ;;  %v2434_v16 = vsel %vm5078_vm7, %v2432_v38, %v2433_v58  ;;  %v3733_v7 = vunpack.c.l.b16 %v3689_v32  ;;  %v6190_v38 = vld [vmem:[%s4864_s29 + $0xcc] sm:$0xf] }
 0x239   : > { %v2947_v35 = vadd.f32 %v2880_v49, %v2641_v1  ;;  %v2472_v17 = vunpack.c.l.b16 %v2431_v29  ;;  %v3314_v1 = vrot.slane %v3313_v9, 4  ;;  %v3331_v8 = vshrl.u32 %v6190_v38, 16  ;;  %v6353_v9 = vld [vmem:[#allocation3_spill] sm:$0xff] }
 0x23a   : > { %v3938_v12 = vadd.f32 %v5954_v59, %v3902_v57  ;;  %v2473_v57 = vunpack.c.l.b16 %v2434_v16  ;;  %v3751_v34 = vpack.c.b16 %v3733_v7, %v3732_v20  ;;  %v3334_v32 = vshll.u32 %v6190_v38, 16  ;;  %v4773_v20 = vld [vmem:[%s4864_s29 + $0xc0] sm:$0xf] }
 0x23b   : > { %v3344_v29 = vshrl.u32 %v6193_v25, 16  ;;  %v3695_v6 = vrot.slane %v6171_v61, 5  ;;  %v4423_v7 = vrot.slane %v4773_v20, 9 }
 0x23c   : > { %v3970_v21 = vmax.f32 %v3938_v12, 0.0  ;;  %v3836_v22 = vpop.f32.mrf.mxu0  ;;  %v2490_v23 = vpack.c.b16 %v2473_v57, %v2472_v17  ;;  %v4772_v12 = vld [vmem:[%s4864_s29 + $0xc4] sm:$0xf] }
 0x23d   : > { %v3486_v2 = vpop.f32.mrf.mxu3  ;;  %4567 = vmatmul.msk.bf16.gmra.mxu2 %vm687_vm4, %v4668_v60  ;;  %v2579_v40 = vpop.f32.mrf.mxu1  ;;  %v3346_v61 = vrot.slane %v3344_v29, 4 }
 0x23e   : > { %4003 = vst.msk [vmem:[%s5978_s19 + $0x40] sm:$0xff] %vm3994_vm8, %v3970_v21  ;;  %v3553_v3 = vadd.f32 %v3486_v2, %v2947_v35  ;;  %v2437_v35 = vrot.slane %v4772_v12, 5  ;;  %v3319_v21 = vsel %vm4876_vm3, %v3314_v1, %v3318_v14  ;;  %v3340_v2 = vshll.u32 %v6193_v25, 16 }
 0x23f   : > { %v2643_v14 = vadd.f32 %v2579_v40, %v6353_v9  ;;  %v3384_v24 = vunpack.c.l.b16 %v3319_v21  ;;  %v3693_v40 = vsel %vm5078_vm7, %v4601_v52, %v3692_v13  ;;  %v3333_v1 = vrot.slane %v3331_v8, 4 }
 0x240   : > { %v3903_v62 = vadd.f32 %v3836_v22, %v3553_v3  ;;  %v2883_v47 = vpop.f32.mrf.mxu2  ;;  %v3329_v22 = vsel %vm4876_vm3, %v3324_v44, %v3328_v26  ;;  %v3734_v21 = vunpack.c.l.b16 %v3693_v40 }
 0x241   : > { %v2948_v18 = vadd.f32 %v2883_v47, %v2642_v51  ;;  %v2440_v51 = vrot.slane %v4774_v27, 5  ;;  %v3385_v57 = vunpack.c.l.b16 %v3329_v22  ;;  %v3699_v27 = vrot.slane %v6193_v25, 5 }
 0x242   : > { %v3939_v49 = vadd.f32 %v5954_v59, %v3903_v62  ;;  %4584 = vmatmul.msk.bf16.gmra.mxu3 %vm687_vm4, %v3401_v45  ;;  %v3694_v45 = vrot.slane %v3692_v13, 4  ;;  %v2439_v62 = vrot.slane %v2437_v35, 4 }
 0x243   : > { %v3701_v25 = vrot.slane %v3699_v27, 4 }
 0x244   : > { %v3971_v60 = vmax.f32 %v3939_v49, 0.0  ;;  %v3839_v63 = vpop.f32.mrf.mxu0  ;;  %v3336_v49 = vrot.slane %v3334_v32, 5  ;;  %v2441_v13 = vsel %vm5078_vm7, %v2439_v62, %v2440_v51 }
 0x245   : > { %v3489_v58 = vpop.f32.mrf.mxu3  ;;  %v2582_v19 = vpop.f32.mrf.mxu1 }
 0x246   : > { %4004 = vst.msk [vmem:[%s5978_s19 + $0x48] sm:$0xff] %vm3994_vm8, %v3971_v60  ;;  %v3554_v28 = vadd.f32 %v3489_v58, %v2948_v18  ;;  %v3342_v18 = vrot.slane %v3340_v2, 5  ;;  %v4488_v60 = vld [vmem:[%s4864_s29 + $0xd4] sm:$0x1]  ;;  %v2438_v58 = vsel %vm5078_vm7, %v4423_v7, %v2437_v35  ;;  %v3337_v52 = vor.u32 %v3336_v49, %v3333_v1 }
 0x247   : > { %4617 = vmatmul.msk.bf16.gmra.mxu0 %vm687_vm4, %v3751_v34  ;;  %v3696_v34 = vsel %vm5078_vm7, %v3694_v45, %v3695_v6  ;;  %v3350_v32 = vshll.u32 %v4488_v60, 16  ;;  %v2644_v29 = vadd.f32 %v2582_v19, %v5530_v10  ;;  %v2474_v9 = vunpack.c.l.b16 %v2438_v58 }
 0x248   : > { %v3904_v16 = vadd.f32 %v3839_v63, %v3554_v28  ;;  %v2885_v3 = vpop.f32.mrf.mxu2  ;;  %4439 = vmatmul.msk.bf16.gmra.mxu1 %vm687_vm4, %v2490_v23  ;;  %v3402_v28 = vpack.c.b16 %v3385_v57, %v3384_v24  ;;  %v3735_v22 = vunpack.c.l.b16 %v3696_v34  ;;  %v3347_v8 = vor.u32 %v3346_v61, %v3342_v18 }
 0x249   : > { %v2949_v17 = vadd.f32 %v2885_v3, %v2643_v14  ;;  %v2475_v14 = vunpack.c.l.b16 %v2441_v13  ;;  %v3338_v6 = vrot.slane %v3337_v52, 4  ;;  %v3352_v24 = vrot.slane %v3350_v32, 5 }
 0x24a   : > { %v3940_v47 = vadd.f32 %v5954_v59, %v3904_v16  ;;  %v3752_v45 = vpack.c.b16 %v3735_v22, %v3734_v21  ;;  %v4602_v57 = vrot.slane %v6190_v38, 9  ;;  %v3702_v61 = vrot.slane %v4488_v60, 5 }
 0x24b   : > { %v2491_v62 = vpack.c.b16 %v2475_v14, %v2474_v9 }
 0x24c   : > { %v3972_v44 = vmax.f32 %v3940_v47, 0.0  ;;  %v3841_v26 = vpop.f32.mrf.mxu0  ;;  %v3343_v47 = vsel %vm4876_vm3, %v3338_v6, %v3342_v18  ;;  %v3700_v38 = vsel %vm5078_vm7, %v4602_v57, %v3699_v27 }
 0x24d   : > { %v3491_v63 = vpop.f32.mrf.mxu3  ;;  %4568 = vmatmul.msk.bf16.gmra.mxu2 %vm687_vm4, %v4669_v30  ;;  %v2584_v23 = vpop.f32.mrf.mxu1  ;;  %v3348_v30 = vrot.slane %v3347_v8, 4 }
 0x24e   : > { %4005 = vst.msk [vmem:[%s5978_s19 + $0x50] sm:$0xff] %vm3994_vm8, %v3972_v44  ;;  %v3555_v12 = vadd.f32 %v3491_v63, %v2949_v17  ;;  %v2645_v1 = vadd.f32 %v2584_v23, %v5548_v55  ;;  %v4670_v44 = vld [vmem:[%s4864_s29 + $0xcc] sm:$0xff]  ;;  %v3386_v63 = vunpack.c.l.b16 %v3343_v47  ;;  %v3703_v55 = vsel %vm5078_vm7, %v3701_v25, %v3702_v61 }
 0x24f   : > { %v3353_v17 = vsel %vm4876_vm3, %v3348_v30, %v3352_v24  ;;  %v3737_v21 = vunpack.c.l.b16 %v3703_v55 }
 0x250   : > { %v3905_v2 = vadd.f32 %v3841_v26, %v3555_v12  ;;  %v2888_v16 = vpop.f32.mrf.mxu2  ;;  %v3387_v18 = vunpack.c.l.b16 %v3353_v17 }
 0x251   : > { %v2950_v3 = vadd.f32 %v2888_v16, %v2644_v29 }
 0x252   : > { %v3941_v35 = vadd.f32 %v5954_v59, %v3905_v2  ;;  %4585 = vmatmul.msk.bf16.gmra.mxu3 %vm687_vm4, %v3402_v28  ;;  %v3403_v12 = vpack.c.b16 %v3387_v18, %v3386_v63  ;;  %v3736_v28 = vunpack.c.l.b16 %v3700_v38 }
 0x254   : > { %v3973_v20 = vmax.f32 %v3941_v35, 0.0  ;;  %v3844_v7 = vpop.f32.mrf.mxu0  ;;  %v3753_v2 = vpack.c.b16 %v3737_v21, %v3736_v28 }
 0x255   : > { %v3494_v10 = vpop.f32.mrf.mxu3  ;;  %v2587_v19 = vpop.f32.mrf.mxu1 }
 0x256   : > { %4006 = vst.msk [vmem:[%s5978_s19 + $0x58] sm:$0xff] %vm3994_vm8, %v3973_v20  ;;  %v3556_v51 = vadd.f32 %v3494_v10, %v2950_v3  ;;  %v2646_v52 = vadd.f32 %v2587_v19, %v5569_v56 }
 0x257   : > { %4618 = vmatmul.msk.bf16.gmra.mxu0 %vm687_vm4, %v3752_v45  ;;  %v6354_v45 = vld [vmem:[#allocation4_spill] sm:$0xff] }
 0x258   : > { %v3906_v40 = vadd.f32 %v3844_v7, %v3556_v51  ;;  %v2890_v49 = vpop.f32.mrf.mxu2  ;;  %4440 = vmatmul.msk.bf16.gmra.mxu1 %vm687_vm4, %v2491_v62 }
 0x259   : > { %v2951_v34 = vadd.f32 %v2890_v49, %v2645_v1 }
 0x25a   : > { %v3942_v26 = vadd.f32 %v5954_v59, %v3906_v40 }
 0x25c   : > { %v3974_v58 = vmax.f32 %v3942_v26, 0.0  ;;  %v3846_v36 = vpop.f32.mrf.mxu0 }
 0x25d   : > { %v3496_v23 = vpop.f32.mrf.mxu3  ;;  %4569 = vmatmul.msk.bf16.gmra.mxu2 %vm687_vm4, %v4670_v44  ;;  %v2589_v13 = vpop.f32.mrf.mxu1 }
 0x25e   : > { %4007 = vst.msk [vmem:[%s5978_s19 + $0x60] sm:$0xff] %vm3994_vm8, %v3974_v58  ;;  %v3557_v60 = vadd.f32 %v3496_v23, %v2951_v34  ;;  %v2647_v56 = vadd.f32 %v2589_v13, %v6354_v45 }
 0x260   : > { %v3907_v22 = vadd.f32 %v3846_v36, %v3557_v60  ;;  %v2893_v8 = vpop.f32.mrf.mxu2 }
 0x261   : > { %v2952_v46 = vadd.f32 %v2893_v8, %v2646_v52 }
 0x262   : > { %v3943_v32 = vadd.f32 %v5954_v59, %v3907_v22  ;;  %4586 = vmatmul.msk.bf16.gmra.mxu3 %vm687_vm4, %v3403_v12 }
 0x264   : > { %v3975_v29 = vmax.f32 %v3943_v32, 0.0  ;;  %v3849_v16 = vpop.f32.mrf.mxu0 }
 0x265   : > { %v3499_v9 = vpop.f32.mrf.mxu3  ;;  %v2592_v14 = vpop.f32.mrf.mxu1 }
 0x266   : > { %4008 = vst.msk [vmem:[%s5978_s19 + $0x68] sm:$0xff] %vm3994_vm8, %v3975_v29  ;;  %v3558_v35 = vadd.f32 %v3499_v9, %v2952_v46  ;;  %v2648_v51 = vadd.f32 %v2592_v14, %v5614_v48 }
 0x267   : > { %4619 = vmatmul.msk.bf16.gmra.mxu0 %vm687_vm4, %v3753_v2 }
 0x268   : > { %v3908_v3 = vadd.f32 %v3849_v16, %v3558_v35  ;;  %v2895_v6 = vpop.f32.mrf.mxu2 }
 0x269   : > { %v2953_v24 = vadd.f32 %v2895_v6, %v2647_v56 }
 0x26a   : > { %v3944_v30 = vadd.f32 %v5954_v59, %v3908_v3 }
 0x26c   : > { %v3976_v20 = vmax.f32 %v3944_v30, 0.0  ;;  %v3851_v7 = vpop.f32.mrf.mxu0 }
 0x26d   : > { %v3501_v62 = vpop.f32.mrf.mxu3  ;;  %v2594_v27 = vpop.f32.mrf.mxu1 }
 0x26e   : > { %4009 = vst.msk [vmem:[%s5978_s19 + $0x70] sm:$0xff] %vm3994_vm8, %v3976_v20  ;;  %v3559_v10 = vadd.f32 %v3501_v62, %v2953_v24  ;;  %v2649_v26 = vadd.f32 %v2594_v27, %v5638_v0 }
 0x270   : > { %v3909_v19 = vadd.f32 %v3851_v7, %v3559_v10  ;;  %v2898_v47 = vpop.f32.mrf.mxu2 }
 0x271   : > { %v2954_v57 = vadd.f32 %v2898_v47, %v2648_v51 }
 0x272   : > { %v3945_v17 = vadd.f32 %v5954_v59, %v3909_v19 }
 0x274   : > { %v3977_v40 = vmax.f32 %v3945_v17, 0.0  ;;  %v3854_v1 = vpop.f32.mrf.mxu0 }
 0x275   : > { %v3504_v49 = vpop.f32.mrf.mxu3  ;;  %v2597_v25 = vpop.f32.mrf.mxu1 }
 0x276   : > { %4010 = vst.msk [vmem:[%s5978_s19 + $0x78] sm:$0xff] %vm3994_vm8, %v3977_v40  ;;  %v3560_v61 = vadd.f32 %v3504_v49, %v2954_v57  ;;  %v2650_v13 = vadd.f32 %v2597_v25, %v5659_v33 }
 0x278   : > { %v3910_v44 = vadd.f32 %v3854_v1, %v3560_v61  ;;  %v2900_v34 = vpop.f32.mrf.mxu2 }
 0x279   : > { %v2955_v18 = vadd.f32 %v2900_v34, %v2649_v26 }
 0x27a   : > { %v3946_v63 = vadd.f32 %v5954_v59, %v3910_v44 }
 0x27c   : > { %v3978_v48 = vmax.f32 %v3946_v63, 0.0  ;;  %v3856_v58 = vpop.f32.mrf.mxu0 }
 0x27d   : > { %v3506_v36 = vpop.f32.mrf.mxu3  ;;  %v2599_v38 = vpop.f32.mrf.mxu1 }
 0x27e   : > { %4011 = vst.msk [vmem:[%s5978_s19 + $0x80] sm:$0xff] %vm3994_vm8, %v3978_v48  ;;  %v3561_v55 = vadd.f32 %v3506_v36, %v2955_v18  ;;  %v2651_v46 = vadd.f32 %v2599_v38, %v5684_v54 }
 0x280   : > { %v3911_v23 = vadd.f32 %v3856_v58, %v3561_v55  ;;  %v2903_v60 = vpop.f32.mrf.mxu2 }
 0x281   : > { %v2956_v28 = vadd.f32 %v2903_v60, %v2650_v13 }
 0x282   : > { %v3947_v12 = vadd.f32 %v5954_v59, %v3911_v23 }
 0x284   : > { %v3979_v0 = vmax.f32 %v3947_v12, 0.0  ;;  %v3859_v21 = vpop.f32.mrf.mxu0 }
 0x285   : > { %v3509_v22 = vpop.f32.mrf.mxu3  ;;  %v2602_v52 = vpop.f32.mrf.mxu1 }
 0x286   : > { %4012 = vst.msk [vmem:[%s5978_s19 + $0x88] sm:$0xff] %vm3994_vm8, %v3979_v0  ;;  %v3562_v8 = vadd.f32 %v3509_v22, %v2956_v28  ;;  %v2652_v56 = vadd.f32 %v2602_v52, %v5704_v53 }
 0x288   : > { %v3912_v32 = vadd.f32 %v3859_v21, %v3562_v8  ;;  %v2905_v2 = vpop.f32.mrf.mxu2 }
 0x289   : > { %v2957_v16 = vadd.f32 %v2905_v2, %v2651_v46 }
 0x28a   : > { %v3948_v29 = vadd.f32 %v5954_v59, %v3912_v32 }
 0x28c   : > { %v3980_v33 = vmax.f32 %v3948_v29, 0.0  ;;  %v3861_v9 = vpop.f32.mrf.mxu0 }
 0x28d   : > { %v3511_v14 = vpop.f32.mrf.mxu3  ;;  %v2604_v35 = vpop.f32.mrf.mxu1 }
 0x28e   : > { %4013 = vst.msk [vmem:[%s5978_s19 + $0x90] sm:$0xff] %vm3994_vm8, %v3980_v33  ;;  %v3563_v3 = vadd.f32 %v3511_v14, %v2957_v16  ;;  %v2653_v19 = vadd.f32 %v2604_v35, %v5728_v11  ;;  %v6288_v11 = vld [vmem:[%s6343_s2] ss:$0 sm:$0xff] }
 0x290   : > { %v3913_v45 = vadd.f32 %v3861_v9, %v3563_v3  ;;  %v2908_v6 = vpop.f32.mrf.mxu2 }
 0x291   : > { %v2958_v24 = vadd.f32 %v2908_v6, %v2652_v56 }
 0x292   : > { %v3949_v30 = vadd.f32 %v5954_v59, %v3913_v45 }
 0x294   : > { %v3981_v54 = vmax.f32 %v3949_v30, 0.0  ;;  %v3864_v20 = vpop.f32.mrf.mxu0 }
 0x295   : > { %v3514_v7 = vpop.f32.mrf.mxu3  ;;  %v2607_v62 = vpop.f32.mrf.mxu1 }
 0x296   : > { %4014 = vst.msk [vmem:[%s5978_s19 + $0x98] sm:$0xff] %vm3994_vm8, %v3981_v54  ;;  %v3564_v27 = vadd.f32 %v3514_v7, %v2958_v24  ;;  %v2654_v61 = vadd.f32 %v2607_v62, %v5749_v43 }
 0x298   : > { %v3914_v10 = vadd.f32 %v3864_v20, %v3564_v27  ;;  %v2910_v51 = vpop.f32.mrf.mxu2 }
 0x299   : > { %v2959_v17 = vadd.f32 %v2910_v51, %v2653_v19 }
 0x29a   : > { %v3950_v47 = vadd.f32 %v5954_v59, %v3914_v10 }
 0x29c   : > { %v3982_v53 = vmax.f32 %v3950_v47, 0.0  ;;  %v3866_v57 = vpop.f32.mrf.mxu0 }
 0x29d   : > { %v3516_v40 = vpop.f32.mrf.mxu3  ;;  %v2609_v1 = vpop.f32.mrf.mxu1 }
 0x29e   : > { %4015 = vst.msk [vmem:[%s5978_s19 + $0xa0] sm:$0xff] %vm3994_vm8, %v3982_v53  ;;  %v3565_v49 = vadd.f32 %v3516_v40, %v2959_v17  ;;  %v2655_v43 = vadd.f32 %v2609_v1, %v5774_v41 }
 0x2a0   : > { %v3915_v25 = vadd.f32 %v3866_v57, %v3565_v49  ;;  %v2913_v44 = vpop.f32.mrf.mxu2 }
 0x2a1   : > { %v2960_v26 = vadd.f32 %v2913_v44, %v2654_v61 }
 0x2a2   : > { %v3951_v59 = vadd.f32 %v6288_v11, %v3915_v25 }
 0x2a4   : > { %v3983_v34 = vmax.f32 %v3951_v59, 0.0  ;;  %v3869_v63 = vpop.f32.mrf.mxu0 }
 0x2a5   : > { %v3519_v18 = vpop.f32.mrf.mxu3  ;;  %v2612_v48 = vpop.f32.mrf.mxu1 }
 0x2a6   : > { %4016 = vst.msk [vmem:[%s5978_s19 + $0xa8] sm:$0xff] %vm3994_vm8, %v3983_v34  ;;  %v3566_v58 = vadd.f32 %v3519_v18, %v2960_v26  ;;  %v2656_v22 = vadd.f32 %v2612_v48, %v5794_v37 }
 0x2a8   : > { %v3916_v36 = vadd.f32 %v3869_v63, %v3566_v58  ;;  %v2915_v38 = vpop.f32.mrf.mxu2 }
 0x2a9   : > { %v2961_v23 = vadd.f32 %v2915_v38, %v2655_v43 }
 0x2aa   : > { %v3952_v55 = vadd.f32 %v6288_v11, %v3916_v36 }
 0x2ac   : > { %v3984_v13 = vmax.f32 %v3952_v55, 0.0  ;;  %v3871_v60 = vpop.f32.mrf.mxu0 }
 0x2ad   : > { %v3521_v12 = vpop.f32.mrf.mxu3  ;;  %v2614_v28 = vpop.f32.mrf.mxu1 }
 0x2ae   : > { %4017 = vst.msk [vmem:[%s5978_s19 + $0xb0] sm:$0xff] %vm3994_vm8, %v3984_v13  ;;  %v3567_v0 = vadd.f32 %v3521_v12, %v2961_v23  ;;  %v2657_v9 = vadd.f32 %v2614_v28, %v5817_v4 }
 0x2b0   : > { %v3917_v21 = vadd.f32 %v3871_v60, %v3567_v0  ;;  %v2918_v52 = vpop.f32.mrf.mxu2 }
 0x2b1   : > { %v2962_v32 = vadd.f32 %v2918_v52, %v2656_v22 }
 0x2b2   : > { %v3953_v8 = vadd.f32 %v6288_v11, %v3917_v21 }
 0x2b4   : > { %v3985_v41 = vmax.f32 %v3953_v8, 0.0  ;;  %v3874_v46 = vpop.f32.mrf.mxu0 }
 0x2b5   : > { %v3524_v2 = vpop.f32.mrf.mxu3  ;;  %v2617_v29 = vpop.f32.mrf.mxu1 }
 0x2b6   : > { %4018 = vst.msk [vmem:[%s5978_s19 + $0xb8] sm:$0xff] %vm3994_vm8, %v3985_v41  ;;  %v3568_v16 = vadd.f32 %v3524_v2, %v2962_v32  ;;  %v2658_v54 = vadd.f32 %v2617_v29, %v5837_v50 }
 0x2b8   : > { %v3918_v33 = vadd.f32 %v3874_v46, %v3568_v16  ;;  %v2920_v14 = vpop.f32.mrf.mxu2 }
 0x2b9   : > { %v2963_v37 = vadd.f32 %v2920_v14, %v2657_v9 }
 0x2ba   : > { %v3954_v35 = vadd.f32 %v6288_v11, %v3918_v33 }
 0x2bc   : > { %v3986_v3 = vmax.f32 %v3954_v35, 0.0  ;;  %v3876_v45 = vpop.f32.mrf.mxu0 }
 0x2bd   : > { %v3526_v56 = vpop.f32.mrf.mxu3  ;;  %v2619_v6 = vpop.f32.mrf.mxu1 }
 0x2be   : > { %4019 = vst.msk [vmem:[%s5978_s19 + $0xc0] sm:$0xff] %vm3994_vm8, %v3986_v3  ;;  %v3569_v30 = vadd.f32 %v3526_v56, %v2963_v37  ;;  %v2659_v17 = vadd.f32 %v2619_v6, %v5858_v31 }
 0x2c0   : > { %v3919_v24 = vadd.f32 %v3876_v45, %v3569_v30  ;;  %v2923_v20 = vpop.f32.mrf.mxu2 }
 0x2c1   : > { %v2964_v4 = vadd.f32 %v2923_v20, %v2658_v54 }
 0x2c2   : > { %v3955_v7 = vadd.f32 %v6288_v11, %v3919_v24 }
 0x2c4   : > { %v3987_v62 = vmax.f32 %v3955_v7, 0.0  ;;  %v3879_v27 = vpop.f32.mrf.mxu0 }
 0x2c5   : > { %v3529_v10 = vpop.f32.mrf.mxu3  ;;  %v2622_v51 = vpop.f32.mrf.mxu1 }
 0x2c6   : > { %4020 = vst.msk [vmem:[%s5978_s19 + $0xc8] sm:$0xff] %vm3994_vm8, %v3987_v62  ;;  %v3570_v19 = vadd.f32 %v3529_v10, %v2964_v4  ;;  %v2660_v44 = vadd.f32 %v2622_v51, %v5880_v5 }
 0x2c8   : > { %v3920_v47 = vadd.f32 %v3879_v27, %v3570_v19  ;;  %v2925_v53 = vpop.f32.mrf.mxu2 }
 0x2c9   : > { %v2965_v50 = vadd.f32 %v2925_v53, %v2659_v17 }
 0x2ca   : > { %v3956_v57 = vadd.f32 %v6288_v11, %v3920_v47 }
 0x2cc   : > { %v3988_v40 = vmax.f32 %v3956_v57, 0.0  ;;  %v3881_v1 = vpop.f32.mrf.mxu0 }
 0x2cd   : > { %v3531_v49 = vpop.f32.mrf.mxu3  ;;  %v2624_v26 = vpop.f32.mrf.mxu1 }
 0x2ce   : > { %4021 = vst.msk [vmem:[%s5978_s19 + $0xd0] sm:$0xff] %vm3994_vm8, %v3988_v40  ;;  %v3571_v25 = vadd.f32 %v3531_v49, %v2965_v50  ;;  %v2661_v43 = vadd.f32 %v2624_v26, %v5902_v42 }
 0x2d0   : > { %v3921_v61 = vadd.f32 %v3881_v1, %v3571_v25  ;;  %v2928_v59 = vpop.f32.mrf.mxu2 }
 0x2d1   : > { %v2966_v31 = vadd.f32 %v2928_v59, %v2660_v44 }
 0x2d2   : > { %v3957_v34 = vadd.f32 %v6288_v11, %v3921_v61 }
 0x2d4   : > { %v3989_v63 = vmax.f32 %v3957_v34, 0.0  ;;  %v3884_v18 = vpop.f32.mrf.mxu0 }
 0x2d5   : > { %v3534_v48 = vpop.f32.mrf.mxu3  ;;  %v2627_v5 = vpop.f32.mrf.mxu1 }
 0x2d6   : > { %4022 = vst.msk [vmem:[%s5978_s19 + $0xd8] sm:$0xff] %vm3994_vm8, %v3989_v63  ;;  %v3572_v58 = vadd.f32 %v3534_v48, %v2966_v31  ;;  %v2662_v21 = vadd.f32 %v2627_v5, %v5921_v15 }
 0x2d8   : > { %v3922_v36 = vadd.f32 %v3884_v18, %v3572_v58  ;;  %v2930_v38 = vpop.f32.mrf.mxu2 }
 0x2d9   : > { %v2967_v23 = vadd.f32 %v2930_v38, %v2661_v43 }
 0x2da   : > { %v3958_v55 = vadd.f32 %v6288_v11, %v3922_v36 }
 0x2dc   : > { %v3990_v13 = vmax.f32 %v3958_v55, 0.0  ;;  %v3886_v60 = vpop.f32.mrf.mxu0 }
 0x2dd   : > { %v3536_v12 = vpop.f32.mrf.mxu3  ;;  %v2629_v32 = vpop.f32.mrf.mxu1 }
 0x2de   : > { %4023 = vst.msk [vmem:[%s5978_s19 + $0xe0] sm:$0xff] %vm3994_vm8, %v3990_v13  ;;  %v3573_v28 = vadd.f32 %v3536_v12, %v2967_v23  ;;  %v2663_v16 = vadd.f32 %v2629_v32, %v5945_v39 }
 0x2e0   : > { %v3923_v0 = vadd.f32 %v3886_v60, %v3573_v28  ;;  %v2933_v22 = vpop.f32.mrf.mxu2 }
 0x2e1   : > { %v2968_v42 = vadd.f32 %v2933_v22, %v2662_v21 }
 0x2e2   : > { %v3959_v52 = vadd.f32 %v6288_v11, %v3923_v0 }
 0x2e4   : > { %v3991_v8 = vmax.f32 %v3959_v52, 0.0  ;;  %v3889_v41 = vpop.f32.mrf.mxu0 }
 0x2e5   : > { %v3539_v46 = vpop.f32.mrf.mxu3 }
 0x2e6   : > { %4024 = vst.msk [vmem:[%s5978_s19 + $0xe8] sm:$0xff] %vm3994_vm8, %v3991_v8  ;;  %v3574_v2 = vadd.f32 %v3539_v46, %v2968_v42 }
 0x2e8   : > { %v3924_v29 = vadd.f32 %v3889_v41, %v3574_v2  ;;  %v2935_v33 = vpop.f32.mrf.mxu2 }
 0x2e9   : > { %v2969_v15 = vadd.f32 %v2935_v33, %v2663_v16 }
 0x2ea   : > { %v3960_v9 = vadd.f32 %v6288_v11, %v3924_v29 }
 0x2ec   : > { %v3992_v14 = vmax.f32 %v3960_v9, 0.0  ;;  %v3891_v3 = vpop.f32.mrf.mxu0 }
 0x2ed   : > { %v3541_v35 = vpop.f32.mrf.mxu3 }
 0x2ee   : > { %4025 = vst.msk [vmem:[%s5978_s19 + $0xf0] sm:$0xff] %vm3994_vm8, %v3992_v14  ;;  %v3575_v37 = vadd.f32 %v3541_v35, %v2969_v15 }
 0x2f0   : > { %v3925_v45 = vadd.f32 %v3891_v3, %v3575_v37 }
 0x2f2   : > { %v3961_v56 = vadd.f32 %v6288_v11, %v3925_v45 }
 0x2f4   : > { %v3993_v6 = vmax.f32 %v3961_v56, 0.0 }
 0x2f6   : > { %4026 = vst.msk [vmem:[%s5978_s19 + $0xf8] sm:$0xff] %vm3994_vm8, %v3993_v6 }
 0x2f7 PF: > { %s13_s14 = sadd.s32 1, %s4798_s14   ;;  %s6355_s12 = smov %s4794_s13 }
 0x2f8   : > { %p10_p5 = scmp.ge.s32.totalorder %s13_s14, 4   ;;  %s6356_s13 = smov %s6358_s15 }
 0x2fa   :  { %12 = sbr.rel (!%p10_p5) target bundleno = 2 (0x2), region = 73 }

</bundles_post_ra>
